<compile_context>
chip_gen: v6e
topology: v6e:2x2x1
jax: 0.10.0
libtpu: 0.0.40
codegen_flags: <defaults>
</compile_context>

<pallas_src>
import functools

import jax
import jax.numpy as jnp
from jax import lax
from jax.experimental import pallas as pl
from jax.experimental.pallas import tpu as pltpu


# ----------------------------------------------------------------------------
# Fused kernel
# ----------------------------------------------------------------------------
def _lrl_kernel(x_ref, mask_ref,
                wk_ref, bk_ref, wq_ref, bq_ref,
                w1_ref, b1_ref, w2_ref, b2_ref,
                wf_ref, bf_ref, out_ref,
                *, k, channels, m, mid):
    """All channel counts are tiny, so channel contractions are unrolled VPU FMAs
    with scalar weights read from SMEM; vector work happens on (k*k, L) slabs
    (k*k on the sublane axis, L = h_out*w_out on the lane axis).

    x_ref    : (C, k*k, L) VMEM  unfolded + view-scrambled input patches
    mask_ref : (k*k, L)    VMEM  1.0 for in-bounds taps, 0.0 for zero-padded taps
    w*/b*    : SMEM scalar tables (conv weights squeezed to 2-D / 1-D)
    out_ref  : (C, L)      VMEM  final 1x1 conv output in its consumed layout
    """
    KK = k * k
    C = channels
    C_small = C // k           # kmap/qmap (== geometry prior) channel count
    C_per_group = C // m
    center = KK // 2

    # Load each channel's (KK, L) patch slab once and reuse it everywhere.
    x_slabs = [x_ref[c] for c in range(C)]
    mask = mask_ref[...]

    # ---- GeometryPrior, fused in-kernel: iota coordinates + VPU FMAs ----------
    j_idx = lax.broadcasted_iota(jnp.int32, (KK, 1), 0)        # 0..k*k-1 (sublanes)
    row = jnp.zeros_like(j_idx)
    for t in range(1, k):                                      # division-free j // k
        row = row + (j_idx >= t * k).astype(jnp.int32)
    col = j_idx - k * row                                      # j % k
    coord_x = (col - (k // 2)).astype(jnp.float32)             # (KK, 1)
    coord_y = ((k // 2) - row).astype(jnp.float32)             # (KK, 1)

    hidden = []
    for hc in range(mid):                                      # gp.l1: Conv2d(2, mid, 1)
        h = coord_x * w1_ref[hc, 0] + coord_y * w1_ref[hc, 1] + b1_ref[hc]
        hidden.append(jnp.maximum(h, 0.0))
    prior = []
    for cs in range(C_small):                                  # gp.l2: Conv2d(mid, C//m, 1)
        acc = hidden[0] * w2_ref[cs, 0]
        for hc in range(1, mid):
            acc = acc + hidden[hc] * w2_ref[cs, hc]
        prior.append(acc + b2_ref[cs])                         # (KK, 1)

    # ---- key/query maps + appearance composability + softmax + aggregation ----
    # A 1x1 conv commutes with Unfold, so km/qm are evaluated directly on the
    # unfolded x; the conv bias is masked at zero-padded taps (Unfold zero-fills).
    agg = [None] * C                                           # per channel: (1, L)
    for cs in range(C_small):
        km = x_slabs[0] * wk_ref[cs, 0]
        qm = x_slabs[0] * wq_ref[cs, 0]
        for c in range(1, C):
            km = km + x_slabs[c] * wk_ref[cs, c]
            qm = qm + x_slabs[c] * wq_ref[cs, c]
        km = km + bk_ref[cs] * mask
        qm = qm + bq_ref[cs] * mask
        q_center = qm[center:center + 1, :]                    # (1, L) chunk centers
        logits = km * q_center + prior[cs]                     # (KK, L)
        mx = jnp.max(logits, axis=0, keepdims=True)
        e = jnp.exp(logits - mx)
        attn = e / jnp.sum(e, axis=0, keepdims=True)           # softmax over k*k
        for g in range(m):
            cc = g * C_per_group + cs
            agg[cc] = jnp.sum(attn * x_slabs[cc], axis=0, keepdims=True)   # (1, L)

    # ---- final 1x1 conv, emitted directly in the consumed (C, L) layout --------
    for co in range(C):
        acc = agg[0] * wf_ref[co, 0]
        for cc in range(1, C):
            acc = acc + agg[cc] * wf_ref[co, cc]
        out_ref[co:co + 1, :] = acc + bf_ref[co]


# ----------------------------------------------------------------------------
# Wrapper glue (torch.nn.Unfold + the reference code's .view scrambling)
# ----------------------------------------------------------------------------
def _unfold_nchw(x, k, padding, stride):
    """torch.nn.Unfold(k, dilation=1, padding=padding, stride=stride) for NCHW x.
    Returns (u, h_out, w_out) with u of shape (B, C*k*k, h_out*w_out), channels
    ordered exactly like PyTorch (channel-major, then the k*k tap offsets)."""
    B, C, H, W = x.shape
    if padding:
        x = jnp.pad(x, ((0, 0), (0, 0), (padding, padding), (padding, padding)))
    Hp, Wp = H + 2 * padding, W + 2 * padding
    h_out = (Hp - k) // stride + 1
    w_out = (Wp - k) // stride + 1
    taps = []
    for ki in range(k):
        for kj in range(k):
            sl = lax.slice(x, (0, 0, ki, kj),
                           (B, C, ki + (h_out - 1) * stride + 1,
                            kj + (w_out - 1) * stride + 1),
                           (1, 1, stride, stride))              # (B, C, h_out, w_out)
            taps.append(sl.reshape(B, C, h_out * w_out))
    u = jnp.stack(taps, axis=2).reshape(B, C * k * k, h_out * w_out)
    return u, h_out, w_out


@functools.partial(jax.jit, static_argnames=("k", "stride", "padding", "m"))
def local_relational_forward(x, wk, bk, wq, bq, w1, b1, w2, b2, wf, bf,
                             *, k, stride=1, padding=0, m=None):
    """LocalRelationalLayer forward.  x: (1, C, H, W) float32.  Conv weights are
    passed squeezed: wk/wq (C//k, C), w1 (mid, 2), w2 (C//m, mid), wf (C, C)."""
    m = m or 8
    B, C, H, W = x.shape
    KK = k * k
    C_small, C_per_group = C // k, C // m
    mid = w1.shape[0]
    h_out = (H + 2 * padding - (k - 1) - 1) // stride + 1
    w_out = (W + 2 * padding - (k - 1) - 1) // stride + 1
    L = h_out * w_out

    # Regime in which the reference PyTorch module's views/broadcasts are valid.
    # TODO(synk): the reference code also "runs" for batch == m (pairing batch
    # entries with unfold groups); only the batch == 1 case is implemented here.
    if B != 1:
        raise NotImplementedError("batch must be 1")
    if k % 2 != 1:
        raise ValueError("k must be odd (GeometryPrior coordinate grid)")
    if C % k or C % m or C_small != C_per_group:
        raise ValueError("need channels % k == 0, channels % m == 0, C//k == C//m")
    if mid < 1:
        raise ValueError("GeometryPrior hidden width must be >= 1")
    if L // C != KK:
        raise ValueError("the reference module's final .view requires "
                         "(h_out*w_out) // channels == k*k")

    # Unfold, then the exact .view() memory reinterpretation: per channel the flat
    # (k*k, L) block is re-read as (L, k*k); transpose so kernel slabs are (k*k, L)
    # with L dense on the lane axis.
    x_unf, _, _ = _unfold_nchw(x, k, padding, stride)            # (1, C*KK, L)
    x_scr = (x_unf.reshape(C, KK * L)
                  .reshape(C, L, KK)
                  .transpose(0, 2, 1))                           # (C, KK, L)
    ones = jnp.ones((1, 1, H, W), x.dtype)
    m_unf, _, _ = _unfold_nchw(ones, k, padding, stride)         # (1, KK, L)
    mask_scr = m_unf.reshape(KK * L).reshape(L, KK).T            # (KK, L)

    kernel = functools.partial(_lrl_kernel, k=k, channels=C, m=m, mid=mid)
    vmem = pl.BlockSpec(memory_space=pltpu.MemorySpace.VMEM)
    smem = pl.BlockSpec(memory_space=pltpu.MemorySpace.SMEM)
    out_cl = pl.pallas_call(
        kernel,
        out_shape=jax.ShapeDtypeStruct((C, L), jnp.float32),
        in_specs=[vmem, vmem] + [smem] * 10,
        out_specs=vmem,
    )(x_scr, mask_scr, wk, bk, wq, bq, w1, b1, w2, b2, wf, bf)

    # Output already in consumed (C, L) layout -> metadata-only reshape.
    return out_cl.reshape(1, C, h_out, w_out)


# ----------------------------------------------------------------------------
# Pure-JAX reference mirroring the PyTorch code (including its .view arithmetic)
# ----------------------------------------------------------------------------
def local_relational_reference(x, params, *, k, stride=1, padding=0, m=None):
    m = m or 8
    wk, bk, wq, bq, w1, b1, w2, b2, wf, bf = params
    B, C, H, W = x.shape
    KK = k * k

    # GeometryPrior
    half = k // 2
    a_range = jnp.arange(-half, half + 1, dtype=jnp.float32)
    x_pos = jnp.broadcast_to(a_range[None, :], (k, k))
    b_range = jnp.arange(half, -half - 1, -1, dtype=jnp.float32)
    y_pos = jnp.broadcast_to(b_range[:, None], (k, k))
    pos = jnp.stack([x_pos, y_pos], axis=0)[None]                       # (1,2,k,k)
    h1 = jnp.einsum("bchw,oc->bohw", pos, w1) + b1[None, :, None, None]
    gp = jnp.einsum("bchw,oc->bohw", jnp.maximum(h1, 0.0), w2) + b2[None, :, None, None]
    gpk = gp.reshape(1, C // m, 1, KK)

    # KeyQueryMaps (1x1 convs)
    km = jnp.einsum("bchw,oc->bohw", x, wk) + bk[None, :, None, None]
    qm = jnp.einsum("bchw,oc->bohw", x, wq) + bq[None, :, None, None]

    # AppearanceComposability
    kmu, h_out, w_out = _unfold_nchw(km, k, padding, stride)
    qmu, _, _ = _unfold_nchw(qm, k, padding, stride)
    Ck = km.shape[1]
    kmu = kmu.reshape(B, Ck, -1, kmu.shape[-2] // Ck)
    qmu = qmu.reshape(B, Ck, -1, qmu.shape[-2] // Ck)
    ak = kmu * qmu[:, :, :, KK // 2:KK // 2 + 1]

    ck = jax.nn.softmax(ak + gpk, axis=-1)
    xu, _, _ = _unfold_nchw(x, k, padding, stride)
    xu = xu.reshape(B, m, C // m, -1, xu.shape[-2] // C)
    pre = ck * xu
    pre = pre.reshape(B, C, -1, xu.shape[-2] // C)
    s = jnp.sum(pre, axis=-1).reshape(B, C, h_out, w_out)
    return jnp.einsum("bchw,oc->bohw", s, wf) + bf[None, :, None, None]


if __name__ == "__main__":
    # Small config consistent with the module's constraints:
    #   channels % k == 0, channels % m == 0, C//k == C//m, batch == 1,
    #   (h_out*w_out) // channels == k*k (required by the reference .view).
    channels, k, m = 12, 3, 3
    stride, padding = 1, 0
    B, H, W = 1, 12, 13              # h_out*w_out = 110, 110 // 12 == 9 == k*k
    C_small = channels // k          # kmap/qmap output channels
    C_gp = channels // m             # GeometryPrior channels
    mid = int(0.5 * C_gp)            # GeometryPrior default multiplier = 0.5

    key = jax.random.PRNGKey(0)
    ks = jax.random.split(key, 11)
    x = jax.random.normal(ks[0], (B, channels, H, W), jnp.float32)
    wk = jax.random.normal(ks[1], (C_small, channels), jnp.float32) * 0.3
    bk = jax.random.normal(ks[2], (C_small,), jnp.float32) * 0.1
    wq = jax.random.normal(ks[3], (C_small, channels), jnp.float32) * 0.3
    bq = jax.random.normal(ks[4], (C_small,), jnp.float32) * 0.1
    w1 = jax.random.normal(ks[5], (mid, 2), jnp.float32) * 0.3
    b1 = jax.random.normal(ks[6], (mid,), jnp.float32) * 0.1
    w2 = jax.random.normal(ks[7], (C_gp, mid), jnp.float32) * 0.3
    b2 = jax.random.normal(ks[8], (C_gp,), jnp.float32) * 0.1
    wf = jax.random.normal(ks[9], (channels, channels), jnp.float32) * 0.3
    bf = jax.random.normal(ks[10], (channels,), jnp.float32) * 0.1

    out = local_relational_forward(x, wk, bk, wq, bq, w1, b1, w2, b2, wf, bf,
                                   k=k, stride=stride, padding=padding, m=m)
    out = jax.block_until_ready(out)

    ref = local_relational_reference(
        x, (wk, bk, wq, bq, w1, b1, w2, b2, wf, bf),
        k=k, stride=stride, padding=padding, m=m)

    h_out = (H + 2 * padding - (k - 1) - 1) // stride + 1
    w_out = (W + 2 * padding - (k - 1) - 1) // stride + 1
    assert out.shape == (1, channels, h_out, w_out), out.shape
    err = float(jnp.max(jnp.abs(out - ref)))
    assert jnp.allclose(out, ref, atol=1e-4, rtol=1e-4), f"max|diff|={err}"
    print("KERNEL_OK")
</pallas_src>

<mosaic_0001>
module attributes {stable_mosaic.version = 11 : i64} {
  func.func @_lrl_kernel(%arg0: memref<12x9x110xf32, #tpu.memory_space<vmem>>, %arg1: memref<9x110xf32, #tpu.memory_space<vmem>>, %arg2: memref<4x12xf32, #tpu.memory_space<smem>>, %arg3: memref<4xf32, #tpu.memory_space<smem>>, %arg4: memref<4x12xf32, #tpu.memory_space<smem>>, %arg5: memref<4xf32, #tpu.memory_space<smem>>, %arg6: memref<2x2xf32, #tpu.memory_space<smem>>, %arg7: memref<2xf32, #tpu.memory_space<smem>>, %arg8: memref<4x2xf32, #tpu.memory_space<smem>>, %arg9: memref<4xf32, #tpu.memory_space<smem>>, %arg10: memref<12x12xf32, #tpu.memory_space<smem>>, %arg11: memref<12xf32, #tpu.memory_space<smem>>, %arg12: memref<12x110xf32, #tpu.memory_space<vmem>>) attributes {dimension_semantics = [], scalar_prefetch = 0 : i64, scratch_operands = 0 : i64, tpu.core_type = #tpu.core_type<tc>} {
    %c0 = arith.constant 0 : index
    %c0_0 = arith.constant 0 : index
    %c0_1 = arith.constant 0 : index
    %0 = vector.load %arg0[%c0, %c0_0, %c0_1] : memref<12x9x110xf32, #tpu.memory_space<vmem>>, vector<1x9x110xf32>
    %1 = vector.shape_cast %0 : vector<1x9x110xf32> to vector<9x110xf32>
    %c1 = arith.constant 1 : index
    %c0_2 = arith.constant 0 : index
    %c0_3 = arith.constant 0 : index
    %2 = vector.load %arg0[%c1, %c0_2, %c0_3] : memref<12x9x110xf32, #tpu.memory_space<vmem>>, vector<1x9x110xf32>
    %3 = vector.shape_cast %2 : vector<1x9x110xf32> to vector<9x110xf32>
    %c2 = arith.constant 2 : index
    %c0_4 = arith.constant 0 : index
    %c0_5 = arith.constant 0 : index
    %4 = vector.load %arg0[%c2, %c0_4, %c0_5] : memref<12x9x110xf32, #tpu.memory_space<vmem>>, vector<1x9x110xf32>
    %5 = vector.shape_cast %4 : vector<1x9x110xf32> to vector<9x110xf32>
    %c3 = arith.constant 3 : index
    %c0_6 = arith.constant 0 : index
    %c0_7 = arith.constant 0 : index
    %6 = vector.load %arg0[%c3, %c0_6, %c0_7] : memref<12x9x110xf32, #tpu.memory_space<vmem>>, vector<1x9x110xf32>
    %7 = vector.shape_cast %6 : vector<1x9x110xf32> to vector<9x110xf32>
    %c4 = arith.constant 4 : index
    %c0_8 = arith.constant 0 : index
    %c0_9 = arith.constant 0 : index
    %8 = vector.load %arg0[%c4, %c0_8, %c0_9] : memref<12x9x110xf32, #tpu.memory_space<vmem>>, vector<1x9x110xf32>
    %9 = vector.shape_cast %8 : vector<1x9x110xf32> to vector<9x110xf32>
    %c5 = arith.constant 5 : index
    %c0_10 = arith.constant 0 : index
    %c0_11 = arith.constant 0 : index
    %10 = vector.load %arg0[%c5, %c0_10, %c0_11] : memref<12x9x110xf32, #tpu.memory_space<vmem>>, vector<1x9x110xf32>
    %11 = vector.shape_cast %10 : vector<1x9x110xf32> to vector<9x110xf32>
    %c6 = arith.constant 6 : index
    %c0_12 = arith.constant 0 : index
    %c0_13 = arith.constant 0 : index
    %12 = vector.load %arg0[%c6, %c0_12, %c0_13] : memref<12x9x110xf32, #tpu.memory_space<vmem>>, vector<1x9x110xf32>
    %13 = vector.shape_cast %12 : vector<1x9x110xf32> to vector<9x110xf32>
    %c7 = arith.constant 7 : index
    %c0_14 = arith.constant 0 : index
    %c0_15 = arith.constant 0 : index
    %14 = vector.load %arg0[%c7, %c0_14, %c0_15] : memref<12x9x110xf32, #tpu.memory_space<vmem>>, vector<1x9x110xf32>
    %15 = vector.shape_cast %14 : vector<1x9x110xf32> to vector<9x110xf32>
    %c8 = arith.constant 8 : index
    %c0_16 = arith.constant 0 : index
    %c0_17 = arith.constant 0 : index
    %16 = vector.load %arg0[%c8, %c0_16, %c0_17] : memref<12x9x110xf32, #tpu.memory_space<vmem>>, vector<1x9x110xf32>
    %17 = vector.shape_cast %16 : vector<1x9x110xf32> to vector<9x110xf32>
    %c9 = arith.constant 9 : index
    %c0_18 = arith.constant 0 : index
    %c0_19 = arith.constant 0 : index
    %18 = vector.load %arg0[%c9, %c0_18, %c0_19] : memref<12x9x110xf32, #tpu.memory_space<vmem>>, vector<1x9x110xf32>
    %19 = vector.shape_cast %18 : vector<1x9x110xf32> to vector<9x110xf32>
    %c10 = arith.constant 10 : index
    %c0_20 = arith.constant 0 : index
    %c0_21 = arith.constant 0 : index
    %20 = vector.load %arg0[%c10, %c0_20, %c0_21] : memref<12x9x110xf32, #tpu.memory_space<vmem>>, vector<1x9x110xf32>
    %21 = vector.shape_cast %20 : vector<1x9x110xf32> to vector<9x110xf32>
    %c11 = arith.constant 11 : index
    %c0_22 = arith.constant 0 : index
    %c0_23 = arith.constant 0 : index
    %22 = vector.load %arg0[%c11, %c0_22, %c0_23] : memref<12x9x110xf32, #tpu.memory_space<vmem>>, vector<1x9x110xf32>
    %23 = vector.shape_cast %22 : vector<1x9x110xf32> to vector<9x110xf32>
    %c0_24 = arith.constant 0 : index
    %c0_25 = arith.constant 0 : index
    %24 = vector.load %arg1[%c0_24, %c0_25] : memref<9x110xf32, #tpu.memory_space<vmem>>, vector<9x110xf32>
    %25 = tpu.iota {dimensions = array<i32: 0>} : vector<9x1xi32>
    %c0_i32 = arith.constant 0 : i32
    %26 = vector.broadcast %c0_i32 : i32 to vector<9x1xi32>
    %c3_i32 = arith.constant 3 : i32
    %27 = vector.broadcast %c3_i32 : i32 to vector<9x1xi32>
    %28 = arith.cmpi sge, %25, %27 : vector<9x1xi32>
    %29 = arith.extui %28 : vector<9x1xi1> to vector<9x1xi32>
    %30 = arith.addi %26, %29 : vector<9x1xi32>
    %c6_i32 = arith.constant 6 : i32
    %31 = vector.broadcast %c6_i32 : i32 to vector<9x1xi32>
    %32 = arith.cmpi sge, %25, %31 : vector<9x1xi32>
    %33 = arith.extui %32 : vector<9x1xi1> to vector<9x1xi32>
    %34 = arith.addi %30, %33 : vector<9x1xi32>
    %c3_i32_26 = arith.constant 3 : i32
    %35 = vector.broadcast %c3_i32_26 : i32 to vector<9x1xi32>
    %36 = arith.muli %35, %34 : vector<9x1xi32>
    %37 = arith.subi %25, %36 : vector<9x1xi32>
    %c1_i32 = arith.constant 1 : i32
    %38 = vector.broadcast %c1_i32 : i32 to vector<9x1xi32>
    %39 = arith.subi %37, %38 : vector<9x1xi32>
    %40 = arith.sitofp %39 : vector<9x1xi32> to vector<9x1xf32>
    %c1_i32_27 = arith.constant 1 : i32
    %41 = vector.broadcast %c1_i32_27 : i32 to vector<9x1xi32>
    %42 = arith.subi %41, %34 : vector<9x1xi32>
    %43 = arith.sitofp %42 : vector<9x1xi32> to vector<9x1xf32>
    %c0_28 = arith.constant 0 : index
    %c0_29 = arith.constant 0 : index
    %44 = memref.load %arg6[%c0_28, %c0_29] : memref<2x2xf32, #tpu.memory_space<smem>>
    %45 = vector.broadcast %44 : f32 to vector<9x1xf32>
    %46 = arith.mulf %40, %45 : vector<9x1xf32>
    %c0_30 = arith.constant 0 : index
    %c1_31 = arith.constant 1 : index
    %47 = memref.load %arg6[%c0_30, %c1_31] : memref<2x2xf32, #tpu.memory_space<smem>>
    %48 = vector.broadcast %47 : f32 to vector<9x1xf32>
    %49 = arith.mulf %43, %48 : vector<9x1xf32>
    %50 = arith.addf %46, %49 : vector<9x1xf32>
    %c0_32 = arith.constant 0 : index
    %51 = memref.load %arg7[%c0_32] : memref<2xf32, #tpu.memory_space<smem>>
    %52 = vector.broadcast %51 : f32 to vector<9x1xf32>
    %53 = arith.addf %50, %52 : vector<9x1xf32>
    %cst = arith.constant 0.000000e+00 : f32
    %54 = vector.broadcast %cst : f32 to vector<9x1xf32>
    %55 = arith.maximumf %53, %54 : vector<9x1xf32>
    %c1_33 = arith.constant 1 : index
    %c0_34 = arith.constant 0 : index
    %56 = memref.load %arg6[%c1_33, %c0_34] : memref<2x2xf32, #tpu.memory_space<smem>>
    %57 = vector.broadcast %56 : f32 to vector<9x1xf32>
    %58 = arith.mulf %40, %57 : vector<9x1xf32>
    %c1_35 = arith.constant 1 : index
    %c1_36 = arith.constant 1 : index
    %59 = memref.load %arg6[%c1_35, %c1_36] : memref<2x2xf32, #tpu.memory_space<smem>>
    %60 = vector.broadcast %59 : f32 to vector<9x1xf32>
    %61 = arith.mulf %43, %60 : vector<9x1xf32>
    %62 = arith.addf %58, %61 : vector<9x1xf32>
    %c1_37 = arith.constant 1 : index
    %63 = memref.load %arg7[%c1_37] : memref<2xf32, #tpu.memory_space<smem>>
    %64 = vector.broadcast %63 : f32 to vector<9x1xf32>
    %65 = arith.addf %62, %64 : vector<9x1xf32>
    %cst_38 = arith.constant 0.000000e+00 : f32
    %66 = vector.broadcast %cst_38 : f32 to vector<9x1xf32>
    %67 = arith.maximumf %65, %66 : vector<9x1xf32>
    %c0_39 = arith.constant 0 : index
    %c0_40 = arith.constant 0 : index
    %68 = memref.load %arg8[%c0_39, %c0_40] : memref<4x2xf32, #tpu.memory_space<smem>>
    %69 = vector.broadcast %68 : f32 to vector<9x1xf32>
    %70 = arith.mulf %55, %69 : vector<9x1xf32>
    %c0_41 = arith.constant 0 : index
    %c1_42 = arith.constant 1 : index
    %71 = memref.load %arg8[%c0_41, %c1_42] : memref<4x2xf32, #tpu.memory_space<smem>>
    %72 = vector.broadcast %71 : f32 to vector<9x1xf32>
    %73 = arith.mulf %67, %72 : vector<9x1xf32>
    %74 = arith.addf %70, %73 : vector<9x1xf32>
    %c0_43 = arith.constant 0 : index
    %75 = memref.load %arg9[%c0_43] : memref<4xf32, #tpu.memory_space<smem>>
    %76 = vector.broadcast %75 : f32 to vector<9x1xf32>
    %77 = arith.addf %74, %76 : vector<9x1xf32>
    %c1_44 = arith.constant 1 : index
    %c0_45 = arith.constant 0 : index
    %78 = memref.load %arg8[%c1_44, %c0_45] : memref<4x2xf32, #tpu.memory_space<smem>>
    %79 = vector.broadcast %78 : f32 to vector<9x1xf32>
    %80 = arith.mulf %55, %79 : vector<9x1xf32>
    %c1_46 = arith.constant 1 : index
    %c1_47 = arith.constant 1 : index
    %81 = memref.load %arg8[%c1_46, %c1_47] : memref<4x2xf32, #tpu.memory_space<smem>>
    %82 = vector.broadcast %81 : f32 to vector<9x1xf32>
    %83 = arith.mulf %67, %82 : vector<9x1xf32>
    %84 = arith.addf %80, %83 : vector<9x1xf32>
    %c1_48 = arith.constant 1 : index
    %85 = memref.load %arg9[%c1_48] : memref<4xf32, #tpu.memory_space<smem>>
    %86 = vector.broadcast %85 : f32 to vector<9x1xf32>
    %87 = arith.addf %84, %86 : vector<9x1xf32>
    %c2_49 = arith.constant 2 : index
    %c0_50 = arith.constant 0 : index
    %88 = memref.load %arg8[%c2_49, %c0_50] : memref<4x2xf32, #tpu.memory_space<smem>>
    %89 = vector.broadcast %88 : f32 to vector<9x1xf32>
    %90 = arith.mulf %55, %89 : vector<9x1xf32>
    %c2_51 = arith.constant 2 : index
    %c1_52 = arith.constant 1 : index
    %91 = memref.load %arg8[%c2_51, %c1_52] : memref<4x2xf32, #tpu.memory_space<smem>>
    %92 = vector.broadcast %91 : f32 to vector<9x1xf32>
    %93 = arith.mulf %67, %92 : vector<9x1xf32>
    %94 = arith.addf %90, %93 : vector<9x1xf32>
    %c2_53 = arith.constant 2 : index
    %95 = memref.load %arg9[%c2_53] : memref<4xf32, #tpu.memory_space<smem>>
    %96 = vector.broadcast %95 : f32 to vector<9x1xf32>
    %97 = arith.addf %94, %96 : vector<9x1xf32>
    %c3_54 = arith.constant 3 : index
    %c0_55 = arith.constant 0 : index
    %98 = memref.load %arg8[%c3_54, %c0_55] : memref<4x2xf32, #tpu.memory_space<smem>>
    %99 = vector.broadcast %98 : f32 to vector<9x1xf32>
    %100 = arith.mulf %55, %99 : vector<9x1xf32>
    %c3_56 = arith.constant 3 : index
    %c1_57 = arith.constant 1 : index
    %101 = memref.load %arg8[%c3_56, %c1_57] : memref<4x2xf32, #tpu.memory_space<smem>>
    %102 = vector.broadcast %101 : f32 to vector<9x1xf32>
    %103 = arith.mulf %67, %102 : vector<9x1xf32>
    %104 = arith.addf %100, %103 : vector<9x1xf32>
    %c3_58 = arith.constant 3 : index
    %105 = memref.load %arg9[%c3_58] : memref<4xf32, #tpu.memory_space<smem>>
    %106 = vector.broadcast %105 : f32 to vector<9x1xf32>
    %107 = arith.addf %104, %106 : vector<9x1xf32>
    %c0_59 = arith.constant 0 : index
    %c0_60 = arith.constant 0 : index
    %108 = memref.load %arg2[%c0_59, %c0_60] : memref<4x12xf32, #tpu.memory_space<smem>>
    %109 = vector.broadcast %108 : f32 to vector<9x110xf32>
    %110 = arith.mulf %1, %109 : vector<9x110xf32>
    %c0_61 = arith.constant 0 : index
    %c0_62 = arith.constant 0 : index
    %111 = memref.load %arg4[%c0_61, %c0_62] : memref<4x12xf32, #tpu.memory_space<smem>>
    %112 = vector.broadcast %111 : f32 to vector<9x110xf32>
    %113 = arith.mulf %1, %112 : vector<9x110xf32>
    %c0_63 = arith.constant 0 : index
    %c1_64 = arith.constant 1 : index
    %114 = memref.load %arg2[%c0_63, %c1_64] : memref<4x12xf32, #tpu.memory_space<smem>>
    %115 = vector.broadcast %114 : f32 to vector<9x110xf32>
    %116 = arith.mulf %3, %115 : vector<9x110xf32>
    %117 = arith.addf %110, %116 : vector<9x110xf32>
    %c0_65 = arith.constant 0 : index
    %c1_66 = arith.constant 1 : index
    %118 = memref.load %arg4[%c0_65, %c1_66] : memref<4x12xf32, #tpu.memory_space<smem>>
    %119 = vector.broadcast %118 : f32 to vector<9x110xf32>
    %120 = arith.mulf %3, %119 : vector<9x110xf32>
    %121 = arith.addf %113, %120 : vector<9x110xf32>
    %c0_67 = arith.constant 0 : index
    %c2_68 = arith.constant 2 : index
    %122 = memref.load %arg2[%c0_67, %c2_68] : memref<4x12xf32, #tpu.memory_space<smem>>
    %123 = vector.broadcast %122 : f32 to vector<9x110xf32>
    %124 = arith.mulf %5, %123 : vector<9x110xf32>
    %125 = arith.addf %117, %124 : vector<9x110xf32>
    %c0_69 = arith.constant 0 : index
    %c2_70 = arith.constant 2 : index
    %126 = memref.load %arg4[%c0_69, %c2_70] : memref<4x12xf32, #tpu.memory_space<smem>>
    %127 = vector.broadcast %126 : f32 to vector<9x110xf32>
    %128 = arith.mulf %5, %127 : vector<9x110xf32>
    %129 = arith.addf %121, %128 : vector<9x110xf32>
    %c0_71 = arith.constant 0 : index
    %c3_72 = arith.constant 3 : index
    %130 = memref.load %arg2[%c0_71, %c3_72] : memref<4x12xf32, #tpu.memory_space<smem>>
    %131 = vector.broadcast %130 : f32 to vector<9x110xf32>
    %132 = arith.mulf %7, %131 : vector<9x110xf32>
    %133 = arith.addf %125, %132 : vector<9x110xf32>
    %c0_73 = arith.constant 0 : index
    %c3_74 = arith.constant 3 : index
    %134 = memref.load %arg4[%c0_73, %c3_74] : memref<4x12xf32, #tpu.memory_space<smem>>
    %135 = vector.broadcast %134 : f32 to vector<9x110xf32>
    %136 = arith.mulf %7, %135 : vector<9x110xf32>
    %137 = arith.addf %129, %136 : vector<9x110xf32>
    %c0_75 = arith.constant 0 : index
    %c4_76 = arith.constant 4 : index
    %138 = memref.load %arg2[%c0_75, %c4_76] : memref<4x12xf32, #tpu.memory_space<smem>>
    %139 = vector.broadcast %138 : f32 to vector<9x110xf32>
    %140 = arith.mulf %9, %139 : vector<9x110xf32>
    %141 = arith.addf %133, %140 : vector<9x110xf32>
    %c0_77 = arith.constant 0 : index
    %c4_78 = arith.constant 4 : index
    %142 = memref.load %arg4[%c0_77, %c4_78] : memref<4x12xf32, #tpu.memory_space<smem>>
    %143 = vector.broadcast %142 : f32 to vector<9x110xf32>
    %144 = arith.mulf %9, %143 : vector<9x110xf32>
    %145 = arith.addf %137, %144 : vector<9x110xf32>
    %c0_79 = arith.constant 0 : index
    %c5_80 = arith.constant 5 : index
    %146 = memref.load %arg2[%c0_79, %c5_80] : memref<4x12xf32, #tpu.memory_space<smem>>
    %147 = vector.broadcast %146 : f32 to vector<9x110xf32>
    %148 = arith.mulf %11, %147 : vector<9x110xf32>
    %149 = arith.addf %141, %148 : vector<9x110xf32>
    %c0_81 = arith.constant 0 : index
    %c5_82 = arith.constant 5 : index
    %150 = memref.load %arg4[%c0_81, %c5_82] : memref<4x12xf32, #tpu.memory_space<smem>>
    %151 = vector.broadcast %150 : f32 to vector<9x110xf32>
    %152 = arith.mulf %11, %151 : vector<9x110xf32>
    %153 = arith.addf %145, %152 : vector<9x110xf32>
    %c0_83 = arith.constant 0 : index
    %c6_84 = arith.constant 6 : index
    %154 = memref.load %arg2[%c0_83, %c6_84] : memref<4x12xf32, #tpu.memory_space<smem>>
    %155 = vector.broadcast %154 : f32 to vector<9x110xf32>
    %156 = arith.mulf %13, %155 : vector<9x110xf32>
    %157 = arith.addf %149, %156 : vector<9x110xf32>
    %c0_85 = arith.constant 0 : index
    %c6_86 = arith.constant 6 : index
    %158 = memref.load %arg4[%c0_85, %c6_86] : memref<4x12xf32, #tpu.memory_space<smem>>
    %159 = vector.broadcast %158 : f32 to vector<9x110xf32>
    %160 = arith.mulf %13, %159 : vector<9x110xf32>
    %161 = arith.addf %153, %160 : vector<9x110xf32>
    %c0_87 = arith.constant 0 : index
    %c7_88 = arith.constant 7 : index
    %162 = memref.load %arg2[%c0_87, %c7_88] : memref<4x12xf32, #tpu.memory_space<smem>>
    %163 = vector.broadcast %162 : f32 to vector<9x110xf32>
    %164 = arith.mulf %15, %163 : vector<9x110xf32>
    %165 = arith.addf %157, %164 : vector<9x110xf32>
    %c0_89 = arith.constant 0 : index
    %c7_90 = arith.constant 7 : index
    %166 = memref.load %arg4[%c0_89, %c7_90] : memref<4x12xf32, #tpu.memory_space<smem>>
    %167 = vector.broadcast %166 : f32 to vector<9x110xf32>
    %168 = arith.mulf %15, %167 : vector<9x110xf32>
    %169 = arith.addf %161, %168 : vector<9x110xf32>
    %c0_91 = arith.constant 0 : index
    %c8_92 = arith.constant 8 : index
    %170 = memref.load %arg2[%c0_91, %c8_92] : memref<4x12xf32, #tpu.memory_space<smem>>
    %171 = vector.broadcast %170 : f32 to vector<9x110xf32>
    %172 = arith.mulf %17, %171 : vector<9x110xf32>
    %173 = arith.addf %165, %172 : vector<9x110xf32>
    %c0_93 = arith.constant 0 : index
    %c8_94 = arith.constant 8 : index
    %174 = memref.load %arg4[%c0_93, %c8_94] : memref<4x12xf32, #tpu.memory_space<smem>>
    %175 = vector.broadcast %174 : f32 to vector<9x110xf32>
    %176 = arith.mulf %17, %175 : vector<9x110xf32>
    %177 = arith.addf %169, %176 : vector<9x110xf32>
    %c0_95 = arith.constant 0 : index
    %c9_96 = arith.constant 9 : index
    %178 = memref.load %arg2[%c0_95, %c9_96] : memref<4x12xf32, #tpu.memory_space<smem>>
    %179 = vector.broadcast %178 : f32 to vector<9x110xf32>
    %180 = arith.mulf %19, %179 : vector<9x110xf32>
    %181 = arith.addf %173, %180 : vector<9x110xf32>
    %c0_97 = arith.constant 0 : index
    %c9_98 = arith.constant 9 : index
    %182 = memref.load %arg4[%c0_97, %c9_98] : memref<4x12xf32, #tpu.memory_space<smem>>
    %183 = vector.broadcast %182 : f32 to vector<9x110xf32>
    %184 = arith.mulf %19, %183 : vector<9x110xf32>
    %185 = arith.addf %177, %184 : vector<9x110xf32>
    %c0_99 = arith.constant 0 : index
    %c10_100 = arith.constant 10 : index
    %186 = memref.load %arg2[%c0_99, %c10_100] : memref<4x12xf32, #tpu.memory_space<smem>>
    %187 = vector.broadcast %186 : f32 to vector<9x110xf32>
    %188 = arith.mulf %21, %187 : vector<9x110xf32>
    %189 = arith.addf %181, %188 : vector<9x110xf32>
    %c0_101 = arith.constant 0 : index
    %c10_102 = arith.constant 10 : index
    %190 = memref.load %arg4[%c0_101, %c10_102] : memref<4x12xf32, #tpu.memory_space<smem>>
    %191 = vector.broadcast %190 : f32 to vector<9x110xf32>
    %192 = arith.mulf %21, %191 : vector<9x110xf32>
    %193 = arith.addf %185, %192 : vector<9x110xf32>
    %c0_103 = arith.constant 0 : index
    %c11_104 = arith.constant 11 : index
    %194 = memref.load %arg2[%c0_103, %c11_104] : memref<4x12xf32, #tpu.memory_space<smem>>
    %195 = vector.broadcast %194 : f32 to vector<9x110xf32>
    %196 = arith.mulf %23, %195 : vector<9x110xf32>
    %197 = arith.addf %189, %196 : vector<9x110xf32>
    %c0_105 = arith.constant 0 : index
    %c11_106 = arith.constant 11 : index
    %198 = memref.load %arg4[%c0_105, %c11_106] : memref<4x12xf32, #tpu.memory_space<smem>>
    %199 = vector.broadcast %198 : f32 to vector<9x110xf32>
    %200 = arith.mulf %23, %199 : vector<9x110xf32>
    %201 = arith.addf %193, %200 : vector<9x110xf32>
    %c0_107 = arith.constant 0 : index
    %202 = memref.load %arg3[%c0_107] : memref<4xf32, #tpu.memory_space<smem>>
    %203 = vector.broadcast %202 : f32 to vector<9x110xf32>
    %204 = arith.mulf %203, %24 : vector<9x110xf32>
    %205 = arith.addf %197, %204 : vector<9x110xf32>
    %c0_108 = arith.constant 0 : index
    %206 = memref.load %arg5[%c0_108] : memref<4xf32, #tpu.memory_space<smem>>
    %207 = vector.broadcast %206 : f32 to vector<9x110xf32>
    %208 = arith.mulf %207, %24 : vector<9x110xf32>
    %209 = arith.addf %201, %208 : vector<9x110xf32>
    %210 = vector.extract_strided_slice %209 {offsets = [4, 0], sizes = [1, 110], strides = [1, 1]} : vector<9x110xf32> to vector<1x110xf32>
    %211 = vector.broadcast %210 : vector<1x110xf32> to vector<9x110xf32>
    %212 = arith.mulf %205, %211 : vector<9x110xf32>
    %213 = vector.broadcast %77 : vector<9x1xf32> to vector<9x110xf32>
    %214 = arith.addf %212, %213 : vector<9x110xf32>
    %cst_109 = arith.constant dense<0xFF800000> : vector<110xf32>
    %215 = vector.multi_reduction <maximumf>, %214, %cst_109 [0] : vector<9x110xf32> to vector<110xf32>
    %216 = vector.shape_cast %215 : vector<110xf32> to vector<1x110xf32>
    %217 = vector.broadcast %216 : vector<1x110xf32> to vector<9x110xf32>
    %218 = arith.subf %214, %217 : vector<9x110xf32>
    %219 = math.exp %218 : vector<9x110xf32>
    %cst_110 = arith.constant dense<0.000000e+00> : vector<110xf32>
    %220 = vector.multi_reduction <add>, %219, %cst_110 [0] : vector<9x110xf32> to vector<110xf32>
    %221 = vector.shape_cast %220 : vector<110xf32> to vector<1x110xf32>
    %222 = vector.broadcast %221 : vector<1x110xf32> to vector<9x110xf32>
    %223 = arith.divf %219, %222 : vector<9x110xf32>
    %224 = arith.mulf %223, %1 : vector<9x110xf32>
    %cst_111 = arith.constant dense<0.000000e+00> : vector<110xf32>
    %225 = vector.multi_reduction <add>, %224, %cst_111 [0] : vector<9x110xf32> to vector<110xf32>
    %226 = vector.shape_cast %225 : vector<110xf32> to vector<1x110xf32>
    %227 = arith.mulf %223, %9 : vector<9x110xf32>
    %cst_112 = arith.constant dense<0.000000e+00> : vector<110xf32>
    %228 = vector.multi_reduction <add>, %227, %cst_112 [0] : vector<9x110xf32> to vector<110xf32>
    %229 = vector.shape_cast %228 : vector<110xf32> to vector<1x110xf32>
    %230 = arith.mulf %223, %17 : vector<9x110xf32>
    %cst_113 = arith.constant dense<0.000000e+00> : vector<110xf32>
    %231 = vector.multi_reduction <add>, %230, %cst_113 [0] : vector<9x110xf32> to vector<110xf32>
    %232 = vector.shape_cast %231 : vector<110xf32> to vector<1x110xf32>
    %c1_114 = arith.constant 1 : index
    %c0_115 = arith.constant 0 : index
    %233 = memref.load %arg2[%c1_114, %c0_115] : memref<4x12xf32, #tpu.memory_space<smem>>
    %234 = vector.broadcast %233 : f32 to vector<9x110xf32>
    %235 = arith.mulf %1, %234 : vector<9x110xf32>
    %c1_116 = arith.constant 1 : index
    %c0_117 = arith.constant 0 : index
    %236 = memref.load %arg4[%c1_116, %c0_117] : memref<4x12xf32, #tpu.memory_space<smem>>
    %237 = vector.broadcast %236 : f32 to vector<9x110xf32>
    %238 = arith.mulf %1, %237 : vector<9x110xf32>
    %c1_118 = arith.constant 1 : index
    %c1_119 = arith.constant 1 : index
    %239 = memref.load %arg2[%c1_118, %c1_119] : memref<4x12xf32, #tpu.memory_space<smem>>
    %240 = vector.broadcast %239 : f32 to vector<9x110xf32>
    %241 = arith.mulf %3, %240 : vector<9x110xf32>
    %242 = arith.addf %235, %241 : vector<9x110xf32>
    %c1_120 = arith.constant 1 : index
    %c1_121 = arith.constant 1 : index
    %243 = memref.load %arg4[%c1_120, %c1_121] : memref<4x12xf32, #tpu.memory_space<smem>>
    %244 = vector.broadcast %243 : f32 to vector<9x110xf32>
    %245 = arith.mulf %3, %244 : vector<9x110xf32>
    %246 = arith.addf %238, %245 : vector<9x110xf32>
    %c1_122 = arith.constant 1 : index
    %c2_123 = arith.constant 2 : index
    %247 = memref.load %arg2[%c1_122, %c2_123] : memref<4x12xf32, #tpu.memory_space<smem>>
    %248 = vector.broadcast %247 : f32 to vector<9x110xf32>
    %249 = arith.mulf %5, %248 : vector<9x110xf32>
    %250 = arith.addf %242, %249 : vector<9x110xf32>
    %c1_124 = arith.constant 1 : index
    %c2_125 = arith.constant 2 : index
    %251 = memref.load %arg4[%c1_124, %c2_125] : memref<4x12xf32, #tpu.memory_space<smem>>
    %252 = vector.broadcast %251 : f32 to vector<9x110xf32>
    %253 = arith.mulf %5, %252 : vector<9x110xf32>
    %254 = arith.addf %246, %253 : vector<9x110xf32>
    %c1_126 = arith.constant 1 : index
    %c3_127 = arith.constant 3 : index
    %255 = memref.load %arg2[%c1_126, %c3_127] : memref<4x12xf32, #tpu.memory_space<smem>>
    %256 = vector.broadcast %255 : f32 to vector<9x110xf32>
    %257 = arith.mulf %7, %256 : vector<9x110xf32>
    %258 = arith.addf %250, %257 : vector<9x110xf32>
    %c1_128 = arith.constant 1 : index
    %c3_129 = arith.constant 3 : index
    %259 = memref.load %arg4[%c1_128, %c3_129] : memref<4x12xf32, #tpu.memory_space<smem>>
    %260 = vector.broadcast %259 : f32 to vector<9x110xf32>
    %261 = arith.mulf %7, %260 : vector<9x110xf32>
    %262 = arith.addf %254, %261 : vector<9x110xf32>
    %c1_130 = arith.constant 1 : index
    %c4_131 = arith.constant 4 : index
    %263 = memref.load %arg2[%c1_130, %c4_131] : memref<4x12xf32, #tpu.memory_space<smem>>
    %264 = vector.broadcast %263 : f32 to vector<9x110xf32>
    %265 = arith.mulf %9, %264 : vector<9x110xf32>
    %266 = arith.addf %258, %265 : vector<9x110xf32>
    %c1_132 = arith.constant 1 : index
    %c4_133 = arith.constant 4 : index
    %267 = memref.load %arg4[%c1_132, %c4_133] : memref<4x12xf32, #tpu.memory_space<smem>>
    %268 = vector.broadcast %267 : f32 to vector<9x110xf32>
    %269 = arith.mulf %9, %268 : vector<9x110xf32>
    %270 = arith.addf %262, %269 : vector<9x110xf32>
    %c1_134 = arith.constant 1 : index
    %c5_135 = arith.constant 5 : index
    %271 = memref.load %arg2[%c1_134, %c5_135] : memref<4x12xf32, #tpu.memory_space<smem>>
    %272 = vector.broadcast %271 : f32 to vector<9x110xf32>
    %273 = arith.mulf %11, %272 : vector<9x110xf32>
    %274 = arith.addf %266, %273 : vector<9x110xf32>
    %c1_136 = arith.constant 1 : index
    %c5_137 = arith.constant 5 : index
    %275 = memref.load %arg4[%c1_136, %c5_137] : memref<4x12xf32, #tpu.memory_space<smem>>
    %276 = vector.broadcast %275 : f32 to vector<9x110xf32>
    %277 = arith.mulf %11, %276 : vector<9x110xf32>
    %278 = arith.addf %270, %277 : vector<9x110xf32>
    %c1_138 = arith.constant 1 : index
    %c6_139 = arith.constant 6 : index
    %279 = memref.load %arg2[%c1_138, %c6_139] : memref<4x12xf32, #tpu.memory_space<smem>>
    %280 = vector.broadcast %279 : f32 to vector<9x110xf32>
    %281 = arith.mulf %13, %280 : vector<9x110xf32>
    %282 = arith.addf %274, %281 : vector<9x110xf32>
    %c1_140 = arith.constant 1 : index
    %c6_141 = arith.constant 6 : index
    %283 = memref.load %arg4[%c1_140, %c6_141] : memref<4x12xf32, #tpu.memory_space<smem>>
    %284 = vector.broadcast %283 : f32 to vector<9x110xf32>
    %285 = arith.mulf %13, %284 : vector<9x110xf32>
    %286 = arith.addf %278, %285 : vector<9x110xf32>
    %c1_142 = arith.constant 1 : index
    %c7_143 = arith.constant 7 : index
    %287 = memref.load %arg2[%c1_142, %c7_143] : memref<4x12xf32, #tpu.memory_space<smem>>
    %288 = vector.broadcast %287 : f32 to vector<9x110xf32>
    %289 = arith.mulf %15, %288 : vector<9x110xf32>
    %290 = arith.addf %282, %289 : vector<9x110xf32>
    %c1_144 = arith.constant 1 : index
    %c7_145 = arith.constant 7 : index
    %291 = memref.load %arg4[%c1_144, %c7_145] : memref<4x12xf32, #tpu.memory_space<smem>>
    %292 = vector.broadcast %291 : f32 to vector<9x110xf32>
    %293 = arith.mulf %15, %292 : vector<9x110xf32>
    %294 = arith.addf %286, %293 : vector<9x110xf32>
    %c1_146 = arith.constant 1 : index
    %c8_147 = arith.constant 8 : index
    %295 = memref.load %arg2[%c1_146, %c8_147] : memref<4x12xf32, #tpu.memory_space<smem>>
    %296 = vector.broadcast %295 : f32 to vector<9x110xf32>
    %297 = arith.mulf %17, %296 : vector<9x110xf32>
    %298 = arith.addf %290, %297 : vector<9x110xf32>
    %c1_148 = arith.constant 1 : index
    %c8_149 = arith.constant 8 : index
    %299 = memref.load %arg4[%c1_148, %c8_149] : memref<4x12xf32, #tpu.memory_space<smem>>
    %300 = vector.broadcast %299 : f32 to vector<9x110xf32>
    %301 = arith.mulf %17, %300 : vector<9x110xf32>
    %302 = arith.addf %294, %301 : vector<9x110xf32>
    %c1_150 = arith.constant 1 : index
    %c9_151 = arith.constant 9 : index
    %303 = memref.load %arg2[%c1_150, %c9_151] : memref<4x12xf32, #tpu.memory_space<smem>>
    %304 = vector.broadcast %303 : f32 to vector<9x110xf32>
    %305 = arith.mulf %19, %304 : vector<9x110xf32>
    %306 = arith.addf %298, %305 : vector<9x110xf32>
    %c1_152 = arith.constant 1 : index
    %c9_153 = arith.constant 9 : index
    %307 = memref.load %arg4[%c1_152, %c9_153] : memref<4x12xf32, #tpu.memory_space<smem>>
    %308 = vector.broadcast %307 : f32 to vector<9x110xf32>
    %309 = arith.mulf %19, %308 : vector<9x110xf32>
    %310 = arith.addf %302, %309 : vector<9x110xf32>
    %c1_154 = arith.constant 1 : index
    %c10_155 = arith.constant 10 : index
    %311 = memref.load %arg2[%c1_154, %c10_155] : memref<4x12xf32, #tpu.memory_space<smem>>
    %312 = vector.broadcast %311 : f32 to vector<9x110xf32>
    %313 = arith.mulf %21, %312 : vector<9x110xf32>
    %314 = arith.addf %306, %313 : vector<9x110xf32>
    %c1_156 = arith.constant 1 : index
    %c10_157 = arith.constant 10 : index
    %315 = memref.load %arg4[%c1_156, %c10_157] : memref<4x12xf32, #tpu.memory_space<smem>>
    %316 = vector.broadcast %315 : f32 to vector<9x110xf32>
    %317 = arith.mulf %21, %316 : vector<9x110xf32>
    %318 = arith.addf %310, %317 : vector<9x110xf32>
    %c1_158 = arith.constant 1 : index
    %c11_159 = arith.constant 11 : index
    %319 = memref.load %arg2[%c1_158, %c11_159] : memref<4x12xf32, #tpu.memory_space<smem>>
    %320 = vector.broadcast %319 : f32 to vector<9x110xf32>
    %321 = arith.mulf %23, %320 : vector<9x110xf32>
    %322 = arith.addf %314, %321 : vector<9x110xf32>
    %c1_160 = arith.constant 1 : index
    %c11_161 = arith.constant 11 : index
    %323 = memref.load %arg4[%c1_160, %c11_161] : memref<4x12xf32, #tpu.memory_space<smem>>
    %324 = vector.broadcast %323 : f32 to vector<9x110xf32>
    %325 = arith.mulf %23, %324 : vector<9x110xf32>
    %326 = arith.addf %318, %325 : vector<9x110xf32>
    %c1_162 = arith.constant 1 : index
    %327 = memref.load %arg3[%c1_162] : memref<4xf32, #tpu.memory_space<smem>>
    %328 = vector.broadcast %327 : f32 to vector<9x110xf32>
    %329 = arith.mulf %328, %24 : vector<9x110xf32>
    %330 = arith.addf %322, %329 : vector<9x110xf32>
    %c1_163 = arith.constant 1 : index
    %331 = memref.load %arg5[%c1_163] : memref<4xf32, #tpu.memory_space<smem>>
    %332 = vector.broadcast %331 : f32 to vector<9x110xf32>
    %333 = arith.mulf %332, %24 : vector<9x110xf32>
    %334 = arith.addf %326, %333 : vector<9x110xf32>
    %335 = vector.extract_strided_slice %334 {offsets = [4, 0], sizes = [1, 110], strides = [1, 1]} : vector<9x110xf32> to vector<1x110xf32>
    %336 = vector.broadcast %335 : vector<1x110xf32> to vector<9x110xf32>
    %337 = arith.mulf %330, %336 : vector<9x110xf32>
    %338 = vector.broadcast %87 : vector<9x1xf32> to vector<9x110xf32>
    %339 = arith.addf %337, %338 : vector<9x110xf32>
    %cst_164 = arith.constant dense<0xFF800000> : vector<110xf32>
    %340 = vector.multi_reduction <maximumf>, %339, %cst_164 [0] : vector<9x110xf32> to vector<110xf32>
    %341 = vector.shape_cast %340 : vector<110xf32> to vector<1x110xf32>
    %342 = vector.broadcast %341 : vector<1x110xf32> to vector<9x110xf32>
    %343 = arith.subf %339, %342 : vector<9x110xf32>
    %344 = math.exp %343 : vector<9x110xf32>
    %cst_165 = arith.constant dense<0.000000e+00> : vector<110xf32>
    %345 = vector.multi_reduction <add>, %344, %cst_165 [0] : vector<9x110xf32> to vector<110xf32>
    %346 = vector.shape_cast %345 : vector<110xf32> to vector<1x110xf32>
    %347 = vector.broadcast %346 : vector<1x110xf32> to vector<9x110xf32>
    %348 = arith.divf %344, %347 : vector<9x110xf32>
    %349 = arith.mulf %348, %3 : vector<9x110xf32>
    %cst_166 = arith.constant dense<0.000000e+00> : vector<110xf32>
    %350 = vector.multi_reduction <add>, %349, %cst_166 [0] : vector<9x110xf32> to vector<110xf32>
    %351 = vector.shape_cast %350 : vector<110xf32> to vector<1x110xf32>
    %352 = arith.mulf %348, %11 : vector<9x110xf32>
    %cst_167 = arith.constant dense<0.000000e+00> : vector<110xf32>
    %353 = vector.multi_reduction <add>, %352, %cst_167 [0] : vector<9x110xf32> to vector<110xf32>
    %354 = vector.shape_cast %353 : vector<110xf32> to vector<1x110xf32>
    %355 = arith.mulf %348, %19 : vector<9x110xf32>
    %cst_168 = arith.constant dense<0.000000e+00> : vector<110xf32>
    %356 = vector.multi_reduction <add>, %355, %cst_168 [0] : vector<9x110xf32> to vector<110xf32>
    %357 = vector.shape_cast %356 : vector<110xf32> to vector<1x110xf32>
    %c2_169 = arith.constant 2 : index
    %c0_170 = arith.constant 0 : index
    %358 = memref.load %arg2[%c2_169, %c0_170] : memref<4x12xf32, #tpu.memory_space<smem>>
    %359 = vector.broadcast %358 : f32 to vector<9x110xf32>
    %360 = arith.mulf %1, %359 : vector<9x110xf32>
    %c2_171 = arith.constant 2 : index
    %c0_172 = arith.constant 0 : index
    %361 = memref.load %arg4[%c2_171, %c0_172] : memref<4x12xf32, #tpu.memory_space<smem>>
    %362 = vector.broadcast %361 : f32 to vector<9x110xf32>
    %363 = arith.mulf %1, %362 : vector<9x110xf32>
    %c2_173 = arith.constant 2 : index
    %c1_174 = arith.constant 1 : index
    %364 = memref.load %arg2[%c2_173, %c1_174] : memref<4x12xf32, #tpu.memory_space<smem>>
    %365 = vector.broadcast %364 : f32 to vector<9x110xf32>
    %366 = arith.mulf %3, %365 : vector<9x110xf32>
    %367 = arith.addf %360, %366 : vector<9x110xf32>
    %c2_175 = arith.constant 2 : index
    %c1_176 = arith.constant 1 : index
    %368 = memref.load %arg4[%c2_175, %c1_176] : memref<4x12xf32, #tpu.memory_space<smem>>
    %369 = vector.broadcast %368 : f32 to vector<9x110xf32>
    %370 = arith.mulf %3, %369 : vector<9x110xf32>
    %371 = arith.addf %363, %370 : vector<9x110xf32>
    %c2_177 = arith.constant 2 : index
    %c2_178 = arith.constant 2 : index
    %372 = memref.load %arg2[%c2_177, %c2_178] : memref<4x12xf32, #tpu.memory_space<smem>>
    %373 = vector.broadcast %372 : f32 to vector<9x110xf32>
    %374 = arith.mulf %5, %373 : vector<9x110xf32>
    %375 = arith.addf %367, %374 : vector<9x110xf32>
    %c2_179 = arith.constant 2 : index
    %c2_180 = arith.constant 2 : index
    %376 = memref.load %arg4[%c2_179, %c2_180] : memref<4x12xf32, #tpu.memory_space<smem>>
    %377 = vector.broadcast %376 : f32 to vector<9x110xf32>
    %378 = arith.mulf %5, %377 : vector<9x110xf32>
    %379 = arith.addf %371, %378 : vector<9x110xf32>
    %c2_181 = arith.constant 2 : index
    %c3_182 = arith.constant 3 : index
    %380 = memref.load %arg2[%c2_181, %c3_182] : memref<4x12xf32, #tpu.memory_space<smem>>
    %381 = vector.broadcast %380 : f32 to vector<9x110xf32>
    %382 = arith.mulf %7, %381 : vector<9x110xf32>
    %383 = arith.addf %375, %382 : vector<9x110xf32>
    %c2_183 = arith.constant 2 : index
    %c3_184 = arith.constant 3 : index
    %384 = memref.load %arg4[%c2_183, %c3_184] : memref<4x12xf32, #tpu.memory_space<smem>>
    %385 = vector.broadcast %384 : f32 to vector<9x110xf32>
    %386 = arith.mulf %7, %385 : vector<9x110xf32>
    %387 = arith.addf %379, %386 : vector<9x110xf32>
    %c2_185 = arith.constant 2 : index
    %c4_186 = arith.constant 4 : index
    %388 = memref.load %arg2[%c2_185, %c4_186] : memref<4x12xf32, #tpu.memory_space<smem>>
    %389 = vector.broadcast %388 : f32 to vector<9x110xf32>
    %390 = arith.mulf %9, %389 : vector<9x110xf32>
    %391 = arith.addf %383, %390 : vector<9x110xf32>
    %c2_187 = arith.constant 2 : index
    %c4_188 = arith.constant 4 : index
    %392 = memref.load %arg4[%c2_187, %c4_188] : memref<4x12xf32, #tpu.memory_space<smem>>
    %393 = vector.broadcast %392 : f32 to vector<9x110xf32>
    %394 = arith.mulf %9, %393 : vector<9x110xf32>
    %395 = arith.addf %387, %394 : vector<9x110xf32>
    %c2_189 = arith.constant 2 : index
    %c5_190 = arith.constant 5 : index
    %396 = memref.load %arg2[%c2_189, %c5_190] : memref<4x12xf32, #tpu.memory_space<smem>>
    %397 = vector.broadcast %396 : f32 to vector<9x110xf32>
    %398 = arith.mulf %11, %397 : vector<9x110xf32>
    %399 = arith.addf %391, %398 : vector<9x110xf32>
    %c2_191 = arith.constant 2 : index
    %c5_192 = arith.constant 5 : index
    %400 = memref.load %arg4[%c2_191, %c5_192] : memref<4x12xf32, #tpu.memory_space<smem>>
    %401 = vector.broadcast %400 : f32 to vector<9x110xf32>
    %402 = arith.mulf %11, %401 : vector<9x110xf32>
    %403 = arith.addf %395, %402 : vector<9x110xf32>
    %c2_193 = arith.constant 2 : index
    %c6_194 = arith.constant 6 : index
    %404 = memref.load %arg2[%c2_193, %c6_194] : memref<4x12xf32, #tpu.memory_space<smem>>
    %405 = vector.broadcast %404 : f32 to vector<9x110xf32>
    %406 = arith.mulf %13, %405 : vector<9x110xf32>
    %407 = arith.addf %399, %406 : vector<9x110xf32>
    %c2_195 = arith.constant 2 : index
    %c6_196 = arith.constant 6 : index
    %408 = memref.load %arg4[%c2_195, %c6_196] : memref<4x12xf32, #tpu.memory_space<smem>>
    %409 = vector.broadcast %408 : f32 to vector<9x110xf32>
    %410 = arith.mulf %13, %409 : vector<9x110xf32>
    %411 = arith.addf %403, %410 : vector<9x110xf32>
    %c2_197 = arith.constant 2 : index
    %c7_198 = arith.constant 7 : index
    %412 = memref.load %arg2[%c2_197, %c7_198] : memref<4x12xf32, #tpu.memory_space<smem>>
    %413 = vector.broadcast %412 : f32 to vector<9x110xf32>
    %414 = arith.mulf %15, %413 : vector<9x110xf32>
    %415 = arith.addf %407, %414 : vector<9x110xf32>
    %c2_199 = arith.constant 2 : index
    %c7_200 = arith.constant 7 : index
    %416 = memref.load %arg4[%c2_199, %c7_200] : memref<4x12xf32, #tpu.memory_space<smem>>
    %417 = vector.broadcast %416 : f32 to vector<9x110xf32>
    %418 = arith.mulf %15, %417 : vector<9x110xf32>
    %419 = arith.addf %411, %418 : vector<9x110xf32>
    %c2_201 = arith.constant 2 : index
    %c8_202 = arith.constant 8 : index
    %420 = memref.load %arg2[%c2_201, %c8_202] : memref<4x12xf32, #tpu.memory_space<smem>>
    %421 = vector.broadcast %420 : f32 to vector<9x110xf32>
    %422 = arith.mulf %17, %421 : vector<9x110xf32>
    %423 = arith.addf %415, %422 : vector<9x110xf32>
    %c2_203 = arith.constant 2 : index
    %c8_204 = arith.constant 8 : index
    %424 = memref.load %arg4[%c2_203, %c8_204] : memref<4x12xf32, #tpu.memory_space<smem>>
    %425 = vector.broadcast %424 : f32 to vector<9x110xf32>
    %426 = arith.mulf %17, %425 : vector<9x110xf32>
    %427 = arith.addf %419, %426 : vector<9x110xf32>
    %c2_205 = arith.constant 2 : index
    %c9_206 = arith.constant 9 : index
    %428 = memref.load %arg2[%c2_205, %c9_206] : memref<4x12xf32, #tpu.memory_space<smem>>
    %429 = vector.broadcast %428 : f32 to vector<9x110xf32>
    %430 = arith.mulf %19, %429 : vector<9x110xf32>
    %431 = arith.addf %423, %430 : vector<9x110xf32>
    %c2_207 = arith.constant 2 : index
    %c9_208 = arith.constant 9 : index
    %432 = memref.load %arg4[%c2_207, %c9_208] : memref<4x12xf32, #tpu.memory_space<smem>>
    %433 = vector.broadcast %432 : f32 to vector<9x110xf32>
    %434 = arith.mulf %19, %433 : vector<9x110xf32>
    %435 = arith.addf %427, %434 : vector<9x110xf32>
    %c2_209 = arith.constant 2 : index
    %c10_210 = arith.constant 10 : index
    %436 = memref.load %arg2[%c2_209, %c10_210] : memref<4x12xf32, #tpu.memory_space<smem>>
    %437 = vector.broadcast %436 : f32 to vector<9x110xf32>
    %438 = arith.mulf %21, %437 : vector<9x110xf32>
    %439 = arith.addf %431, %438 : vector<9x110xf32>
    %c2_211 = arith.constant 2 : index
    %c10_212 = arith.constant 10 : index
    %440 = memref.load %arg4[%c2_211, %c10_212] : memref<4x12xf32, #tpu.memory_space<smem>>
    %441 = vector.broadcast %440 : f32 to vector<9x110xf32>
    %442 = arith.mulf %21, %441 : vector<9x110xf32>
    %443 = arith.addf %435, %442 : vector<9x110xf32>
    %c2_213 = arith.constant 2 : index
    %c11_214 = arith.constant 11 : index
    %444 = memref.load %arg2[%c2_213, %c11_214] : memref<4x12xf32, #tpu.memory_space<smem>>
    %445 = vector.broadcast %444 : f32 to vector<9x110xf32>
    %446 = arith.mulf %23, %445 : vector<9x110xf32>
    %447 = arith.addf %439, %446 : vector<9x110xf32>
    %c2_215 = arith.constant 2 : index
    %c11_216 = arith.constant 11 : index
    %448 = memref.load %arg4[%c2_215, %c11_216] : memref<4x12xf32, #tpu.memory_space<smem>>
    %449 = vector.broadcast %448 : f32 to vector<9x110xf32>
    %450 = arith.mulf %23, %449 : vector<9x110xf32>
    %451 = arith.addf %443, %450 : vector<9x110xf32>
    %c2_217 = arith.constant 2 : index
    %452 = memref.load %arg3[%c2_217] : memref<4xf32, #tpu.memory_space<smem>>
    %453 = vector.broadcast %452 : f32 to vector<9x110xf32>
    %454 = arith.mulf %453, %24 : vector<9x110xf32>
    %455 = arith.addf %447, %454 : vector<9x110xf32>
    %c2_218 = arith.constant 2 : index
    %456 = memref.load %arg5[%c2_218] : memref<4xf32, #tpu.memory_space<smem>>
    %457 = vector.broadcast %456 : f32 to vector<9x110xf32>
    %458 = arith.mulf %457, %24 : vector<9x110xf32>
    %459 = arith.addf %451, %458 : vector<9x110xf32>
    %460 = vector.extract_strided_slice %459 {offsets = [4, 0], sizes = [1, 110], strides = [1, 1]} : vector<9x110xf32> to vector<1x110xf32>
    %461 = vector.broadcast %460 : vector<1x110xf32> to vector<9x110xf32>
    %462 = arith.mulf %455, %461 : vector<9x110xf32>
    %463 = vector.broadcast %97 : vector<9x1xf32> to vector<9x110xf32>
    %464 = arith.addf %462, %463 : vector<9x110xf32>
    %cst_219 = arith.constant dense<0xFF800000> : vector<110xf32>
    %465 = vector.multi_reduction <maximumf>, %464, %cst_219 [0] : vector<9x110xf32> to vector<110xf32>
    %466 = vector.shape_cast %465 : vector<110xf32> to vector<1x110xf32>
    %467 = vector.broadcast %466 : vector<1x110xf32> to vector<9x110xf32>
    %468 = arith.subf %464, %467 : vector<9x110xf32>
    %469 = math.exp %468 : vector<9x110xf32>
    %cst_220 = arith.constant dense<0.000000e+00> : vector<110xf32>
    %470 = vector.multi_reduction <add>, %469, %cst_220 [0] : vector<9x110xf32> to vector<110xf32>
    %471 = vector.shape_cast %470 : vector<110xf32> to vector<1x110xf32>
    %472 = vector.broadcast %471 : vector<1x110xf32> to vector<9x110xf32>
    %473 = arith.divf %469, %472 : vector<9x110xf32>
    %474 = arith.mulf %473, %5 : vector<9x110xf32>
    %cst_221 = arith.constant dense<0.000000e+00> : vector<110xf32>
    %475 = vector.multi_reduction <add>, %474, %cst_221 [0] : vector<9x110xf32> to vector<110xf32>
    %476 = vector.shape_cast %475 : vector<110xf32> to vector<1x110xf32>
    %477 = arith.mulf %473, %13 : vector<9x110xf32>
    %cst_222 = arith.constant dense<0.000000e+00> : vector<110xf32>
    %478 = vector.multi_reduction <add>, %477, %cst_222 [0] : vector<9x110xf32> to vector<110xf32>
    %479 = vector.shape_cast %478 : vector<110xf32> to vector<1x110xf32>
    %480 = arith.mulf %473, %21 : vector<9x110xf32>
    %cst_223 = arith.constant dense<0.000000e+00> : vector<110xf32>
    %481 = vector.multi_reduction <add>, %480, %cst_223 [0] : vector<9x110xf32> to vector<110xf32>
    %482 = vector.shape_cast %481 : vector<110xf32> to vector<1x110xf32>
    %c3_224 = arith.constant 3 : index
    %c0_225 = arith.constant 0 : index
    %483 = memref.load %arg2[%c3_224, %c0_225] : memref<4x12xf32, #tpu.memory_space<smem>>
    %484 = vector.broadcast %483 : f32 to vector<9x110xf32>
    %485 = arith.mulf %1, %484 : vector<9x110xf32>
    %c3_226 = arith.constant 3 : index
    %c0_227 = arith.constant 0 : index
    %486 = memref.load %arg4[%c3_226, %c0_227] : memref<4x12xf32, #tpu.memory_space<smem>>
    %487 = vector.broadcast %486 : f32 to vector<9x110xf32>
    %488 = arith.mulf %1, %487 : vector<9x110xf32>
    %c3_228 = arith.constant 3 : index
    %c1_229 = arith.constant 1 : index
    %489 = memref.load %arg2[%c3_228, %c1_229] : memref<4x12xf32, #tpu.memory_space<smem>>
    %490 = vector.broadcast %489 : f32 to vector<9x110xf32>
    %491 = arith.mulf %3, %490 : vector<9x110xf32>
    %492 = arith.addf %485, %491 : vector<9x110xf32>
    %c3_230 = arith.constant 3 : index
    %c1_231 = arith.constant 1 : index
    %493 = memref.load %arg4[%c3_230, %c1_231] : memref<4x12xf32, #tpu.memory_space<smem>>
    %494 = vector.broadcast %493 : f32 to vector<9x110xf32>
    %495 = arith.mulf %3, %494 : vector<9x110xf32>
    %496 = arith.addf %488, %495 : vector<9x110xf32>
    %c3_232 = arith.constant 3 : index
    %c2_233 = arith.constant 2 : index
    %497 = memref.load %arg2[%c3_232, %c2_233] : memref<4x12xf32, #tpu.memory_space<smem>>
    %498 = vector.broadcast %497 : f32 to vector<9x110xf32>
    %499 = arith.mulf %5, %498 : vector<9x110xf32>
    %500 = arith.addf %492, %499 : vector<9x110xf32>
    %c3_234 = arith.constant 3 : index
    %c2_235 = arith.constant 2 : index
    %501 = memref.load %arg4[%c3_234, %c2_235] : memref<4x12xf32, #tpu.memory_space<smem>>
    %502 = vector.broadcast %501 : f32 to vector<9x110xf32>
    %503 = arith.mulf %5, %502 : vector<9x110xf32>
    %504 = arith.addf %496, %503 : vector<9x110xf32>
    %c3_236 = arith.constant 3 : index
    %c3_237 = arith.constant 3 : index
    %505 = memref.load %arg2[%c3_236, %c3_237] : memref<4x12xf32, #tpu.memory_space<smem>>
    %506 = vector.broadcast %505 : f32 to vector<9x110xf32>
    %507 = arith.mulf %7, %506 : vector<9x110xf32>
    %508 = arith.addf %500, %507 : vector<9x110xf32>
    %c3_238 = arith.constant 3 : index
    %c3_239 = arith.constant 3 : index
    %509 = memref.load %arg4[%c3_238, %c3_239] : memref<4x12xf32, #tpu.memory_space<smem>>
    %510 = vector.broadcast %509 : f32 to vector<9x110xf32>
    %511 = arith.mulf %7, %510 : vector<9x110xf32>
    %512 = arith.addf %504, %511 : vector<9x110xf32>
    %c3_240 = arith.constant 3 : index
    %c4_241 = arith.constant 4 : index
    %513 = memref.load %arg2[%c3_240, %c4_241] : memref<4x12xf32, #tpu.memory_space<smem>>
    %514 = vector.broadcast %513 : f32 to vector<9x110xf32>
    %515 = arith.mulf %9, %514 : vector<9x110xf32>
    %516 = arith.addf %508, %515 : vector<9x110xf32>
    %c3_242 = arith.constant 3 : index
    %c4_243 = arith.constant 4 : index
    %517 = memref.load %arg4[%c3_242, %c4_243] : memref<4x12xf32, #tpu.memory_space<smem>>
    %518 = vector.broadcast %517 : f32 to vector<9x110xf32>
    %519 = arith.mulf %9, %518 : vector<9x110xf32>
    %520 = arith.addf %512, %519 : vector<9x110xf32>
    %c3_244 = arith.constant 3 : index
    %c5_245 = arith.constant 5 : index
    %521 = memref.load %arg2[%c3_244, %c5_245] : memref<4x12xf32, #tpu.memory_space<smem>>
    %522 = vector.broadcast %521 : f32 to vector<9x110xf32>
    %523 = arith.mulf %11, %522 : vector<9x110xf32>
    %524 = arith.addf %516, %523 : vector<9x110xf32>
    %c3_246 = arith.constant 3 : index
    %c5_247 = arith.constant 5 : index
    %525 = memref.load %arg4[%c3_246, %c5_247] : memref<4x12xf32, #tpu.memory_space<smem>>
    %526 = vector.broadcast %525 : f32 to vector<9x110xf32>
    %527 = arith.mulf %11, %526 : vector<9x110xf32>
    %528 = arith.addf %520, %527 : vector<9x110xf32>
    %c3_248 = arith.constant 3 : index
    %c6_249 = arith.constant 6 : index
    %529 = memref.load %arg2[%c3_248, %c6_249] : memref<4x12xf32, #tpu.memory_space<smem>>
    %530 = vector.broadcast %529 : f32 to vector<9x110xf32>
    %531 = arith.mulf %13, %530 : vector<9x110xf32>
    %532 = arith.addf %524, %531 : vector<9x110xf32>
    %c3_250 = arith.constant 3 : index
    %c6_251 = arith.constant 6 : index
    %533 = memref.load %arg4[%c3_250, %c6_251] : memref<4x12xf32, #tpu.memory_space<smem>>
    %534 = vector.broadcast %533 : f32 to vector<9x110xf32>
    %535 = arith.mulf %13, %534 : vector<9x110xf32>
    %536 = arith.addf %528, %535 : vector<9x110xf32>
    %c3_252 = arith.constant 3 : index
    %c7_253 = arith.constant 7 : index
    %537 = memref.load %arg2[%c3_252, %c7_253] : memref<4x12xf32, #tpu.memory_space<smem>>
    %538 = vector.broadcast %537 : f32 to vector<9x110xf32>
    %539 = arith.mulf %15, %538 : vector<9x110xf32>
    %540 = arith.addf %532, %539 : vector<9x110xf32>
    %c3_254 = arith.constant 3 : index
    %c7_255 = arith.constant 7 : index
    %541 = memref.load %arg4[%c3_254, %c7_255] : memref<4x12xf32, #tpu.memory_space<smem>>
    %542 = vector.broadcast %541 : f32 to vector<9x110xf32>
    %543 = arith.mulf %15, %542 : vector<9x110xf32>
    %544 = arith.addf %536, %543 : vector<9x110xf32>
    %c3_256 = arith.constant 3 : index
    %c8_257 = arith.constant 8 : index
    %545 = memref.load %arg2[%c3_256, %c8_257] : memref<4x12xf32, #tpu.memory_space<smem>>
    %546 = vector.broadcast %545 : f32 to vector<9x110xf32>
    %547 = arith.mulf %17, %546 : vector<9x110xf32>
    %548 = arith.addf %540, %547 : vector<9x110xf32>
    %c3_258 = arith.constant 3 : index
    %c8_259 = arith.constant 8 : index
    %549 = memref.load %arg4[%c3_258, %c8_259] : memref<4x12xf32, #tpu.memory_space<smem>>
    %550 = vector.broadcast %549 : f32 to vector<9x110xf32>
    %551 = arith.mulf %17, %550 : vector<9x110xf32>
    %552 = arith.addf %544, %551 : vector<9x110xf32>
    %c3_260 = arith.constant 3 : index
    %c9_261 = arith.constant 9 : index
    %553 = memref.load %arg2[%c3_260, %c9_261] : memref<4x12xf32, #tpu.memory_space<smem>>
    %554 = vector.broadcast %553 : f32 to vector<9x110xf32>
    %555 = arith.mulf %19, %554 : vector<9x110xf32>
    %556 = arith.addf %548, %555 : vector<9x110xf32>
    %c3_262 = arith.constant 3 : index
    %c9_263 = arith.constant 9 : index
    %557 = memref.load %arg4[%c3_262, %c9_263] : memref<4x12xf32, #tpu.memory_space<smem>>
    %558 = vector.broadcast %557 : f32 to vector<9x110xf32>
    %559 = arith.mulf %19, %558 : vector<9x110xf32>
    %560 = arith.addf %552, %559 : vector<9x110xf32>
    %c3_264 = arith.constant 3 : index
    %c10_265 = arith.constant 10 : index
    %561 = memref.load %arg2[%c3_264, %c10_265] : memref<4x12xf32, #tpu.memory_space<smem>>
    %562 = vector.broadcast %561 : f32 to vector<9x110xf32>
    %563 = arith.mulf %21, %562 : vector<9x110xf32>
    %564 = arith.addf %556, %563 : vector<9x110xf32>
    %c3_266 = arith.constant 3 : index
    %c10_267 = arith.constant 10 : index
    %565 = memref.load %arg4[%c3_266, %c10_267] : memref<4x12xf32, #tpu.memory_space<smem>>
    %566 = vector.broadcast %565 : f32 to vector<9x110xf32>
    %567 = arith.mulf %21, %566 : vector<9x110xf32>
    %568 = arith.addf %560, %567 : vector<9x110xf32>
    %c3_268 = arith.constant 3 : index
    %c11_269 = arith.constant 11 : index
    %569 = memref.load %arg2[%c3_268, %c11_269] : memref<4x12xf32, #tpu.memory_space<smem>>
    %570 = vector.broadcast %569 : f32 to vector<9x110xf32>
    %571 = arith.mulf %23, %570 : vector<9x110xf32>
    %572 = arith.addf %564, %571 : vector<9x110xf32>
    %c3_270 = arith.constant 3 : index
    %c11_271 = arith.constant 11 : index
    %573 = memref.load %arg4[%c3_270, %c11_271] : memref<4x12xf32, #tpu.memory_space<smem>>
    %574 = vector.broadcast %573 : f32 to vector<9x110xf32>
    %575 = arith.mulf %23, %574 : vector<9x110xf32>
    %576 = arith.addf %568, %575 : vector<9x110xf32>
    %c3_272 = arith.constant 3 : index
    %577 = memref.load %arg3[%c3_272] : memref<4xf32, #tpu.memory_space<smem>>
    %578 = vector.broadcast %577 : f32 to vector<9x110xf32>
    %579 = arith.mulf %578, %24 : vector<9x110xf32>
    %580 = arith.addf %572, %579 : vector<9x110xf32>
    %c3_273 = arith.constant 3 : index
    %581 = memref.load %arg5[%c3_273] : memref<4xf32, #tpu.memory_space<smem>>
    %582 = vector.broadcast %581 : f32 to vector<9x110xf32>
    %583 = arith.mulf %582, %24 : vector<9x110xf32>
    %584 = arith.addf %576, %583 : vector<9x110xf32>
    %585 = vector.extract_strided_slice %584 {offsets = [4, 0], sizes = [1, 110], strides = [1, 1]} : vector<9x110xf32> to vector<1x110xf32>
    %586 = vector.broadcast %585 : vector<1x110xf32> to vector<9x110xf32>
    %587 = arith.mulf %580, %586 : vector<9x110xf32>
    %588 = vector.broadcast %107 : vector<9x1xf32> to vector<9x110xf32>
    %589 = arith.addf %587, %588 : vector<9x110xf32>
    %cst_274 = arith.constant dense<0xFF800000> : vector<110xf32>
    %590 = vector.multi_reduction <maximumf>, %589, %cst_274 [0] : vector<9x110xf32> to vector<110xf32>
    %591 = vector.shape_cast %590 : vector<110xf32> to vector<1x110xf32>
    %592 = vector.broadcast %591 : vector<1x110xf32> to vector<9x110xf32>
    %593 = arith.subf %589, %592 : vector<9x110xf32>
    %594 = math.exp %593 : vector<9x110xf32>
    %cst_275 = arith.constant dense<0.000000e+00> : vector<110xf32>
    %595 = vector.multi_reduction <add>, %594, %cst_275 [0] : vector<9x110xf32> to vector<110xf32>
    %596 = vector.shape_cast %595 : vector<110xf32> to vector<1x110xf32>
    %597 = vector.broadcast %596 : vector<1x110xf32> to vector<9x110xf32>
    %598 = arith.divf %594, %597 : vector<9x110xf32>
    %599 = arith.mulf %598, %7 : vector<9x110xf32>
    %cst_276 = arith.constant dense<0.000000e+00> : vector<110xf32>
    %600 = vector.multi_reduction <add>, %599, %cst_276 [0] : vector<9x110xf32> to vector<110xf32>
    %601 = vector.shape_cast %600 : vector<110xf32> to vector<1x110xf32>
    %602 = arith.mulf %598, %15 : vector<9x110xf32>
    %cst_277 = arith.constant dense<0.000000e+00> : vector<110xf32>
    %603 = vector.multi_reduction <add>, %602, %cst_277 [0] : vector<9x110xf32> to vector<110xf32>
    %604 = vector.shape_cast %603 : vector<110xf32> to vector<1x110xf32>
    %605 = arith.mulf %598, %23 : vector<9x110xf32>
    %cst_278 = arith.constant dense<0.000000e+00> : vector<110xf32>
    %606 = vector.multi_reduction <add>, %605, %cst_278 [0] : vector<9x110xf32> to vector<110xf32>
    %607 = vector.shape_cast %606 : vector<110xf32> to vector<1x110xf32>
    %c0_279 = arith.constant 0 : index
    %c0_280 = arith.constant 0 : index
    %608 = memref.load %arg10[%c0_279, %c0_280] : memref<12x12xf32, #tpu.memory_space<smem>>
    %609 = vector.broadcast %608 : f32 to vector<1x110xf32>
    %610 = arith.mulf %226, %609 : vector<1x110xf32>
    %c0_281 = arith.constant 0 : index
    %c1_282 = arith.constant 1 : index
    %611 = memref.load %arg10[%c0_281, %c1_282] : memref<12x12xf32, #tpu.memory_space<smem>>
    %612 = vector.broadcast %611 : f32 to vector<1x110xf32>
    %613 = arith.mulf %351, %612 : vector<1x110xf32>
    %614 = arith.addf %610, %613 : vector<1x110xf32>
    %c0_283 = arith.constant 0 : index
    %c2_284 = arith.constant 2 : index
    %615 = memref.load %arg10[%c0_283, %c2_284] : memref<12x12xf32, #tpu.memory_space<smem>>
    %616 = vector.broadcast %615 : f32 to vector<1x110xf32>
    %617 = arith.mulf %476, %616 : vector<1x110xf32>
    %618 = arith.addf %614, %617 : vector<1x110xf32>
    %c0_285 = arith.constant 0 : index
    %c3_286 = arith.constant 3 : index
    %619 = memref.load %arg10[%c0_285, %c3_286] : memref<12x12xf32, #tpu.memory_space<smem>>
    %620 = vector.broadcast %619 : f32 to vector<1x110xf32>
    %621 = arith.mulf %601, %620 : vector<1x110xf32>
    %622 = arith.addf %618, %621 : vector<1x110xf32>
    %c0_287 = arith.constant 0 : index
    %c4_288 = arith.constant 4 : index
    %623 = memref.load %arg10[%c0_287, %c4_288] : memref<12x12xf32, #tpu.memory_space<smem>>
    %624 = vector.broadcast %623 : f32 to vector<1x110xf32>
    %625 = arith.mulf %229, %624 : vector<1x110xf32>
    %626 = arith.addf %622, %625 : vector<1x110xf32>
    %c0_289 = arith.constant 0 : index
    %c5_290 = arith.constant 5 : index
    %627 = memref.load %arg10[%c0_289, %c5_290] : memref<12x12xf32, #tpu.memory_space<smem>>
    %628 = vector.broadcast %627 : f32 to vector<1x110xf32>
    %629 = arith.mulf %354, %628 : vector<1x110xf32>
    %630 = arith.addf %626, %629 : vector<1x110xf32>
    %c0_291 = arith.constant 0 : index
    %c6_292 = arith.constant 6 : index
    %631 = memref.load %arg10[%c0_291, %c6_292] : memref<12x12xf32, #tpu.memory_space<smem>>
    %632 = vector.broadcast %631 : f32 to vector<1x110xf32>
    %633 = arith.mulf %479, %632 : vector<1x110xf32>
    %634 = arith.addf %630, %633 : vector<1x110xf32>
    %c0_293 = arith.constant 0 : index
    %c7_294 = arith.constant 7 : index
    %635 = memref.load %arg10[%c0_293, %c7_294] : memref<12x12xf32, #tpu.memory_space<smem>>
    %636 = vector.broadcast %635 : f32 to vector<1x110xf32>
    %637 = arith.mulf %604, %636 : vector<1x110xf32>
    %638 = arith.addf %634, %637 : vector<1x110xf32>
    %c0_295 = arith.constant 0 : index
    %c8_296 = arith.constant 8 : index
    %639 = memref.load %arg10[%c0_295, %c8_296] : memref<12x12xf32, #tpu.memory_space<smem>>
    %640 = vector.broadcast %639 : f32 to vector<1x110xf32>
    %641 = arith.mulf %232, %640 : vector<1x110xf32>
    %642 = arith.addf %638, %641 : vector<1x110xf32>
    %c0_297 = arith.constant 0 : index
    %c9_298 = arith.constant 9 : index
    %643 = memref.load %arg10[%c0_297, %c9_298] : memref<12x12xf32, #tpu.memory_space<smem>>
    %644 = vector.broadcast %643 : f32 to vector<1x110xf32>
    %645 = arith.mulf %357, %644 : vector<1x110xf32>
    %646 = arith.addf %642, %645 : vector<1x110xf32>
    %c0_299 = arith.constant 0 : index
    %c10_300 = arith.constant 10 : index
    %647 = memref.load %arg10[%c0_299, %c10_300] : memref<12x12xf32, #tpu.memory_space<smem>>
    %648 = vector.broadcast %647 : f32 to vector<1x110xf32>
    %649 = arith.mulf %482, %648 : vector<1x110xf32>
    %650 = arith.addf %646, %649 : vector<1x110xf32>
    %c0_301 = arith.constant 0 : index
    %c11_302 = arith.constant 11 : index
    %651 = memref.load %arg10[%c0_301, %c11_302] : memref<12x12xf32, #tpu.memory_space<smem>>
    %652 = vector.broadcast %651 : f32 to vector<1x110xf32>
    %653 = arith.mulf %607, %652 : vector<1x110xf32>
    %654 = arith.addf %650, %653 : vector<1x110xf32>
    %c0_303 = arith.constant 0 : index
    %655 = memref.load %arg11[%c0_303] : memref<12xf32, #tpu.memory_space<smem>>
    %656 = vector.broadcast %655 : f32 to vector<1x110xf32>
    %657 = arith.addf %654, %656 : vector<1x110xf32>
    %c0_304 = arith.constant 0 : index
    %c0_305 = arith.constant 0 : index
    %658 = vector.load %arg12[%c0_304, %c0_305] : memref<12x110xf32, #tpu.memory_space<vmem>>, vector<1x110xf32>
    tpu.vector_store %arg12[%c0_304, %c0_305], %657 {strides = array<i32>} : memref<12x110xf32, #tpu.memory_space<vmem>>, vector<1x110xf32>,
    %c1_306 = arith.constant 1 : index
    %c0_307 = arith.constant 0 : index
    %659 = memref.load %arg10[%c1_306, %c0_307] : memref<12x12xf32, #tpu.memory_space<smem>>
    %660 = vector.broadcast %659 : f32 to vector<1x110xf32>
    %661 = arith.mulf %226, %660 : vector<1x110xf32>
    %c1_308 = arith.constant 1 : index
    %c1_309 = arith.constant 1 : index
    %662 = memref.load %arg10[%c1_308, %c1_309] : memref<12x12xf32, #tpu.memory_space<smem>>
    %663 = vector.broadcast %662 : f32 to vector<1x110xf32>
    %664 = arith.mulf %351, %663 : vector<1x110xf32>
    %665 = arith.addf %661, %664 : vector<1x110xf32>
    %c1_310 = arith.constant 1 : index
    %c2_311 = arith.constant 2 : index
    %666 = memref.load %arg10[%c1_310, %c2_311] : memref<12x12xf32, #tpu.memory_space<smem>>
    %667 = vector.broadcast %666 : f32 to vector<1x110xf32>
    %668 = arith.mulf %476, %667 : vector<1x110xf32>
    %669 = arith.addf %665, %668 : vector<1x110xf32>
    %c1_312 = arith.constant 1 : index
    %c3_313 = arith.constant 3 : index
    %670 = memref.load %arg10[%c1_312, %c3_313] : memref<12x12xf32, #tpu.memory_space<smem>>
    %671 = vector.broadcast %670 : f32 to vector<1x110xf32>
    %672 = arith.mulf %601, %671 : vector<1x110xf32>
    %673 = arith.addf %669, %672 : vector<1x110xf32>
    %c1_314 = arith.constant 1 : index
    %c4_315 = arith.constant 4 : index
    %674 = memref.load %arg10[%c1_314, %c4_315] : memref<12x12xf32, #tpu.memory_space<smem>>
    %675 = vector.broadcast %674 : f32 to vector<1x110xf32>
    %676 = arith.mulf %229, %675 : vector<1x110xf32>
    %677 = arith.addf %673, %676 : vector<1x110xf32>
    %c1_316 = arith.constant 1 : index
    %c5_317 = arith.constant 5 : index
    %678 = memref.load %arg10[%c1_316, %c5_317] : memref<12x12xf32, #tpu.memory_space<smem>>
    %679 = vector.broadcast %678 : f32 to vector<1x110xf32>
    %680 = arith.mulf %354, %679 : vector<1x110xf32>
    %681 = arith.addf %677, %680 : vector<1x110xf32>
    %c1_318 = arith.constant 1 : index
    %c6_319 = arith.constant 6 : index
    %682 = memref.load %arg10[%c1_318, %c6_319] : memref<12x12xf32, #tpu.memory_space<smem>>
    %683 = vector.broadcast %682 : f32 to vector<1x110xf32>
    %684 = arith.mulf %479, %683 : vector<1x110xf32>
    %685 = arith.addf %681, %684 : vector<1x110xf32>
    %c1_320 = arith.constant 1 : index
    %c7_321 = arith.constant 7 : index
    %686 = memref.load %arg10[%c1_320, %c7_321] : memref<12x12xf32, #tpu.memory_space<smem>>
    %687 = vector.broadcast %686 : f32 to vector<1x110xf32>
    %688 = arith.mulf %604, %687 : vector<1x110xf32>
    %689 = arith.addf %685, %688 : vector<1x110xf32>
    %c1_322 = arith.constant 1 : index
    %c8_323 = arith.constant 8 : index
    %690 = memref.load %arg10[%c1_322, %c8_323] : memref<12x12xf32, #tpu.memory_space<smem>>
    %691 = vector.broadcast %690 : f32 to vector<1x110xf32>
    %692 = arith.mulf %232, %691 : vector<1x110xf32>
    %693 = arith.addf %689, %692 : vector<1x110xf32>
    %c1_324 = arith.constant 1 : index
    %c9_325 = arith.constant 9 : index
    %694 = memref.load %arg10[%c1_324, %c9_325] : memref<12x12xf32, #tpu.memory_space<smem>>
    %695 = vector.broadcast %694 : f32 to vector<1x110xf32>
    %696 = arith.mulf %357, %695 : vector<1x110xf32>
    %697 = arith.addf %693, %696 : vector<1x110xf32>
    %c1_326 = arith.constant 1 : index
    %c10_327 = arith.constant 10 : index
    %698 = memref.load %arg10[%c1_326, %c10_327] : memref<12x12xf32, #tpu.memory_space<smem>>
    %699 = vector.broadcast %698 : f32 to vector<1x110xf32>
    %700 = arith.mulf %482, %699 : vector<1x110xf32>
    %701 = arith.addf %697, %700 : vector<1x110xf32>
    %c1_328 = arith.constant 1 : index
    %c11_329 = arith.constant 11 : index
    %702 = memref.load %arg10[%c1_328, %c11_329] : memref<12x12xf32, #tpu.memory_space<smem>>
    %703 = vector.broadcast %702 : f32 to vector<1x110xf32>
    %704 = arith.mulf %607, %703 : vector<1x110xf32>
    %705 = arith.addf %701, %704 : vector<1x110xf32>
    %c1_330 = arith.constant 1 : index
    %706 = memref.load %arg11[%c1_330] : memref<12xf32, #tpu.memory_space<smem>>
    %707 = vector.broadcast %706 : f32 to vector<1x110xf32>
    %708 = arith.addf %705, %707 : vector<1x110xf32>
    %c1_331 = arith.constant 1 : index
    %c0_332 = arith.constant 0 : index
    %709 = vector.load %arg12[%c1_331, %c0_332] : memref<12x110xf32, #tpu.memory_space<vmem>>, vector<1x110xf32>
    tpu.vector_store %arg12[%c1_331, %c0_332], %708 {strides = array<i32>} : memref<12x110xf32, #tpu.memory_space<vmem>>, vector<1x110xf32>,
    %c2_333 = arith.constant 2 : index
    %c0_334 = arith.constant 0 : index
    %710 = memref.load %arg10[%c2_333, %c0_334] : memref<12x12xf32, #tpu.memory_space<smem>>
    %711 = vector.broadcast %710 : f32 to vector<1x110xf32>
    %712 = arith.mulf %226, %711 : vector<1x110xf32>
    %c2_335 = arith.constant 2 : index
    %c1_336 = arith.constant 1 : index
    %713 = memref.load %arg10[%c2_335, %c1_336] : memref<12x12xf32, #tpu.memory_space<smem>>
    %714 = vector.broadcast %713 : f32 to vector<1x110xf32>
    %715 = arith.mulf %351, %714 : vector<1x110xf32>
    %716 = arith.addf %712, %715 : vector<1x110xf32>
    %c2_337 = arith.constant 2 : index
    %c2_338 = arith.constant 2 : index
    %717 = memref.load %arg10[%c2_337, %c2_338] : memref<12x12xf32, #tpu.memory_space<smem>>
    %718 = vector.broadcast %717 : f32 to vector<1x110xf32>
    %719 = arith.mulf %476, %718 : vector<1x110xf32>
    %720 = arith.addf %716, %719 : vector<1x110xf32>
    %c2_339 = arith.constant 2 : index
    %c3_340 = arith.constant 3 : index
    %721 = memref.load %arg10[%c2_339, %c3_340] : memref<12x12xf32, #tpu.memory_space<smem>>
    %722 = vector.broadcast %721 : f32 to vector<1x110xf32>
    %723 = arith.mulf %601, %722 : vector<1x110xf32>
    %724 = arith.addf %720, %723 : vector<1x110xf32>
    %c2_341 = arith.constant 2 : index
    %c4_342 = arith.constant 4 : index
    %725 = memref.load %arg10[%c2_341, %c4_342] : memref<12x12xf32, #tpu.memory_space<smem>>
    %726 = vector.broadcast %725 : f32 to vector<1x110xf32>
    %727 = arith.mulf %229, %726 : vector<1x110xf32>
    %728 = arith.addf %724, %727 : vector<1x110xf32>
    %c2_343 = arith.constant 2 : index
    %c5_344 = arith.constant 5 : index
    %729 = memref.load %arg10[%c2_343, %c5_344] : memref<12x12xf32, #tpu.memory_space<smem>>
    %730 = vector.broadcast %729 : f32 to vector<1x110xf32>
    %731 = arith.mulf %354, %730 : vector<1x110xf32>
    %732 = arith.addf %728, %731 : vector<1x110xf32>
    %c2_345 = arith.constant 2 : index
    %c6_346 = arith.constant 6 : index
    %733 = memref.load %arg10[%c2_345, %c6_346] : memref<12x12xf32, #tpu.memory_space<smem>>
    %734 = vector.broadcast %733 : f32 to vector<1x110xf32>
    %735 = arith.mulf %479, %734 : vector<1x110xf32>
    %736 = arith.addf %732, %735 : vector<1x110xf32>
    %c2_347 = arith.constant 2 : index
    %c7_348 = arith.constant 7 : index
    %737 = memref.load %arg10[%c2_347, %c7_348] : memref<12x12xf32, #tpu.memory_space<smem>>
    %738 = vector.broadcast %737 : f32 to vector<1x110xf32>
    %739 = arith.mulf %604, %738 : vector<1x110xf32>
    %740 = arith.addf %736, %739 : vector<1x110xf32>
    %c2_349 = arith.constant 2 : index
    %c8_350 = arith.constant 8 : index
    %741 = memref.load %arg10[%c2_349, %c8_350] : memref<12x12xf32, #tpu.memory_space<smem>>
    %742 = vector.broadcast %741 : f32 to vector<1x110xf32>
    %743 = arith.mulf %232, %742 : vector<1x110xf32>
    %744 = arith.addf %740, %743 : vector<1x110xf32>
    %c2_351 = arith.constant 2 : index
    %c9_352 = arith.constant 9 : index
    %745 = memref.load %arg10[%c2_351, %c9_352] : memref<12x12xf32, #tpu.memory_space<smem>>
    %746 = vector.broadcast %745 : f32 to vector<1x110xf32>
    %747 = arith.mulf %357, %746 : vector<1x110xf32>
    %748 = arith.addf %744, %747 : vector<1x110xf32>
    %c2_353 = arith.constant 2 : index
    %c10_354 = arith.constant 10 : index
    %749 = memref.load %arg10[%c2_353, %c10_354] : memref<12x12xf32, #tpu.memory_space<smem>>
    %750 = vector.broadcast %749 : f32 to vector<1x110xf32>
    %751 = arith.mulf %482, %750 : vector<1x110xf32>
    %752 = arith.addf %748, %751 : vector<1x110xf32>
    %c2_355 = arith.constant 2 : index
    %c11_356 = arith.constant 11 : index
    %753 = memref.load %arg10[%c2_355, %c11_356] : memref<12x12xf32, #tpu.memory_space<smem>>
    %754 = vector.broadcast %753 : f32 to vector<1x110xf32>
    %755 = arith.mulf %607, %754 : vector<1x110xf32>
    %756 = arith.addf %752, %755 : vector<1x110xf32>
    %c2_357 = arith.constant 2 : index
    %757 = memref.load %arg11[%c2_357] : memref<12xf32, #tpu.memory_space<smem>>
    %758 = vector.broadcast %757 : f32 to vector<1x110xf32>
    %759 = arith.addf %756, %758 : vector<1x110xf32>
    %c2_358 = arith.constant 2 : index
    %c0_359 = arith.constant 0 : index
    %760 = vector.load %arg12[%c2_358, %c0_359] : memref<12x110xf32, #tpu.memory_space<vmem>>, vector<1x110xf32>
    tpu.vector_store %arg12[%c2_358, %c0_359], %759 {strides = array<i32>} : memref<12x110xf32, #tpu.memory_space<vmem>>, vector<1x110xf32>,
    %c3_360 = arith.constant 3 : index
    %c0_361 = arith.constant 0 : index
    %761 = memref.load %arg10[%c3_360, %c0_361] : memref<12x12xf32, #tpu.memory_space<smem>>
    %762 = vector.broadcast %761 : f32 to vector<1x110xf32>
    %763 = arith.mulf %226, %762 : vector<1x110xf32>
    %c3_362 = arith.constant 3 : index
    %c1_363 = arith.constant 1 : index
    %764 = memref.load %arg10[%c3_362, %c1_363] : memref<12x12xf32, #tpu.memory_space<smem>>
    %765 = vector.broadcast %764 : f32 to vector<1x110xf32>
    %766 = arith.mulf %351, %765 : vector<1x110xf32>
    %767 = arith.addf %763, %766 : vector<1x110xf32>
    %c3_364 = arith.constant 3 : index
    %c2_365 = arith.constant 2 : index
    %768 = memref.load %arg10[%c3_364, %c2_365] : memref<12x12xf32, #tpu.memory_space<smem>>
    %769 = vector.broadcast %768 : f32 to vector<1x110xf32>
    %770 = arith.mulf %476, %769 : vector<1x110xf32>
    %771 = arith.addf %767, %770 : vector<1x110xf32>
    %c3_366 = arith.constant 3 : index
    %c3_367 = arith.constant 3 : index
    %772 = memref.load %arg10[%c3_366, %c3_367] : memref<12x12xf32, #tpu.memory_space<smem>>
    %773 = vector.broadcast %772 : f32 to vector<1x110xf32>
    %774 = arith.mulf %601, %773 : vector<1x110xf32>
    %775 = arith.addf %771, %774 : vector<1x110xf32>
    %c3_368 = arith.constant 3 : index
    %c4_369 = arith.constant 4 : index
    %776 = memref.load %arg10[%c3_368, %c4_369] : memref<12x12xf32, #tpu.memory_space<smem>>
    %777 = vector.broadcast %776 : f32 to vector<1x110xf32>
    %778 = arith.mulf %229, %777 : vector<1x110xf32>
    %779 = arith.addf %775, %778 : vector<1x110xf32>
    %c3_370 = arith.constant 3 : index
    %c5_371 = arith.constant 5 : index
    %780 = memref.load %arg10[%c3_370, %c5_371] : memref<12x12xf32, #tpu.memory_space<smem>>
    %781 = vector.broadcast %780 : f32 to vector<1x110xf32>
    %782 = arith.mulf %354, %781 : vector<1x110xf32>
    %783 = arith.addf %779, %782 : vector<1x110xf32>
    %c3_372 = arith.constant 3 : index
    %c6_373 = arith.constant 6 : index
    %784 = memref.load %arg10[%c3_372, %c6_373] : memref<12x12xf32, #tpu.memory_space<smem>>
    %785 = vector.broadcast %784 : f32 to vector<1x110xf32>
    %786 = arith.mulf %479, %785 : vector<1x110xf32>
    %787 = arith.addf %783, %786 : vector<1x110xf32>
    %c3_374 = arith.constant 3 : index
    %c7_375 = arith.constant 7 : index
    %788 = memref.load %arg10[%c3_374, %c7_375] : memref<12x12xf32, #tpu.memory_space<smem>>
    %789 = vector.broadcast %788 : f32 to vector<1x110xf32>
    %790 = arith.mulf %604, %789 : vector<1x110xf32>
    %791 = arith.addf %787, %790 : vector<1x110xf32>
    %c3_376 = arith.constant 3 : index
    %c8_377 = arith.constant 8 : index
    %792 = memref.load %arg10[%c3_376, %c8_377] : memref<12x12xf32, #tpu.memory_space<smem>>
    %793 = vector.broadcast %792 : f32 to vector<1x110xf32>
    %794 = arith.mulf %232, %793 : vector<1x110xf32>
    %795 = arith.addf %791, %794 : vector<1x110xf32>
    %c3_378 = arith.constant 3 : index
    %c9_379 = arith.constant 9 : index
    %796 = memref.load %arg10[%c3_378, %c9_379] : memref<12x12xf32, #tpu.memory_space<smem>>
    %797 = vector.broadcast %796 : f32 to vector<1x110xf32>
    %798 = arith.mulf %357, %797 : vector<1x110xf32>
    %799 = arith.addf %795, %798 : vector<1x110xf32>
    %c3_380 = arith.constant 3 : index
    %c10_381 = arith.constant 10 : index
    %800 = memref.load %arg10[%c3_380, %c10_381] : memref<12x12xf32, #tpu.memory_space<smem>>
    %801 = vector.broadcast %800 : f32 to vector<1x110xf32>
    %802 = arith.mulf %482, %801 : vector<1x110xf32>
    %803 = arith.addf %799, %802 : vector<1x110xf32>
    %c3_382 = arith.constant 3 : index
    %c11_383 = arith.constant 11 : index
    %804 = memref.load %arg10[%c3_382, %c11_383] : memref<12x12xf32, #tpu.memory_space<smem>>
    %805 = vector.broadcast %804 : f32 to vector<1x110xf32>
    %806 = arith.mulf %607, %805 : vector<1x110xf32>
    %807 = arith.addf %803, %806 : vector<1x110xf32>
    %c3_384 = arith.constant 3 : index
    %808 = memref.load %arg11[%c3_384] : memref<12xf32, #tpu.memory_space<smem>>
    %809 = vector.broadcast %808 : f32 to vector<1x110xf32>
    %810 = arith.addf %807, %809 : vector<1x110xf32>
    %c3_385 = arith.constant 3 : index
    %c0_386 = arith.constant 0 : index
    %811 = vector.load %arg12[%c3_385, %c0_386] : memref<12x110xf32, #tpu.memory_space<vmem>>, vector<1x110xf32>
    tpu.vector_store %arg12[%c3_385, %c0_386], %810 {strides = array<i32>} : memref<12x110xf32, #tpu.memory_space<vmem>>, vector<1x110xf32>,
    %c4_387 = arith.constant 4 : index
    %c0_388 = arith.constant 0 : index
    %812 = memref.load %arg10[%c4_387, %c0_388] : memref<12x12xf32, #tpu.memory_space<smem>>
    %813 = vector.broadcast %812 : f32 to vector<1x110xf32>
    %814 = arith.mulf %226, %813 : vector<1x110xf32>
    %c4_389 = arith.constant 4 : index
    %c1_390 = arith.constant 1 : index
    %815 = memref.load %arg10[%c4_389, %c1_390] : memref<12x12xf32, #tpu.memory_space<smem>>
    %816 = vector.broadcast %815 : f32 to vector<1x110xf32>
    %817 = arith.mulf %351, %816 : vector<1x110xf32>
    %818 = arith.addf %814, %817 : vector<1x110xf32>
    %c4_391 = arith.constant 4 : index
    %c2_392 = arith.constant 2 : index
    %819 = memref.load %arg10[%c4_391, %c2_392] : memref<12x12xf32, #tpu.memory_space<smem>>
    %820 = vector.broadcast %819 : f32 to vector<1x110xf32>
    %821 = arith.mulf %476, %820 : vector<1x110xf32>
    %822 = arith.addf %818, %821 : vector<1x110xf32>
    %c4_393 = arith.constant 4 : index
    %c3_394 = arith.constant 3 : index
    %823 = memref.load %arg10[%c4_393, %c3_394] : memref<12x12xf32, #tpu.memory_space<smem>>
    %824 = vector.broadcast %823 : f32 to vector<1x110xf32>
    %825 = arith.mulf %601, %824 : vector<1x110xf32>
    %826 = arith.addf %822, %825 : vector<1x110xf32>
    %c4_395 = arith.constant 4 : index
    %c4_396 = arith.constant 4 : index
    %827 = memref.load %arg10[%c4_395, %c4_396] : memref<12x12xf32, #tpu.memory_space<smem>>
    %828 = vector.broadcast %827 : f32 to vector<1x110xf32>
    %829 = arith.mulf %229, %828 : vector<1x110xf32>
    %830 = arith.addf %826, %829 : vector<1x110xf32>
    %c4_397 = arith.constant 4 : index
    %c5_398 = arith.constant 5 : index
    %831 = memref.load %arg10[%c4_397, %c5_398] : memref<12x12xf32, #tpu.memory_space<smem>>
    %832 = vector.broadcast %831 : f32 to vector<1x110xf32>
    %833 = arith.mulf %354, %832 : vector<1x110xf32>
    %834 = arith.addf %830, %833 : vector<1x110xf32>
    %c4_399 = arith.constant 4 : index
    %c6_400 = arith.constant 6 : index
    %835 = memref.load %arg10[%c4_399, %c6_400] : memref<12x12xf32, #tpu.memory_space<smem>>
    %836 = vector.broadcast %835 : f32 to vector<1x110xf32>
    %837 = arith.mulf %479, %836 : vector<1x110xf32>
    %838 = arith.addf %834, %837 : vector<1x110xf32>
    %c4_401 = arith.constant 4 : index
    %c7_402 = arith.constant 7 : index
    %839 = memref.load %arg10[%c4_401, %c7_402] : memref<12x12xf32, #tpu.memory_space<smem>>
    %840 = vector.broadcast %839 : f32 to vector<1x110xf32>
    %841 = arith.mulf %604, %840 : vector<1x110xf32>
    %842 = arith.addf %838, %841 : vector<1x110xf32>
    %c4_403 = arith.constant 4 : index
    %c8_404 = arith.constant 8 : index
    %843 = memref.load %arg10[%c4_403, %c8_404] : memref<12x12xf32, #tpu.memory_space<smem>>
    %844 = vector.broadcast %843 : f32 to vector<1x110xf32>
    %845 = arith.mulf %232, %844 : vector<1x110xf32>
    %846 = arith.addf %842, %845 : vector<1x110xf32>
    %c4_405 = arith.constant 4 : index
    %c9_406 = arith.constant 9 : index
    %847 = memref.load %arg10[%c4_405, %c9_406] : memref<12x12xf32, #tpu.memory_space<smem>>
    %848 = vector.broadcast %847 : f32 to vector<1x110xf32>
    %849 = arith.mulf %357, %848 : vector<1x110xf32>
    %850 = arith.addf %846, %849 : vector<1x110xf32>
    %c4_407 = arith.constant 4 : index
    %c10_408 = arith.constant 10 : index
    %851 = memref.load %arg10[%c4_407, %c10_408] : memref<12x12xf32, #tpu.memory_space<smem>>
    %852 = vector.broadcast %851 : f32 to vector<1x110xf32>
    %853 = arith.mulf %482, %852 : vector<1x110xf32>
    %854 = arith.addf %850, %853 : vector<1x110xf32>
    %c4_409 = arith.constant 4 : index
    %c11_410 = arith.constant 11 : index
    %855 = memref.load %arg10[%c4_409, %c11_410] : memref<12x12xf32, #tpu.memory_space<smem>>
    %856 = vector.broadcast %855 : f32 to vector<1x110xf32>
    %857 = arith.mulf %607, %856 : vector<1x110xf32>
    %858 = arith.addf %854, %857 : vector<1x110xf32>
    %c4_411 = arith.constant 4 : index
    %859 = memref.load %arg11[%c4_411] : memref<12xf32, #tpu.memory_space<smem>>
    %860 = vector.broadcast %859 : f32 to vector<1x110xf32>
    %861 = arith.addf %858, %860 : vector<1x110xf32>
    %c4_412 = arith.constant 4 : index
    %c0_413 = arith.constant 0 : index
    %862 = vector.load %arg12[%c4_412, %c0_413] : memref<12x110xf32, #tpu.memory_space<vmem>>, vector<1x110xf32>
    tpu.vector_store %arg12[%c4_412, %c0_413], %861 {strides = array<i32>} : memref<12x110xf32, #tpu.memory_space<vmem>>, vector<1x110xf32>,
    %c5_414 = arith.constant 5 : index
    %c0_415 = arith.constant 0 : index
    %863 = memref.load %arg10[%c5_414, %c0_415] : memref<12x12xf32, #tpu.memory_space<smem>>
    %864 = vector.broadcast %863 : f32 to vector<1x110xf32>
    %865 = arith.mulf %226, %864 : vector<1x110xf32>
    %c5_416 = arith.constant 5 : index
    %c1_417 = arith.constant 1 : index
    %866 = memref.load %arg10[%c5_416, %c1_417] : memref<12x12xf32, #tpu.memory_space<smem>>
    %867 = vector.broadcast %866 : f32 to vector<1x110xf32>
    %868 = arith.mulf %351, %867 : vector<1x110xf32>
    %869 = arith.addf %865, %868 : vector<1x110xf32>
    %c5_418 = arith.constant 5 : index
    %c2_419 = arith.constant 2 : index
    %870 = memref.load %arg10[%c5_418, %c2_419] : memref<12x12xf32, #tpu.memory_space<smem>>
    %871 = vector.broadcast %870 : f32 to vector<1x110xf32>
    %872 = arith.mulf %476, %871 : vector<1x110xf32>
    %873 = arith.addf %869, %872 : vector<1x110xf32>
    %c5_420 = arith.constant 5 : index
    %c3_421 = arith.constant 3 : index
    %874 = memref.load %arg10[%c5_420, %c3_421] : memref<12x12xf32, #tpu.memory_space<smem>>
    %875 = vector.broadcast %874 : f32 to vector<1x110xf32>
    %876 = arith.mulf %601, %875 : vector<1x110xf32>
    %877 = arith.addf %873, %876 : vector<1x110xf32>
    %c5_422 = arith.constant 5 : index
    %c4_423 = arith.constant 4 : index
    %878 = memref.load %arg10[%c5_422, %c4_423] : memref<12x12xf32, #tpu.memory_space<smem>>
    %879 = vector.broadcast %878 : f32 to vector<1x110xf32>
    %880 = arith.mulf %229, %879 : vector<1x110xf32>
    %881 = arith.addf %877, %880 : vector<1x110xf32>
    %c5_424 = arith.constant 5 : index
    %c5_425 = arith.constant 5 : index
    %882 = memref.load %arg10[%c5_424, %c5_425] : memref<12x12xf32, #tpu.memory_space<smem>>
    %883 = vector.broadcast %882 : f32 to vector<1x110xf32>
    %884 = arith.mulf %354, %883 : vector<1x110xf32>
    %885 = arith.addf %881, %884 : vector<1x110xf32>
    %c5_426 = arith.constant 5 : index
    %c6_427 = arith.constant 6 : index
    %886 = memref.load %arg10[%c5_426, %c6_427] : memref<12x12xf32, #tpu.memory_space<smem>>
    %887 = vector.broadcast %886 : f32 to vector<1x110xf32>
    %888 = arith.mulf %479, %887 : vector<1x110xf32>
    %889 = arith.addf %885, %888 : vector<1x110xf32>
    %c5_428 = arith.constant 5 : index
    %c7_429 = arith.constant 7 : index
    %890 = memref.load %arg10[%c5_428, %c7_429] : memref<12x12xf32, #tpu.memory_space<smem>>
    %891 = vector.broadcast %890 : f32 to vector<1x110xf32>
    %892 = arith.mulf %604, %891 : vector<1x110xf32>
    %893 = arith.addf %889, %892 : vector<1x110xf32>
    %c5_430 = arith.constant 5 : index
    %c8_431 = arith.constant 8 : index
    %894 = memref.load %arg10[%c5_430, %c8_431] : memref<12x12xf32, #tpu.memory_space<smem>>
    %895 = vector.broadcast %894 : f32 to vector<1x110xf32>
    %896 = arith.mulf %232, %895 : vector<1x110xf32>
    %897 = arith.addf %893, %896 : vector<1x110xf32>
    %c5_432 = arith.constant 5 : index
    %c9_433 = arith.constant 9 : index
    %898 = memref.load %arg10[%c5_432, %c9_433] : memref<12x12xf32, #tpu.memory_space<smem>>
    %899 = vector.broadcast %898 : f32 to vector<1x110xf32>
    %900 = arith.mulf %357, %899 : vector<1x110xf32>
    %901 = arith.addf %897, %900 : vector<1x110xf32>
    %c5_434 = arith.constant 5 : index
    %c10_435 = arith.constant 10 : index
    %902 = memref.load %arg10[%c5_434, %c10_435] : memref<12x12xf32, #tpu.memory_space<smem>>
    %903 = vector.broadcast %902 : f32 to vector<1x110xf32>
    %904 = arith.mulf %482, %903 : vector<1x110xf32>
    %905 = arith.addf %901, %904 : vector<1x110xf32>
    %c5_436 = arith.constant 5 : index
    %c11_437 = arith.constant 11 : index
    %906 = memref.load %arg10[%c5_436, %c11_437] : memref<12x12xf32, #tpu.memory_space<smem>>
    %907 = vector.broadcast %906 : f32 to vector<1x110xf32>
    %908 = arith.mulf %607, %907 : vector<1x110xf32>
    %909 = arith.addf %905, %908 : vector<1x110xf32>
    %c5_438 = arith.constant 5 : index
    %910 = memref.load %arg11[%c5_438] : memref<12xf32, #tpu.memory_space<smem>>
    %911 = vector.broadcast %910 : f32 to vector<1x110xf32>
    %912 = arith.addf %909, %911 : vector<1x110xf32>
    %c5_439 = arith.constant 5 : index
    %c0_440 = arith.constant 0 : index
    %913 = vector.load %arg12[%c5_439, %c0_440] : memref<12x110xf32, #tpu.memory_space<vmem>>, vector<1x110xf32>
    tpu.vector_store %arg12[%c5_439, %c0_440], %912 {strides = array<i32>} : memref<12x110xf32, #tpu.memory_space<vmem>>, vector<1x110xf32>,
    %c6_441 = arith.constant 6 : index
    %c0_442 = arith.constant 0 : index
    %914 = memref.load %arg10[%c6_441, %c0_442] : memref<12x12xf32, #tpu.memory_space<smem>>
    %915 = vector.broadcast %914 : f32 to vector<1x110xf32>
    %916 = arith.mulf %226, %915 : vector<1x110xf32>
    %c6_443 = arith.constant 6 : index
    %c1_444 = arith.constant 1 : index
    %917 = memref.load %arg10[%c6_443, %c1_444] : memref<12x12xf32, #tpu.memory_space<smem>>
    %918 = vector.broadcast %917 : f32 to vector<1x110xf32>
    %919 = arith.mulf %351, %918 : vector<1x110xf32>
    %920 = arith.addf %916, %919 : vector<1x110xf32>
    %c6_445 = arith.constant 6 : index
    %c2_446 = arith.constant 2 : index
    %921 = memref.load %arg10[%c6_445, %c2_446] : memref<12x12xf32, #tpu.memory_space<smem>>
    %922 = vector.broadcast %921 : f32 to vector<1x110xf32>
    %923 = arith.mulf %476, %922 : vector<1x110xf32>
    %924 = arith.addf %920, %923 : vector<1x110xf32>
    %c6_447 = arith.constant 6 : index
    %c3_448 = arith.constant 3 : index
    %925 = memref.load %arg10[%c6_447, %c3_448] : memref<12x12xf32, #tpu.memory_space<smem>>
    %926 = vector.broadcast %925 : f32 to vector<1x110xf32>
    %927 = arith.mulf %601, %926 : vector<1x110xf32>
    %928 = arith.addf %924, %927 : vector<1x110xf32>
    %c6_449 = arith.constant 6 : index
    %c4_450 = arith.constant 4 : index
    %929 = memref.load %arg10[%c6_449, %c4_450] : memref<12x12xf32, #tpu.memory_space<smem>>
    %930 = vector.broadcast %929 : f32 to vector<1x110xf32>
    %931 = arith.mulf %229, %930 : vector<1x110xf32>
    %932 = arith.addf %928, %931 : vector<1x110xf32>
    %c6_451 = arith.constant 6 : index
    %c5_452 = arith.constant 5 : index
    %933 = memref.load %arg10[%c6_451, %c5_452] : memref<12x12xf32, #tpu.memory_space<smem>>
    %934 = vector.broadcast %933 : f32 to vector<1x110xf32>
    %935 = arith.mulf %354, %934 : vector<1x110xf32>
    %936 = arith.addf %932, %935 : vector<1x110xf32>
    %c6_453 = arith.constant 6 : index
    %c6_454 = arith.constant 6 : index
    %937 = memref.load %arg10[%c6_453, %c6_454] : memref<12x12xf32, #tpu.memory_space<smem>>
    %938 = vector.broadcast %937 : f32 to vector<1x110xf32>
    %939 = arith.mulf %479, %938 : vector<1x110xf32>
    %940 = arith.addf %936, %939 : vector<1x110xf32>
    %c6_455 = arith.constant 6 : index
    %c7_456 = arith.constant 7 : index
    %941 = memref.load %arg10[%c6_455, %c7_456] : memref<12x12xf32, #tpu.memory_space<smem>>
    %942 = vector.broadcast %941 : f32 to vector<1x110xf32>
    %943 = arith.mulf %604, %942 : vector<1x110xf32>
    %944 = arith.addf %940, %943 : vector<1x110xf32>
    %c6_457 = arith.constant 6 : index
    %c8_458 = arith.constant 8 : index
    %945 = memref.load %arg10[%c6_457, %c8_458] : memref<12x12xf32, #tpu.memory_space<smem>>
    %946 = vector.broadcast %945 : f32 to vector<1x110xf32>
    %947 = arith.mulf %232, %946 : vector<1x110xf32>
    %948 = arith.addf %944, %947 : vector<1x110xf32>
    %c6_459 = arith.constant 6 : index
    %c9_460 = arith.constant 9 : index
    %949 = memref.load %arg10[%c6_459, %c9_460] : memref<12x12xf32, #tpu.memory_space<smem>>
    %950 = vector.broadcast %949 : f32 to vector<1x110xf32>
    %951 = arith.mulf %357, %950 : vector<1x110xf32>
    %952 = arith.addf %948, %951 : vector<1x110xf32>
    %c6_461 = arith.constant 6 : index
    %c10_462 = arith.constant 10 : index
    %953 = memref.load %arg10[%c6_461, %c10_462] : memref<12x12xf32, #tpu.memory_space<smem>>
    %954 = vector.broadcast %953 : f32 to vector<1x110xf32>
    %955 = arith.mulf %482, %954 : vector<1x110xf32>
    %956 = arith.addf %952, %955 : vector<1x110xf32>
    %c6_463 = arith.constant 6 : index
    %c11_464 = arith.constant 11 : index
    %957 = memref.load %arg10[%c6_463, %c11_464] : memref<12x12xf32, #tpu.memory_space<smem>>
    %958 = vector.broadcast %957 : f32 to vector<1x110xf32>
    %959 = arith.mulf %607, %958 : vector<1x110xf32>
    %960 = arith.addf %956, %959 : vector<1x110xf32>
    %c6_465 = arith.constant 6 : index
    %961 = memref.load %arg11[%c6_465] : memref<12xf32, #tpu.memory_space<smem>>
    %962 = vector.broadcast %961 : f32 to vector<1x110xf32>
    %963 = arith.addf %960, %962 : vector<1x110xf32>
    %c6_466 = arith.constant 6 : index
    %c0_467 = arith.constant 0 : index
    %964 = vector.load %arg12[%c6_466, %c0_467] : memref<12x110xf32, #tpu.memory_space<vmem>>, vector<1x110xf32>
    tpu.vector_store %arg12[%c6_466, %c0_467], %963 {strides = array<i32>} : memref<12x110xf32, #tpu.memory_space<vmem>>, vector<1x110xf32>,
    %c7_468 = arith.constant 7 : index
    %c0_469 = arith.constant 0 : index
    %965 = memref.load %arg10[%c7_468, %c0_469] : memref<12x12xf32, #tpu.memory_space<smem>>
    %966 = vector.broadcast %965 : f32 to vector<1x110xf32>
    %967 = arith.mulf %226, %966 : vector<1x110xf32>
    %c7_470 = arith.constant 7 : index
    %c1_471 = arith.constant 1 : index
    %968 = memref.load %arg10[%c7_470, %c1_471] : memref<12x12xf32, #tpu.memory_space<smem>>
    %969 = vector.broadcast %968 : f32 to vector<1x110xf32>
    %970 = arith.mulf %351, %969 : vector<1x110xf32>
    %971 = arith.addf %967, %970 : vector<1x110xf32>
    %c7_472 = arith.constant 7 : index
    %c2_473 = arith.constant 2 : index
    %972 = memref.load %arg10[%c7_472, %c2_473] : memref<12x12xf32, #tpu.memory_space<smem>>
    %973 = vector.broadcast %972 : f32 to vector<1x110xf32>
    %974 = arith.mulf %476, %973 : vector<1x110xf32>
    %975 = arith.addf %971, %974 : vector<1x110xf32>
    %c7_474 = arith.constant 7 : index
    %c3_475 = arith.constant 3 : index
    %976 = memref.load %arg10[%c7_474, %c3_475] : memref<12x12xf32, #tpu.memory_space<smem>>
    %977 = vector.broadcast %976 : f32 to vector<1x110xf32>
    %978 = arith.mulf %601, %977 : vector<1x110xf32>
    %979 = arith.addf %975, %978 : vector<1x110xf32>
    %c7_476 = arith.constant 7 : index
    %c4_477 = arith.constant 4 : index
    %980 = memref.load %arg10[%c7_476, %c4_477] : memref<12x12xf32, #tpu.memory_space<smem>>
    %981 = vector.broadcast %980 : f32 to vector<1x110xf32>
    %982 = arith.mulf %229, %981 : vector<1x110xf32>
    %983 = arith.addf %979, %982 : vector<1x110xf32>
    %c7_478 = arith.constant 7 : index
    %c5_479 = arith.constant 5 : index
    %984 = memref.load %arg10[%c7_478, %c5_479] : memref<12x12xf32, #tpu.memory_space<smem>>
    %985 = vector.broadcast %984 : f32 to vector<1x110xf32>
    %986 = arith.mulf %354, %985 : vector<1x110xf32>
    %987 = arith.addf %983, %986 : vector<1x110xf32>
    %c7_480 = arith.constant 7 : index
    %c6_481 = arith.constant 6 : index
    %988 = memref.load %arg10[%c7_480, %c6_481] : memref<12x12xf32, #tpu.memory_space<smem>>
    %989 = vector.broadcast %988 : f32 to vector<1x110xf32>
    %990 = arith.mulf %479, %989 : vector<1x110xf32>
    %991 = arith.addf %987, %990 : vector<1x110xf32>
    %c7_482 = arith.constant 7 : index
    %c7_483 = arith.constant 7 : index
    %992 = memref.load %arg10[%c7_482, %c7_483] : memref<12x12xf32, #tpu.memory_space<smem>>
    %993 = vector.broadcast %992 : f32 to vector<1x110xf32>
    %994 = arith.mulf %604, %993 : vector<1x110xf32>
    %995 = arith.addf %991, %994 : vector<1x110xf32>
    %c7_484 = arith.constant 7 : index
    %c8_485 = arith.constant 8 : index
    %996 = memref.load %arg10[%c7_484, %c8_485] : memref<12x12xf32, #tpu.memory_space<smem>>
    %997 = vector.broadcast %996 : f32 to vector<1x110xf32>
    %998 = arith.mulf %232, %997 : vector<1x110xf32>
    %999 = arith.addf %995, %998 : vector<1x110xf32>
    %c7_486 = arith.constant 7 : index
    %c9_487 = arith.constant 9 : index
    %1000 = memref.load %arg10[%c7_486, %c9_487] : memref<12x12xf32, #tpu.memory_space<smem>>
    %1001 = vector.broadcast %1000 : f32 to vector<1x110xf32>
    %1002 = arith.mulf %357, %1001 : vector<1x110xf32>
    %1003 = arith.addf %999, %1002 : vector<1x110xf32>
    %c7_488 = arith.constant 7 : index
    %c10_489 = arith.constant 10 : index
    %1004 = memref.load %arg10[%c7_488, %c10_489] : memref<12x12xf32, #tpu.memory_space<smem>>
    %1005 = vector.broadcast %1004 : f32 to vector<1x110xf32>
    %1006 = arith.mulf %482, %1005 : vector<1x110xf32>
    %1007 = arith.addf %1003, %1006 : vector<1x110xf32>
    %c7_490 = arith.constant 7 : index
    %c11_491 = arith.constant 11 : index
    %1008 = memref.load %arg10[%c7_490, %c11_491] : memref<12x12xf32, #tpu.memory_space<smem>>
    %1009 = vector.broadcast %1008 : f32 to vector<1x110xf32>
    %1010 = arith.mulf %607, %1009 : vector<1x110xf32>
    %1011 = arith.addf %1007, %1010 : vector<1x110xf32>
    %c7_492 = arith.constant 7 : index
    %1012 = memref.load %arg11[%c7_492] : memref<12xf32, #tpu.memory_space<smem>>
    %1013 = vector.broadcast %1012 : f32 to vector<1x110xf32>
    %1014 = arith.addf %1011, %1013 : vector<1x110xf32>
    %c7_493 = arith.constant 7 : index
    %c0_494 = arith.constant 0 : index
    %1015 = vector.load %arg12[%c7_493, %c0_494] : memref<12x110xf32, #tpu.memory_space<vmem>>, vector<1x110xf32>
    tpu.vector_store %arg12[%c7_493, %c0_494], %1014 {strides = array<i32>} : memref<12x110xf32, #tpu.memory_space<vmem>>, vector<1x110xf32>,
    %c8_495 = arith.constant 8 : index
    %c0_496 = arith.constant 0 : index
    %1016 = memref.load %arg10[%c8_495, %c0_496] : memref<12x12xf32, #tpu.memory_space<smem>>
    %1017 = vector.broadcast %1016 : f32 to vector<1x110xf32>
    %1018 = arith.mulf %226, %1017 : vector<1x110xf32>
    %c8_497 = arith.constant 8 : index
    %c1_498 = arith.constant 1 : index
    %1019 = memref.load %arg10[%c8_497, %c1_498] : memref<12x12xf32, #tpu.memory_space<smem>>
    %1020 = vector.broadcast %1019 : f32 to vector<1x110xf32>
    %1021 = arith.mulf %351, %1020 : vector<1x110xf32>
    %1022 = arith.addf %1018, %1021 : vector<1x110xf32>
    %c8_499 = arith.constant 8 : index
    %c2_500 = arith.constant 2 : index
    %1023 = memref.load %arg10[%c8_499, %c2_500] : memref<12x12xf32, #tpu.memory_space<smem>>
    %1024 = vector.broadcast %1023 : f32 to vector<1x110xf32>
    %1025 = arith.mulf %476, %1024 : vector<1x110xf32>
    %1026 = arith.addf %1022, %1025 : vector<1x110xf32>
    %c8_501 = arith.constant 8 : index
    %c3_502 = arith.constant 3 : index
    %1027 = memref.load %arg10[%c8_501, %c3_502] : memref<12x12xf32, #tpu.memory_space<smem>>
    %1028 = vector.broadcast %1027 : f32 to vector<1x110xf32>
    %1029 = arith.mulf %601, %1028 : vector<1x110xf32>
    %1030 = arith.addf %1026, %1029 : vector<1x110xf32>
    %c8_503 = arith.constant 8 : index
    %c4_504 = arith.constant 4 : index
    %1031 = memref.load %arg10[%c8_503, %c4_504] : memref<12x12xf32, #tpu.memory_space<smem>>
    %1032 = vector.broadcast %1031 : f32 to vector<1x110xf32>
    %1033 = arith.mulf %229, %1032 : vector<1x110xf32>
    %1034 = arith.addf %1030, %1033 : vector<1x110xf32>
    %c8_505 = arith.constant 8 : index
    %c5_506 = arith.constant 5 : index
    %1035 = memref.load %arg10[%c8_505, %c5_506] : memref<12x12xf32, #tpu.memory_space<smem>>
    %1036 = vector.broadcast %1035 : f32 to vector<1x110xf32>
    %1037 = arith.mulf %354, %1036 : vector<1x110xf32>
    %1038 = arith.addf %1034, %1037 : vector<1x110xf32>
    %c8_507 = arith.constant 8 : index
    %c6_508 = arith.constant 6 : index
    %1039 = memref.load %arg10[%c8_507, %c6_508] : memref<12x12xf32, #tpu.memory_space<smem>>
    %1040 = vector.broadcast %1039 : f32 to vector<1x110xf32>
    %1041 = arith.mulf %479, %1040 : vector<1x110xf32>
    %1042 = arith.addf %1038, %1041 : vector<1x110xf32>
    %c8_509 = arith.constant 8 : index
    %c7_510 = arith.constant 7 : index
    %1043 = memref.load %arg10[%c8_509, %c7_510] : memref<12x12xf32, #tpu.memory_space<smem>>
    %1044 = vector.broadcast %1043 : f32 to vector<1x110xf32>
    %1045 = arith.mulf %604, %1044 : vector<1x110xf32>
    %1046 = arith.addf %1042, %1045 : vector<1x110xf32>
    %c8_511 = arith.constant 8 : index
    %c8_512 = arith.constant 8 : index
    %1047 = memref.load %arg10[%c8_511, %c8_512] : memref<12x12xf32, #tpu.memory_space<smem>>
    %1048 = vector.broadcast %1047 : f32 to vector<1x110xf32>
    %1049 = arith.mulf %232, %1048 : vector<1x110xf32>
    %1050 = arith.addf %1046, %1049 : vector<1x110xf32>
    %c8_513 = arith.constant 8 : index
    %c9_514 = arith.constant 9 : index
    %1051 = memref.load %arg10[%c8_513, %c9_514] : memref<12x12xf32, #tpu.memory_space<smem>>
    %1052 = vector.broadcast %1051 : f32 to vector<1x110xf32>
    %1053 = arith.mulf %357, %1052 : vector<1x110xf32>
    %1054 = arith.addf %1050, %1053 : vector<1x110xf32>
    %c8_515 = arith.constant 8 : index
    %c10_516 = arith.constant 10 : index
    %1055 = memref.load %arg10[%c8_515, %c10_516] : memref<12x12xf32, #tpu.memory_space<smem>>
    %1056 = vector.broadcast %1055 : f32 to vector<1x110xf32>
    %1057 = arith.mulf %482, %1056 : vector<1x110xf32>
    %1058 = arith.addf %1054, %1057 : vector<1x110xf32>
    %c8_517 = arith.constant 8 : index
    %c11_518 = arith.constant 11 : index
    %1059 = memref.load %arg10[%c8_517, %c11_518] : memref<12x12xf32, #tpu.memory_space<smem>>
    %1060 = vector.broadcast %1059 : f32 to vector<1x110xf32>
    %1061 = arith.mulf %607, %1060 : vector<1x110xf32>
    %1062 = arith.addf %1058, %1061 : vector<1x110xf32>
    %c8_519 = arith.constant 8 : index
    %1063 = memref.load %arg11[%c8_519] : memref<12xf32, #tpu.memory_space<smem>>
    %1064 = vector.broadcast %1063 : f32 to vector<1x110xf32>
    %1065 = arith.addf %1062, %1064 : vector<1x110xf32>
    %c8_520 = arith.constant 8 : index
    %c0_521 = arith.constant 0 : index
    %1066 = vector.load %arg12[%c8_520, %c0_521] : memref<12x110xf32, #tpu.memory_space<vmem>>, vector<1x110xf32>
    tpu.vector_store %arg12[%c8_520, %c0_521], %1065 {strides = array<i32>} : memref<12x110xf32, #tpu.memory_space<vmem>>, vector<1x110xf32>,
    %c9_522 = arith.constant 9 : index
    %c0_523 = arith.constant 0 : index
    %1067 = memref.load %arg10[%c9_522, %c0_523] : memref<12x12xf32, #tpu.memory_space<smem>>
    %1068 = vector.broadcast %1067 : f32 to vector<1x110xf32>
    %1069 = arith.mulf %226, %1068 : vector<1x110xf32>
    %c9_524 = arith.constant 9 : index
    %c1_525 = arith.constant 1 : index
    %1070 = memref.load %arg10[%c9_524, %c1_525] : memref<12x12xf32, #tpu.memory_space<smem>>
    %1071 = vector.broadcast %1070 : f32 to vector<1x110xf32>
    %1072 = arith.mulf %351, %1071 : vector<1x110xf32>
    %1073 = arith.addf %1069, %1072 : vector<1x110xf32>
    %c9_526 = arith.constant 9 : index
    %c2_527 = arith.constant 2 : index
    %1074 = memref.load %arg10[%c9_526, %c2_527] : memref<12x12xf32, #tpu.memory_space<smem>>
    %1075 = vector.broadcast %1074 : f32 to vector<1x110xf32>
    %1076 = arith.mulf %476, %1075 : vector<1x110xf32>
    %1077 = arith.addf %1073, %1076 : vector<1x110xf32>
    %c9_528 = arith.constant 9 : index
    %c3_529 = arith.constant 3 : index
    %1078 = memref.load %arg10[%c9_528, %c3_529] : memref<12x12xf32, #tpu.memory_space<smem>>
    %1079 = vector.broadcast %1078 : f32 to vector<1x110xf32>
    %1080 = arith.mulf %601, %1079 : vector<1x110xf32>
    %1081 = arith.addf %1077, %1080 : vector<1x110xf32>
    %c9_530 = arith.constant 9 : index
    %c4_531 = arith.constant 4 : index
    %1082 = memref.load %arg10[%c9_530, %c4_531] : memref<12x12xf32, #tpu.memory_space<smem>>
    %1083 = vector.broadcast %1082 : f32 to vector<1x110xf32>
    %1084 = arith.mulf %229, %1083 : vector<1x110xf32>
    %1085 = arith.addf %1081, %1084 : vector<1x110xf32>
    %c9_532 = arith.constant 9 : index
    %c5_533 = arith.constant 5 : index
    %1086 = memref.load %arg10[%c9_532, %c5_533] : memref<12x12xf32, #tpu.memory_space<smem>>
    %1087 = vector.broadcast %1086 : f32 to vector<1x110xf32>
    %1088 = arith.mulf %354, %1087 : vector<1x110xf32>
    %1089 = arith.addf %1085, %1088 : vector<1x110xf32>
    %c9_534 = arith.constant 9 : index
    %c6_535 = arith.constant 6 : index
    %1090 = memref.load %arg10[%c9_534, %c6_535] : memref<12x12xf32, #tpu.memory_space<smem>>
    %1091 = vector.broadcast %1090 : f32 to vector<1x110xf32>
    %1092 = arith.mulf %479, %1091 : vector<1x110xf32>
    %1093 = arith.addf %1089, %1092 : vector<1x110xf32>
    %c9_536 = arith.constant 9 : index
    %c7_537 = arith.constant 7 : index
    %1094 = memref.load %arg10[%c9_536, %c7_537] : memref<12x12xf32, #tpu.memory_space<smem>>
    %1095 = vector.broadcast %1094 : f32 to vector<1x110xf32>
    %1096 = arith.mulf %604, %1095 : vector<1x110xf32>
    %1097 = arith.addf %1093, %1096 : vector<1x110xf32>
    %c9_538 = arith.constant 9 : index
    %c8_539 = arith.constant 8 : index
    %1098 = memref.load %arg10[%c9_538, %c8_539] : memref<12x12xf32, #tpu.memory_space<smem>>
    %1099 = vector.broadcast %1098 : f32 to vector<1x110xf32>
    %1100 = arith.mulf %232, %1099 : vector<1x110xf32>
    %1101 = arith.addf %1097, %1100 : vector<1x110xf32>
    %c9_540 = arith.constant 9 : index
    %c9_541 = arith.constant 9 : index
    %1102 = memref.load %arg10[%c9_540, %c9_541] : memref<12x12xf32, #tpu.memory_space<smem>>
    %1103 = vector.broadcast %1102 : f32 to vector<1x110xf32>
    %1104 = arith.mulf %357, %1103 : vector<1x110xf32>
    %1105 = arith.addf %1101, %1104 : vector<1x110xf32>
    %c9_542 = arith.constant 9 : index
    %c10_543 = arith.constant 10 : index
    %1106 = memref.load %arg10[%c9_542, %c10_543] : memref<12x12xf32, #tpu.memory_space<smem>>
    %1107 = vector.broadcast %1106 : f32 to vector<1x110xf32>
    %1108 = arith.mulf %482, %1107 : vector<1x110xf32>
    %1109 = arith.addf %1105, %1108 : vector<1x110xf32>
    %c9_544 = arith.constant 9 : index
    %c11_545 = arith.constant 11 : index
    %1110 = memref.load %arg10[%c9_544, %c11_545] : memref<12x12xf32, #tpu.memory_space<smem>>
    %1111 = vector.broadcast %1110 : f32 to vector<1x110xf32>
    %1112 = arith.mulf %607, %1111 : vector<1x110xf32>
    %1113 = arith.addf %1109, %1112 : vector<1x110xf32>
    %c9_546 = arith.constant 9 : index
    %1114 = memref.load %arg11[%c9_546] : memref<12xf32, #tpu.memory_space<smem>>
    %1115 = vector.broadcast %1114 : f32 to vector<1x110xf32>
    %1116 = arith.addf %1113, %1115 : vector<1x110xf32>
    %c9_547 = arith.constant 9 : index
    %c0_548 = arith.constant 0 : index
    %1117 = vector.load %arg12[%c9_547, %c0_548] : memref<12x110xf32, #tpu.memory_space<vmem>>, vector<1x110xf32>
    tpu.vector_store %arg12[%c9_547, %c0_548], %1116 {strides = array<i32>} : memref<12x110xf32, #tpu.memory_space<vmem>>, vector<1x110xf32>,
    %c10_549 = arith.constant 10 : index
    %c0_550 = arith.constant 0 : index
    %1118 = memref.load %arg10[%c10_549, %c0_550] : memref<12x12xf32, #tpu.memory_space<smem>>
    %1119 = vector.broadcast %1118 : f32 to vector<1x110xf32>
    %1120 = arith.mulf %226, %1119 : vector<1x110xf32>
    %c10_551 = arith.constant 10 : index
    %c1_552 = arith.constant 1 : index
    %1121 = memref.load %arg10[%c10_551, %c1_552] : memref<12x12xf32, #tpu.memory_space<smem>>
    %1122 = vector.broadcast %1121 : f32 to vector<1x110xf32>
    %1123 = arith.mulf %351, %1122 : vector<1x110xf32>
    %1124 = arith.addf %1120, %1123 : vector<1x110xf32>
    %c10_553 = arith.constant 10 : index
    %c2_554 = arith.constant 2 : index
    %1125 = memref.load %arg10[%c10_553, %c2_554] : memref<12x12xf32, #tpu.memory_space<smem>>
    %1126 = vector.broadcast %1125 : f32 to vector<1x110xf32>
    %1127 = arith.mulf %476, %1126 : vector<1x110xf32>
    %1128 = arith.addf %1124, %1127 : vector<1x110xf32>
    %c10_555 = arith.constant 10 : index
    %c3_556 = arith.constant 3 : index
    %1129 = memref.load %arg10[%c10_555, %c3_556] : memref<12x12xf32, #tpu.memory_space<smem>>
    %1130 = vector.broadcast %1129 : f32 to vector<1x110xf32>
    %1131 = arith.mulf %601, %1130 : vector<1x110xf32>
    %1132 = arith.addf %1128, %1131 : vector<1x110xf32>
    %c10_557 = arith.constant 10 : index
    %c4_558 = arith.constant 4 : index
    %1133 = memref.load %arg10[%c10_557, %c4_558] : memref<12x12xf32, #tpu.memory_space<smem>>
    %1134 = vector.broadcast %1133 : f32 to vector<1x110xf32>
    %1135 = arith.mulf %229, %1134 : vector<1x110xf32>
    %1136 = arith.addf %1132, %1135 : vector<1x110xf32>
    %c10_559 = arith.constant 10 : index
    %c5_560 = arith.constant 5 : index
    %1137 = memref.load %arg10[%c10_559, %c5_560] : memref<12x12xf32, #tpu.memory_space<smem>>
    %1138 = vector.broadcast %1137 : f32 to vector<1x110xf32>
    %1139 = arith.mulf %354, %1138 : vector<1x110xf32>
    %1140 = arith.addf %1136, %1139 : vector<1x110xf32>
    %c10_561 = arith.constant 10 : index
    %c6_562 = arith.constant 6 : index
    %1141 = memref.load %arg10[%c10_561, %c6_562] : memref<12x12xf32, #tpu.memory_space<smem>>
    %1142 = vector.broadcast %1141 : f32 to vector<1x110xf32>
    %1143 = arith.mulf %479, %1142 : vector<1x110xf32>
    %1144 = arith.addf %1140, %1143 : vector<1x110xf32>
    %c10_563 = arith.constant 10 : index
    %c7_564 = arith.constant 7 : index
    %1145 = memref.load %arg10[%c10_563, %c7_564] : memref<12x12xf32, #tpu.memory_space<smem>>
    %1146 = vector.broadcast %1145 : f32 to vector<1x110xf32>
    %1147 = arith.mulf %604, %1146 : vector<1x110xf32>
    %1148 = arith.addf %1144, %1147 : vector<1x110xf32>
    %c10_565 = arith.constant 10 : index
    %c8_566 = arith.constant 8 : index
    %1149 = memref.load %arg10[%c10_565, %c8_566] : memref<12x12xf32, #tpu.memory_space<smem>>
    %1150 = vector.broadcast %1149 : f32 to vector<1x110xf32>
    %1151 = arith.mulf %232, %1150 : vector<1x110xf32>
    %1152 = arith.addf %1148, %1151 : vector<1x110xf32>
    %c10_567 = arith.constant 10 : index
    %c9_568 = arith.constant 9 : index
    %1153 = memref.load %arg10[%c10_567, %c9_568] : memref<12x12xf32, #tpu.memory_space<smem>>
    %1154 = vector.broadcast %1153 : f32 to vector<1x110xf32>
    %1155 = arith.mulf %357, %1154 : vector<1x110xf32>
    %1156 = arith.addf %1152, %1155 : vector<1x110xf32>
    %c10_569 = arith.constant 10 : index
    %c10_570 = arith.constant 10 : index
    %1157 = memref.load %arg10[%c10_569, %c10_570] : memref<12x12xf32, #tpu.memory_space<smem>>
    %1158 = vector.broadcast %1157 : f32 to vector<1x110xf32>
    %1159 = arith.mulf %482, %1158 : vector<1x110xf32>
    %1160 = arith.addf %1156, %1159 : vector<1x110xf32>
    %c10_571 = arith.constant 10 : index
    %c11_572 = arith.constant 11 : index
    %1161 = memref.load %arg10[%c10_571, %c11_572] : memref<12x12xf32, #tpu.memory_space<smem>>
    %1162 = vector.broadcast %1161 : f32 to vector<1x110xf32>
    %1163 = arith.mulf %607, %1162 : vector<1x110xf32>
    %1164 = arith.addf %1160, %1163 : vector<1x110xf32>
    %c10_573 = arith.constant 10 : index
    %1165 = memref.load %arg11[%c10_573] : memref<12xf32, #tpu.memory_space<smem>>
    %1166 = vector.broadcast %1165 : f32 to vector<1x110xf32>
    %1167 = arith.addf %1164, %1166 : vector<1x110xf32>
    %c10_574 = arith.constant 10 : index
    %c0_575 = arith.constant 0 : index
    %1168 = vector.load %arg12[%c10_574, %c0_575] : memref<12x110xf32, #tpu.memory_space<vmem>>, vector<1x110xf32>
    tpu.vector_store %arg12[%c10_574, %c0_575], %1167 {strides = array<i32>} : memref<12x110xf32, #tpu.memory_space<vmem>>, vector<1x110xf32>,
    %c11_576 = arith.constant 11 : index
    %c0_577 = arith.constant 0 : index
    %1169 = memref.load %arg10[%c11_576, %c0_577] : memref<12x12xf32, #tpu.memory_space<smem>>
    %1170 = vector.broadcast %1169 : f32 to vector<1x110xf32>
    %1171 = arith.mulf %226, %1170 : vector<1x110xf32>
    %c11_578 = arith.constant 11 : index
    %c1_579 = arith.constant 1 : index
    %1172 = memref.load %arg10[%c11_578, %c1_579] : memref<12x12xf32, #tpu.memory_space<smem>>
    %1173 = vector.broadcast %1172 : f32 to vector<1x110xf32>
    %1174 = arith.mulf %351, %1173 : vector<1x110xf32>
    %1175 = arith.addf %1171, %1174 : vector<1x110xf32>
    %c11_580 = arith.constant 11 : index
    %c2_581 = arith.constant 2 : index
    %1176 = memref.load %arg10[%c11_580, %c2_581] : memref<12x12xf32, #tpu.memory_space<smem>>
    %1177 = vector.broadcast %1176 : f32 to vector<1x110xf32>
    %1178 = arith.mulf %476, %1177 : vector<1x110xf32>
    %1179 = arith.addf %1175, %1178 : vector<1x110xf32>
    %c11_582 = arith.constant 11 : index
    %c3_583 = arith.constant 3 : index
    %1180 = memref.load %arg10[%c11_582, %c3_583] : memref<12x12xf32, #tpu.memory_space<smem>>
    %1181 = vector.broadcast %1180 : f32 to vector<1x110xf32>
    %1182 = arith.mulf %601, %1181 : vector<1x110xf32>
    %1183 = arith.addf %1179, %1182 : vector<1x110xf32>
    %c11_584 = arith.constant 11 : index
    %c4_585 = arith.constant 4 : index
    %1184 = memref.load %arg10[%c11_584, %c4_585] : memref<12x12xf32, #tpu.memory_space<smem>>
    %1185 = vector.broadcast %1184 : f32 to vector<1x110xf32>
    %1186 = arith.mulf %229, %1185 : vector<1x110xf32>
    %1187 = arith.addf %1183, %1186 : vector<1x110xf32>
    %c11_586 = arith.constant 11 : index
    %c5_587 = arith.constant 5 : index
    %1188 = memref.load %arg10[%c11_586, %c5_587] : memref<12x12xf32, #tpu.memory_space<smem>>
    %1189 = vector.broadcast %1188 : f32 to vector<1x110xf32>
    %1190 = arith.mulf %354, %1189 : vector<1x110xf32>
    %1191 = arith.addf %1187, %1190 : vector<1x110xf32>
    %c11_588 = arith.constant 11 : index
    %c6_589 = arith.constant 6 : index
    %1192 = memref.load %arg10[%c11_588, %c6_589] : memref<12x12xf32, #tpu.memory_space<smem>>
    %1193 = vector.broadcast %1192 : f32 to vector<1x110xf32>
    %1194 = arith.mulf %479, %1193 : vector<1x110xf32>
    %1195 = arith.addf %1191, %1194 : vector<1x110xf32>
    %c11_590 = arith.constant 11 : index
    %c7_591 = arith.constant 7 : index
    %1196 = memref.load %arg10[%c11_590, %c7_591] : memref<12x12xf32, #tpu.memory_space<smem>>
    %1197 = vector.broadcast %1196 : f32 to vector<1x110xf32>
    %1198 = arith.mulf %604, %1197 : vector<1x110xf32>
    %1199 = arith.addf %1195, %1198 : vector<1x110xf32>
    %c11_592 = arith.constant 11 : index
    %c8_593 = arith.constant 8 : index
    %1200 = memref.load %arg10[%c11_592, %c8_593] : memref<12x12xf32, #tpu.memory_space<smem>>
    %1201 = vector.broadcast %1200 : f32 to vector<1x110xf32>
    %1202 = arith.mulf %232, %1201 : vector<1x110xf32>
    %1203 = arith.addf %1199, %1202 : vector<1x110xf32>
    %c11_594 = arith.constant 11 : index
    %c9_595 = arith.constant 9 : index
    %1204 = memref.load %arg10[%c11_594, %c9_595] : memref<12x12xf32, #tpu.memory_space<smem>>
    %1205 = vector.broadcast %1204 : f32 to vector<1x110xf32>
    %1206 = arith.mulf %357, %1205 : vector<1x110xf32>
    %1207 = arith.addf %1203, %1206 : vector<1x110xf32>
    %c11_596 = arith.constant 11 : index
    %c10_597 = arith.constant 10 : index
    %1208 = memref.load %arg10[%c11_596, %c10_597] : memref<12x12xf32, #tpu.memory_space<smem>>
    %1209 = vector.broadcast %1208 : f32 to vector<1x110xf32>
    %1210 = arith.mulf %482, %1209 : vector<1x110xf32>
    %1211 = arith.addf %1207, %1210 : vector<1x110xf32>
    %c11_598 = arith.constant 11 : index
    %c11_599 = arith.constant 11 : index
    %1212 = memref.load %arg10[%c11_598, %c11_599] : memref<12x12xf32, #tpu.memory_space<smem>>
    %1213 = vector.broadcast %1212 : f32 to vector<1x110xf32>
    %1214 = arith.mulf %607, %1213 : vector<1x110xf32>
    %1215 = arith.addf %1211, %1214 : vector<1x110xf32>
    %c11_600 = arith.constant 11 : index
    %1216 = memref.load %arg11[%c11_600] : memref<12xf32, #tpu.memory_space<smem>>
    %1217 = vector.broadcast %1216 : f32 to vector<1x110xf32>
    %1218 = arith.addf %1215, %1217 : vector<1x110xf32>
    %c11_601 = arith.constant 11 : index
    %c0_602 = arith.constant 0 : index
    %1219 = vector.load %arg12[%c11_601, %c0_602] : memref<12x110xf32, #tpu.memory_space<vmem>>, vector<1x110xf32>
    tpu.vector_store %arg12[%c11_601, %c0_602], %1218 {strides = array<i32>} : memref<12x110xf32, #tpu.memory_space<vmem>>, vector<1x110xf32>,
    return
  }
}

</mosaic_0001>

<bundles_post_ra>
// kernel: local_relational_forward.1
= control target key start
LH: loop header
LB: loop body
LE: loop exit
PB: predicated region body
PF: predicated region fallthrough
CT: control target
= control target key end

     0   :  { %s4253_s0 = inlined_call_operand.vmem [shape: f32[12,9,110], index: 0, kind: input, shape index: {}]   ;;  %s4254_s1 = inlined_call_operand.vmem [shape: f32[9,110], index: 1, kind: input, shape index: {}]   ;;  %s4255_s2 = inlined_call_operand.vmem [shape: f32[4,12], index: 2, kind: input, shape index: {}]   ;;  %s4256_s3 = inlined_call_operand.vmem [shape: f32[4], index: 3, kind: input, shape index: {}]   ;;  %s4257_s4 = inlined_call_operand.vmem [shape: f32[4,12], index: 4, kind: input, shape index: {}]   ;;  %s4258_s5 = inlined_call_operand.vmem [shape: f32[4], index: 5, kind: input, shape index: {}]   ;;  %s4259_s6 = inlined_call_operand.vmem [shape: f32[2,2], index: 6, kind: input, shape index: {}]   ;;  %s4260_s7 = inlined_call_operand.vmem [shape: f32[2], index: 7, kind: input, shape index: {}]   ;;  %s4261_s8 = inlined_call_operand.vmem [shape: f32[4,2], index: 8, kind: input, shape index: {}]   ;;  %s4262_s9 = inlined_call_operand.vmem [shape: f32[4], index: 9, kind: input, shape index: {}]   ;;  %s4263_s10 = inlined_call_operand.vmem [shape: f32[12,12], index: 10, kind: input, shape index: {}]   ;;  %s4264_s11 = inlined_call_operand.vmem [shape: f32[12], index: 11, kind: input, shape index: {}]   ;;  %s4265_s12 = inlined_call_operand.vmem [shape: f32[12,110], index: 12, kind: output, shape index: {}]  }
   0x1   :  { %4314 = sst [smem:[#allocation89_spill]] %s4253_s0 }
   0x2   :  { %4315 = sst [smem:[#allocation90_spill]] %s4265_s12 }
   0x3   :  { %17 = vsyncpa [#allocation3], 0 }
   0x4   :  { %18 = vsyncpa [#allocation5], 0 }
   0x5   :  { %19 = vsyncpa [#allocation8], 0 }
   0x6   :  { %20 = vsyncpa [#allocation11], 0 }
   0x7   :  { %21 = vsyncpa [#allocation14], 0  ;;  %s43_s23 = sshll.u32 %s4256_s3, 4  ;;  %s44_s23 = int_to_ptr.vmem [resolvable:$true] %s43_s23 }
   0x8   :  { %22 = vsyncpa [#allocation17], 0  ;;  %s63_s26 = sshll.u32 %s4258_s5, 4  ;;  %s2070_s27 = scalar_lea.vmem %s44_s23, 16  ;;  %s64_s26 = int_to_ptr.vmem [resolvable:$true] %s63_s26 }
   0x9   :  { %p2071_p0 = scmp.ne.s32.totalorder %s44_s23, %s2070_s27  ;;  %p2075_p1 = scmp.lt.s32.totalorder %s44_s23, %s44_s23 }
   0xa   :  { %p2076_p2 = scmp.lt.s32.totalorder %s2070_s27, %s2070_s27 }
   0xc   :  { %p2077_p3 = por %p2076_p2, %p2075_p1 }
   0xe   :  { %p2078_p4 = pnand %p2077_p3, %p2071_p0 }
  0x10   :  { %2081 = shalt.err (!%p2078_p4)
}
  0x11   :  { %s2202_s28 = smov [#allocation4]   ;;  %s2082_s29 = scalar_lea.vmem %s64_s26, 16 }
  0x12   :  { %46 = dma.vmem_to_smem %s44_s23, 16, %s2202_s28, [#allocation5]  }
  0x13   :  { %p2083_p5 = scmp.ne.s32.totalorder %s64_s26, %s2082_s29  ;;  %p2087_p6 = scmp.lt.s32.totalorder %s64_s26, %s64_s26 }
  0x14   :  { %p2088_p7 = scmp.lt.s32.totalorder %s2082_s29, %s2082_s29 }
  0x16   :  { %p2089_p8 = por %p2088_p7, %p2087_p6 }
  0x18   :  { %p2090_p9 = pnand %p2089_p8, %p2083_p5 }
  0x1a   :  { %2093 = shalt.err (!%p2090_p9)
}
  0x1b   :  { %s2203_s3 = smov [#allocation7]   ;;  %s83_s13 = sshll.u32 %s4260_s7, 4  ;;  %s84_s13 = int_to_ptr.vmem [resolvable:$true] %s83_s13 }
  0x1c   :  { %66 = dma.vmem_to_smem %s64_s26, 16, %s2203_s3, [#allocation8]  }
  0x1d   :  { %s103_s16 = sshll.u32 %s4262_s9, 4  ;;  %s2094_s17 = scalar_lea.vmem %s84_s13, 16  ;;  %s104_s16 = int_to_ptr.vmem [resolvable:$true] %s103_s16 }
  0x1e   :  { %p2095_p10 = scmp.ne.s32.totalorder %s84_s13, %s2094_s17  ;;  %p2099_p11 = scmp.lt.s32.totalorder %s84_s13, %s84_s13 }
  0x1f   :  { %p2100_p12 = scmp.lt.s32.totalorder %s2094_s17, %s2094_s17 }
  0x21   :  { %p2101_p13 = por %p2100_p12, %p2099_p11 }
  0x23   :  { %p2102_p0 = pnand %p2101_p13, %p2095_p10 }
  0x25   :  { %2105 = shalt.err (!%p2102_p0)
}
  0x26   :  { %s2204_s18 = smov [#allocation10]   ;;  %s2106_s19 = scalar_lea.vmem %s104_s16, 16 }
  0x27   :  { %86 = dma.vmem_to_smem %s84_s13, 16, %s2204_s18, [#allocation11]  }
  0x28   :  { %p2107_p1 = scmp.ne.s32.totalorder %s104_s16, %s2106_s19  ;;  %p2111_p2 = scmp.lt.s32.totalorder %s104_s16, %s104_s16 }
  0x29   :  { %p2112_p3 = scmp.lt.s32.totalorder %s2106_s19, %s2106_s19 }
  0x2b   :  { %p2113_p4 = por %p2112_p3, %p2111_p2 }
  0x2d   :  { %p2114_p5 = pnand %p2113_p4, %p2107_p1 }
  0x2f   :  { %2117 = shalt.err (!%p2114_p5)
}
  0x30   :  { %s2205_s7 = smov [#allocation13]   ;;  %s33_s21 = sshll.u32 %s4255_s2, 4  ;;  %s34_s21 = int_to_ptr.vmem [resolvable:$true] %s33_s21 }
  0x31   :  { %106 = dma.vmem_to_smem %s104_s16, 16, %s2205_s7, [#allocation14]  }
  0x32   :  { %s53_s24 = sshll.u32 %s4257_s4, 4  ;;  %s2118_s25 = scalar_lea.vmem %s34_s21, 64  ;;  %s54_s24 = int_to_ptr.vmem [resolvable:$true] %s53_s24 }
  0x33   :  { %p2119_p6 = scmp.ne.s32.totalorder %s34_s21, %s2118_s25  ;;  %p2123_p7 = scmp.lt.s32.totalorder %s34_s21, %s34_s21 }
  0x34   :  { %p2124_p8 = scmp.lt.s32.totalorder %s2118_s25, %s2118_s25 }
  0x36   :  { %p2125_p9 = por %p2124_p8, %p2123_p7 }
  0x38   :  { %p2126_p10 = pnand %p2125_p9, %p2119_p6 }
  0x3a   :  { %2129 = shalt.err (!%p2126_p10)
}
  0x3b   :  { %s2206_s26 = smov [#allocation2]   ;;  %s2130_s27 = scalar_lea.vmem %s54_s24, 64 }
  0x3c   :  { %36 = dma.vmem_to_smem %s34_s21, 64, %s2206_s26, [#allocation3]  }
  0x3d   :  { %p2131_p11 = scmp.ne.s32.totalorder %s54_s24, %s2130_s27  ;;  %p2135_p12 = scmp.lt.s32.totalorder %s54_s24, %s54_s24 }
  0x3e   :  { %p2136_p13 = scmp.lt.s32.totalorder %s2130_s27, %s2130_s27 }
  0x40   :  { %p2137_p0 = por %p2136_p13, %p2135_p12 }
  0x42   :  { %p2138_p1 = pnand %p2137_p0, %p2131_p11 }
  0x44   :  { %2141 = shalt.err (!%p2138_p1)
}
  0x45   :  { %s2207_s2 = smov [#allocation6]   ;;  %s73_s29 = sshll.u32 %s4259_s6, 4  ;;  %s74_s29 = int_to_ptr.vmem [resolvable:$true] %s73_s29 }
  0x46   :  { %56 = dma.vmem_to_smem %s54_s24, 64, %s2207_s2, [#allocation5]  }
  0x47   :  { %s93_s30 = sshll.u32 %s4261_s8, 4  ;;  %s2142_s13 = scalar_lea.vmem %s74_s29, 32  ;;  %s94_s30 = int_to_ptr.vmem [resolvable:$true] %s93_s30 }
  0x48   :  { %p2143_p2 = scmp.ne.s32.totalorder %s74_s29, %s2142_s13  ;;  %p2147_p3 = scmp.lt.s32.totalorder %s74_s29, %s74_s29 }
  0x49   :  { %p2148_p4 = scmp.lt.s32.totalorder %s2142_s13, %s2142_s13 }
  0x4b   :  { %p2149_p5 = por %p2148_p4, %p2147_p3 }
  0x4d   :  { %p2150_p6 = pnand %p2149_p5, %p2143_p2 }
  0x4f   :  { %2153 = shalt.err (!%p2150_p6)
}
  0x50   :  { %s2208_s14 = smov [#allocation9]   ;;  %s2154_s15 = scalar_lea.vmem %s94_s30, 64 }
  0x51   :  { %76 = dma.vmem_to_smem %s74_s29, 32, %s2208_s14, [#allocation8]  }
  0x52   :  { %p2155_p7 = scmp.ne.s32.totalorder %s94_s30, %s2154_s15  ;;  %p2159_p8 = scmp.lt.s32.totalorder %s94_s30, %s94_s30 }
  0x53   :  { %p2160_p9 = scmp.lt.s32.totalorder %s2154_s15, %s2154_s15 }
  0x55   :  { %p2161_p10 = por %p2160_p9, %p2159_p8 }
  0x57   :  { %p2162_p11 = pnand %p2161_p10, %p2155_p7 }
  0x59   :  { %2165 = shalt.err (!%p2162_p11)
}
  0x5a   :  { %s2209_s6 = smov [#allocation12]   ;;  %s112_s17 = sshll.u32 %s4263_s10, 4  ;;  %s113_s17 = int_to_ptr.vmem [resolvable:$true] %s112_s17 }
  0x5b   :  { %96 = dma.vmem_to_smem %s94_s30, 64, %s2209_s6, [#allocation11]  }
  0x5c   :  { %s125_s7 = sshll.u32 %s4264_s11, 4  ;;  %s2166_s9 = scalar_lea.vmem %s113_s17, 256  ;;  %s126_s7 = int_to_ptr.vmem [resolvable:$true] %s125_s7 }
  0x5d   :  { %p2167_p12 = scmp.ne.s32.totalorder %s113_s17, %s2166_s9  ;;  %p2171_p13 = scmp.lt.s32.totalorder %s113_s17, %s113_s17 }
  0x5e   :  { %p2172_p0 = scmp.lt.s32.totalorder %s2166_s9, %s2166_s9 }
  0x60   :  { %p2173_p1 = por %p2172_p0, %p2171_p13 }
  0x62   :  { %p2174_p2 = pnand %p2173_p1, %p2167_p12 }
  0x64   :  { %2177 = shalt.err (!%p2174_p2)
}
  0x65   :  { %s2210_s20 = smov [#allocation15]   ;;  %s2211_s21 = smov 128  }
  0x66   :  { %s2212_s22 = smov 8   ;;  %s2178_s23 = scalar_lea.vmem %s126_s7, 16 }
  0x67   :  { %118 = dma.vmem_to_smem %s113_s17, 256, %s2210_s20, [#allocation14], %s2211_s21, %s2211_s21, %s2212_s22  }
  0x68   :  { %p2179_p3 = scmp.ne.s32.totalorder %s126_s7, %s2178_s23  ;;  %p2183_p4 = scmp.lt.s32.totalorder %s126_s7, %s126_s7 }
  0x69   :  { %p2184_p5 = scmp.lt.s32.totalorder %s2178_s23, %s2178_s23 }
  0x6b   :  { %p2185_p6 = por %p2184_p5, %p2183_p4 }
  0x6d   :  { %p2186_p7 = pnand %p2185_p6, %p2179_p3 }
  0x6f   :  { %2189 = shalt.err (!%p2186_p7)
}
  0x70   :  { %s2213_s10 = smov [#allocation16]  }
  0x71   :  { %128 = dma.vmem_to_smem %s126_s7, 16, %s2213_s10, [#allocation17]  }
  0x72   :  { %2190 = dma.done.wait [#allocation3], 64  }
  0x73   :  { %2191 = vsyncadd [#allocation3], 4294967232 }
  0x74   :  { %2192 = dma.done.wait [#allocation5], 80  }
  0x75   :  { %2193 = vsyncadd [#allocation5], 4294967216 }
  0x76   :  { %2194 = dma.done.wait [#allocation8], 48  }
  0x77   :  { %2195 = vsyncadd [#allocation8], 4294967248 }
  0x78   :  { %2196 = dma.done.wait [#allocation11], 80  }
  0x79   :  { %2197 = vsyncadd [#allocation11], 4294967216 }
  0x7a   :  { %2198 = dma.done.wait [#allocation14], 272  }
  0x7b   :  { %2199 = vsyncadd [#allocation14], 4294967024 }
  0x7c   :  { %2200 = dma.done.wait [#allocation17], 16  }
  0x7d   :  { %2201 = vsyncadd [#allocation17], 4294967280 }
  0x7e   :  { %159 = sfence }
  0x7f   :  { %v197_v0 = vlaneseq  ;;  %v2214_v3 = vmov 0   ;;  %s222_s11 = sld [smem:[#allocation9]]  ;;  %vm445_vm2 = vcmask 900096   ;;  %vm447_vm3 = vcmask 892928  }
  0x80   :  { %s1739_s24 = sld [smem:[#allocation9 + $0x1]] }
  0x81   :  { %v2310_v1 = vshrl.u32 %v197_v0, 7  ;;  %s2315_s25 = sld [smem:[#allocation10]] }
  0x82   :  { %s1740_s26 = sld [smem:[#allocation9 + $0x80]] }
  0x83   :  { %v199_v2 = vadd.s32 8, %v2310_v1  ;;  %vm200_vm0 = vcmp.ge.s32.totalorder %v2310_v1, 3  ;;  %vm204_vm1 = vcmp.ge.s32.totalorder %v2310_v1, 6  ;;  %s1741_s27 = sld [smem:[#allocation9 + $0x81]] }
  0x84   :  { %v202_v4 = vsel %vm200_vm0, 1, %v2214_v3  ;;  %v206_v6 = vsel %vm204_vm1, 1, %v2214_v3  ;;  %s2318_s2 = sld [smem:[#allocation10 + $0x1]] }
  0x85   :  { %v1736_v5 = vadd.s32 4294967290, %v199_v2  ;;  %v208_v7 = vadd.s32 %v206_v6, %v202_v4  ;;  %v223_v15 = vstv %s222_s11  ;;  %s2320_s4 = sld [smem:[#allocation12]]  ;;  %v2385_v6 = vld [vmem:[%s4253_s0 + $0x8] sm:$0x1] }
  0x86   :  { %v227_v17 = vstv %s1739_s24  ;;  %s2322_s28 = sld [smem:[#allocation12 + $0x1]] }
  0x87   :  { %v1738_v8 = vadd.s32 4294967295, %v1736_v5  ;;  %v210_v9 = vmul.u32 3, %v208_v7  ;;  %v218_v10 = vsub.s32 1, %v208_v7  ;;  %v229_v20 = vmul.f32 -1.0, %v227_v17  ;;  %s2324_s29 = sld [smem:[#allocation13]] }
  0x88   :  { %v233_v21 = vstv %s2315_s25  ;;  %v239_v22 = vstv %s1740_s26  ;;  %s2327_s3 = sld [smem:[#allocation12 + $0x80]] }
  0x89   :  { %v217_v11 = vcvt.s32.f32 %v1738_v8  ;;  %v212_v12 = vsub.s32 %v2310_v1, %v210_v9  ;;  %v220_v13 = vcvt.s32.f32 %v218_v10  ;;  %s2329_s5 = sld [smem:[#allocation12 + $0x81]]  ;;  %v243_v27 = vstv %s1741_s27  ;;  %v2396_v9 = vld [vmem:[%s4253_s0] sm:$0xff] }
  0x8a   :  { %s2331_s30 = sld [smem:[#allocation13 + $0x1]]  ;;  %v245_v31 = vmul.f32 -1.0, %v243_v27  ;;  %v249_v32 = vstv %s2318_s2  ;;  %v2391_v8 = vsub.s32 4, %v2310_v1  ;;  %v2411_v1 = vld [vmem:[%s4253_s0 + $0x18] sm:$0x1] }
  0x8b   :  { %v1737_v14 = vadd.s32 4294967295, %v212_v12  ;;  %v225_v16 = vmul.f32 %v223_v15, %v217_v11  ;;  %v228_v19 = vmul.f32 %v227_v17, %v220_v13  ;;  %v241_v26 = vmul.f32 %v239_v22, %v217_v11  ;;  %s2333_s13 = sld [smem:[#allocation12 + $0x100]] }
  0x8c   :  { %v244_v30 = vmul.f32 %v243_v27, %v220_v13  ;;  %v255_v33 = vstv %s2320_s4  ;;  %s2337_s14 = sld [smem:[#allocation12 + $0x101]]  ;;  %v259_v43 = vstv %s2322_s28 }
  0x8d   :  { %v216_v18 = vcvt.s32.f32 %v1737_v14  ;;  %v231_v24 = vadd.f32 %v229_v20, %v225_v16  ;;  %v247_v37 = vadd.f32 %v245_v31, %v241_v26  ;;  %s2341_s15 = sld [smem:[#allocation13 + $0x2]]  ;;  %v265_v50 = vstv %s2324_s29 }
  0x8e   :  { %v269_v38 = vstv %s2327_s3  ;;  %s2344_s6 = sld [smem:[#allocation12 + $0x180]] }
  0x8f   :  { %v224_v23 = vmul.f32 %v223_v15, %v216_v18  ;;  %v240_v25 = vmul.f32 %v239_v22, %v216_v18  ;;  %v235_v29 = vadd.f32 %v233_v21, %v231_v24  ;;  %v251_v41 = vadd.f32 %v249_v32, %v247_v37  ;;  %s2346_s8 = sld [smem:[#allocation12 + $0x181]]  ;;  %v2424_v18 = vld [vmem:[%s4253_s0 + $0x10] sm:$0xff] }
  0x90   :  { %v273_v45 = vstv %s2329_s5  ;;  %s2352_s16 = sld [smem:[#allocation13 + $0x3]]  ;;  %v279_v51 = vstv %s2331_s30 }
  0x91   :  { %v230_v28 = vadd.f32 %v228_v19, %v224_v23  ;;  %v2339_v35 = vmax.f32 %v235_v29, 0.0  ;;  %v246_v36 = vadd.f32 %v244_v30, %v240_v25  ;;  %v2356_v47 = vmax.f32 %v251_v41, 0.0  ;;  %s2358_s17 = sld [smem:[#allocation2]]  ;;  %v2429_v19 = vld [vmem:[%s4253_s0 + $0x28] sm:$0x1] }
  0x92   :  { %v283_v52 = vstv %s2333_s13  ;;  %v287_v53 = vstv %s2337_s14  ;;  %s2364_s18 = sld [smem:[#allocation6]] }
  0x93   :  { %v234_v34 = vadd.f32 %v233_v21, %v230_v28  ;;  %v250_v40 = vadd.f32 %v249_v32, %v246_v36  ;;  %v257_v42 = vmul.f32 %v255_v33, %v2339_v35  ;;  %v271_v44 = vmul.f32 %v269_v38, %v2339_v35  ;;  %s2370_s19 = sld [smem:[#allocation2 + $0x1]]  ;;  %v2447_v28 = vld [vmem:[%s4253_s0 + $0x20] sm:$0xff] }
  0x94   :  { %v261_v55 = vmul.f32 %v259_v43, %v2356_v47  ;;  %v275_v57 = vmul.f32 %v273_v45, %v2356_v47  ;;  %v285_v59 = vmul.f32 %v283_v52, %v2339_v35  ;;  %v289_v61 = vmul.f32 %v287_v53, %v2356_v47  ;;  %s2375_s7 = sld [smem:[#allocation6 + $0x1]] }
  0x95   :  { %v236_v39 = vmax.f32 %v234_v34, 0.0  ;;  %v2354_v46 = vmax.f32 %v250_v40, 0.0  ;;  %s2377_s9 = sld [smem:[#allocation2 + $0x2]]  ;;  %v293_v5 = vstv %s2341_s15  ;;  %v297_v7 = vstv %s2344_s6 }
  0x96   :  { %v263_v63 = vadd.f32 %v261_v55, %v257_v42  ;;  %v277_v2 = vadd.f32 %v275_v57, %v271_v44  ;;  %v291_v4 = vadd.f32 %v289_v61, %v285_v59  ;;  %s2380_s20 = sld [smem:[#allocation6 + $0x2]]  ;;  %v301_v21 = vstv %s2346_s8 }
  0x97   :  { %v256_v48 = vmul.f32 %v255_v33, %v236_v39  ;;  %v270_v49 = vmul.f32 %v269_v38, %v236_v39  ;;  %v260_v54 = vmul.f32 %v259_v43, %v2354_v46  ;;  %v274_v56 = vmul.f32 %v273_v45, %v2354_v46  ;;  %s2388_s23 = sld [smem:[#allocation2 + $0x3]]  ;;  %v2460_v33 = vld [vmem:[%s4253_s0 + $0x38] sm:$0x1]  ;;  %v2471_v38 = vld [vmem:[%s4253_s0 + $0x30] sm:$0xff]  ;;  %v2484_v43 = vld [vmem:[%s4253_s0 + $0x48] sm:$0x1] }
  0x98   :  { %v284_v58 = vmul.f32 %v283_v52, %v236_v39  ;;  %v288_v60 = vmul.f32 %v287_v53, %v2354_v46  ;;  %v2400_v11 = vadd.f32 %v265_v50, %v263_v63  ;;  %v2404_v13 = vadd.f32 %v279_v51, %v277_v2  ;;  %s2406_s24 = sld [smem:[#allocation6 + $0x3]]  ;;  %v2503_v53 = vld [vmem:[%s4253_s0 + $0x58] sm:$0x1]  ;;  %v2522_v63 = vld [vmem:[%s4253_s0 + $0x68] sm:$0x1] }
  0x99   :  { %v262_v62 = vadd.f32 %v260_v54, %v256_v48  ;;  %v276_v0 = vadd.f32 %v274_v56, %v270_v49  ;;  %v2415_v15 = vadd.f32 %v293_v5, %v291_v4  ;;  %v311_v16 = vstv %s2358_s17  ;;  %s2419_s27 = sld [smem:[#allocation2 + $0x4]] }
  0x9a   :  { %v290_v3 = vadd.f32 %v288_v60, %v284_v58  ;;  %v315_v17 = vstv %s2364_s18  ;;  %v2431_v20 = vmul.f32 %v297_v7, %v236_v39  ;;  %v312_v22 = vmul.f32 %v311_v16, %v2396_v9  ;;  %s2436_s3 = sld [smem:[#allocation6 + $0x4]]  ;;  %v2513_v58 = vld [vmem:[%s4253_s0 + $0x50] sm:$0xff] }
  0x9b   :  { %v2398_v10 = vadd.f32 %v265_v50, %v262_v62  ;;  %v2402_v12 = vadd.f32 %v279_v51, %v276_v0  ;;  %v313_v23 = vmul.f32 %v311_v16, %v2385_v6  ;;  %v316_v24 = vmul.f32 %v315_v17, %v2396_v9  ;;  %s2442_s5 = sld [smem:[#allocation2 + $0x5]] }
  0x9c   :  { %v2413_v14 = vadd.f32 %v293_v5, %v290_v3  ;;  %v318_v25 = vstv %s2370_s19  ;;  %v324_v26 = vstv %s2375_s7  ;;  %v328_v27 = vstv %s2377_s9  ;;  %s2455_s14 = sld [smem:[#allocation6 + $0x5]]  ;;  %v2532_v5 = vld [vmem:[%s4253_s0 + $0x60] sm:$0xff] }
  0x9d   :  { %v2450_v29 = vmul.f32 %v297_v7, %v2339_v35  ;;  %v307_v30 = vstv %s2352_s16  ;;  %v319_v31 = vmul.f32 %v2424_v18, %v318_v25  ;;  %v320_v32 = vmul.f32 %v2411_v1, %v318_v25  ;;  %s2466_s8 = sld [smem:[#allocation2 + $0x6]] }
  0x9e   :  { %v325_v34 = vmul.f32 %v2424_v18, %v324_v26  ;;  %v329_v36 = vmul.f32 %v2447_v28, %v328_v27  ;;  %v330_v35 = vmul.f32 %v2429_v19, %v328_v27  ;;  %v334_v37 = vstv %s2380_s20  ;;  %s2479_s19 = sld [smem:[#allocation6 + $0x6]]  ;;  %v2551_v27 = vld [vmem:[%s4253_s0 + $0x70] sm:$0xff] }
  0x9f   :  { %v2474_v39 = vmul.f32 %v301_v21, %v2354_v46  ;;  %v2477_v40 = vmul.f32 %v301_v21, %v2356_v47  ;;  %v321_v41 = vadd.f32 %v319_v31, %v312_v22  ;;  %v322_v42 = vadd.f32 %v320_v32, %v313_v23  ;;  %s2489_s20 = sld [smem:[#allocation2 + $0x7]]  ;;  %v2494_v47 = vld [vmem:[%s4253_s0 + $0x40] sm:$0xff]  ;;  %v2541_v22 = vld [vmem:[%s4253_s0 + $0x78] sm:$0x1] }
  0xa0   :  { %v326_v44 = vadd.f32 %v325_v34, %v316_v24  ;;  %v335_v45 = vmul.f32 %v2447_v28, %v334_v37  ;;  %v338_v48 = vstv %s2388_s23  ;;  %v344_v46 = vstv %s2406_s24  ;;  %s2498_s10 = sld [smem:[#allocation6 + $0x7]] }
  0xa1   :  { %v331_v49 = vadd.f32 %v329_v36, %v321_v41  ;;  %v332_v50 = vadd.f32 %v330_v35, %v322_v42  ;;  %v339_v51 = vmul.f32 %v2471_v38, %v338_v48  ;;  %v340_v52 = vmul.f32 %v2460_v33, %v338_v48  ;;  %s2508_s23 = sld [smem:[#allocation2 + $0x8]]  ;;  %v2560_v35 = vld [vmem:[%s4253_s0 + $0x88] sm:$0x1] }
  0xa2   :  { %v336_v54 = vadd.f32 %v335_v45, %v326_v44  ;;  %v345_v55 = vmul.f32 %v2471_v38, %v344_v46  ;;  %v348_v56 = vstv %s2419_s27  ;;  %v354_v57 = vstv %s2436_s3  ;;  %s2517_s2 = sld [smem:[#allocation6 + $0x8]]  ;;  %v2570_v45 = vld [vmem:[%s4253_s0 + $0x80] sm:$0xff] }
  0xa3   :  { %v341_v59 = vadd.f32 %v339_v51, %v331_v49  ;;  %v342_v60 = vadd.f32 %v340_v52, %v332_v50  ;;  %v349_v61 = vmul.f32 %v2494_v47, %v348_v56  ;;  %v350_v62 = vmul.f32 %v2484_v43, %v348_v56  ;;  %s2527_s27 = sld [smem:[#allocation2 + $0x9]]  ;;  %v2579_v51 = vld [vmem:[%s4253_s0 + $0x98] sm:$0x1] }
  0xa4   :  { %v346_v0 = vadd.f32 %v345_v55, %v336_v54  ;;  %v355_v2 = vmul.f32 %v2494_v47, %v354_v57  ;;  %v358_v3 = vstv %s2442_s5  ;;  %v364_v4 = vstv %s2455_s14  ;;  %s2536_s30 = sld [smem:[#allocation6 + $0x9]]  ;;  %v2589_v57 = vld [vmem:[%s4253_s0 + $0x90] sm:$0xff] }
  0xa5   :  { %v351_v7 = vadd.f32 %v349_v61, %v341_v59  ;;  %v352_v16 = vadd.f32 %v350_v62, %v342_v60  ;;  %v359_v17 = vmul.f32 %v2513_v58, %v358_v3  ;;  %v360_v21 = vmul.f32 %v2503_v53, %v358_v3  ;;  %s2546_s5 = sld [smem:[#allocation2 + $0xa]] }
  0xa6   :  { %v356_v23 = vadd.f32 %v355_v2, %v346_v0  ;;  %v365_v24 = vmul.f32 %v2513_v58, %v364_v4  ;;  %v368_v25 = vstv %s2466_s8  ;;  %v374_v26 = vstv %s2479_s19  ;;  %s2555_s17 = sld [smem:[#allocation6 + $0xa]]  ;;  %v2598_v0 = vld [vmem:[%s4253_s0 + $0xa8] sm:$0x1] }
  0xa7   :  { %v361_v31 = vadd.f32 %v359_v17, %v351_v7  ;;  %v362_v32 = vadd.f32 %v360_v21, %v352_v16  ;;  %v369_v34 = vmul.f32 %v2532_v5, %v368_v25  ;;  %v370_v36 = vmul.f32 %v2522_v63, %v368_v25  ;;  %s2565_s8 = sld [smem:[#allocation2 + $0xb]]  ;;  %v2608_v16 = vld [vmem:[%s4253_s0 + $0xa0] sm:$0xff]  ;;  %v2617_v25 = vld [vmem:[%s4253_s0 + $0xb8] sm:$0x1] }
  0xa8   :  { %v366_v37 = vadd.f32 %v365_v24, %v356_v23  ;;  %v375_v41 = vmul.f32 %v2532_v5, %v374_v26  ;;  %v378_v42 = vstv %s2489_s20  ;;  %v384_v44 = vstv %s2498_s10  ;;  %s2574_s21 = sld [smem:[#allocation6 + $0xb]] }
  0xa9   :  { %v371_v48 = vadd.f32 %v369_v34, %v361_v31  ;;  %v372_v46 = vadd.f32 %v370_v36, %v362_v32  ;;  %v379_v49 = vmul.f32 %v2551_v27, %v378_v42  ;;  %v380_v50 = vmul.f32 %v2541_v22, %v378_v42  ;;  %s2584_s20 = sld [smem:[#allocation4]]  ;;  %v2627_v36 = vld [vmem:[%s4253_s0 + $0xb0] sm:$0xff] }
  0xaa   :  { %v376_v52 = vadd.f32 %v375_v41, %v366_v37  ;;  %v385_v54 = vmul.f32 %v2551_v27, %v384_v44  ;;  %v388_v55 = vstv %s2508_s23  ;;  %v394_v56 = vstv %s2517_s2  ;;  %s2593_s24 = sld [smem:[#allocation7]] }
  0xab   :  { %v381_v59 = vadd.f32 %v379_v49, %v371_v48  ;;  %v382_v60 = vadd.f32 %v380_v50, %v372_v46  ;;  %v389_v61 = vmul.f32 %v2570_v45, %v388_v55  ;;  %v390_v62 = vmul.f32 %v2560_v35, %v388_v55  ;;  %s2603_s23 = sld [smem:[#allocation2 + $0x80]]  ;;  %v2636_v48 = vld [vmem:[%s4254_s1 + $0x8] sm:$0x1] }
  0xac   :  { %v386_v2 = vadd.f32 %v385_v54, %v376_v52  ;;  %v395_v3 = vmul.f32 %v2570_v45, %v394_v56  ;;  %v398_v4 = vstv %s2527_s27  ;;  %v404_v7 = vstv %s2536_s30  ;;  %s2612_s29 = sld [smem:[#allocation6 + $0x80]]  ;;  %v2646_v54 = vld [vmem:[%s4254_s1] sm:$0xff] }
  0xad   :  { %v391_v17 = vadd.f32 %v389_v61, %v381_v59  ;;  %v392_v21 = vadd.f32 %v390_v62, %v382_v60  ;;  %v399_v23 = vmul.f32 %v2589_v57, %v398_v4  ;;  %v400_v24 = vmul.f32 %v2579_v51, %v398_v4  ;;  %s2622_s27 = sld [smem:[#allocation2 + $0x81]] }
  0xae   :  { %v396_v26 = vadd.f32 %v395_v3, %v386_v2  ;;  %v405_v31 = vmul.f32 %v2589_v57, %v404_v7  ;;  %v408_v32 = vstv %s2546_s5  ;;  %v414_v34 = vstv %s2555_s17  ;;  %s2631_s14 = sld [smem:[#allocation6 + $0x81]] }
  0xaf   :  { %v401_v37 = vadd.f32 %v399_v23, %v391_v17  ;;  %v402_v41 = vadd.f32 %v400_v24, %v392_v21  ;;  %v409_v42 = vmul.f32 %v2608_v16, %v408_v32  ;;  %v410_v44 = vmul.f32 %v2598_v0, %v408_v32  ;;  %s2641_s5 = sld [smem:[#allocation2 + $0x82]] }
  0xb0   :  { %v406_v46 = vadd.f32 %v405_v31, %v396_v26  ;;  %v415_v49 = vmul.f32 %v2608_v16, %v414_v34  ;;  %v418_v50 = vstv %s2565_s8  ;;  %v424_v52 = vstv %s2574_s21  ;;  %s2650_s19 = sld [smem:[#allocation6 + $0x82]] }
  0xb1   :  { %v411_v55 = vadd.f32 %v409_v42, %v401_v37  ;;  %v412_v56 = vadd.f32 %v410_v44, %v402_v41  ;;  %v419_v59 = vmul.f32 %v2627_v36, %v418_v50  ;;  %v420_v60 = vmul.f32 %v2617_v25, %v418_v50  ;;  %s2655_s8 = sld [smem:[#allocation2 + $0x83]] }
  0xb2   :  { %v416_v61 = vadd.f32 %v415_v49, %v406_v46  ;;  %v425_v62 = vmul.f32 %v2627_v36, %v424_v52  ;;  %v428_v2 = vstv %s2584_s20  ;;  %v434_v3 = vstv %s2593_s24  ;;  %s2659_s9 = sld [smem:[#allocation6 + $0x83]] }
  0xb3   :  { %v421_v4 = vadd.f32 %v419_v59, %v411_v55  ;;  %v422_v7 = vadd.f32 %v420_v60, %v412_v56  ;;  %v429_v17 = vmul.f32 %v428_v2, %v2646_v54  ;;  %v430_v21 = vmul.f32 %v428_v2, %v2636_v48  ;;  %s2664_s21 = sld [smem:[#allocation2 + $0x84]] }
  0xb4   :  { %v426_v23 = vadd.f32 %v425_v62, %v416_v61  ;;  %v435_v24 = vmul.f32 %v434_v3, %v2646_v54  ;;  %v508_v26 = vstv %s2603_s23  ;;  %v512_v31 = vstv %s2612_s29  ;;  %s2668_s22 = sld [smem:[#allocation6 + $0x84]] }
  0xb5   :  { %v431_v32 = vadd.f32 %v429_v17, %v421_v4  ;;  %v432_v34 = vadd.f32 %v430_v21, %v422_v7  ;;  %v509_v37 = vmul.f32 %v508_v26, %v2396_v9  ;;  %v510_v41 = vmul.f32 %v508_v26, %v2385_v6  ;;  %s2673_s11 = sld [smem:[#allocation2 + $0x85]] }
  0xb6   :  { %v436_v42 = vadd.f32 %v435_v24, %v426_v23  ;;  %v513_v44 = vmul.f32 %v512_v31, %v2396_v9  ;;  %v515_v46 = vstv %s2622_s27  ;;  %v521_v49 = vstv %s2631_s14  ;;  %s2679_s20 = sld [smem:[#allocation6 + $0x85]] }
  0xb7   :  { %v516_v50 = vmul.f32 %v2424_v18, %v515_v46  ;;  %v517_v52 = vmul.f32 %v2411_v1, %v515_v46  ;;  %v522_v55 = vmul.f32 %v2424_v18, %v521_v49  ;;  %v525_v56 = vstv %s2641_s5  ;;  %s2685_s10 = sld [smem:[#allocation2 + $0x86]] }
  0xb8   :  { %v440_v59 = vrot.slane %v436_v42, %v2391_v8  ;;  %v526_v60 = vmul.f32 %v2447_v28, %v525_v56  ;;  %v527_v61 = vmul.f32 %v2429_v19, %v525_v56  ;;  %v531_v62 = vstv %s2650_s19  ;;  %s2688_s25 = sld [smem:[#allocation6 + $0x86]] }
  0xb9   :  { %v518_v2 = vadd.f32 %v516_v50, %v509_v37  ;;  %v519_v3 = vadd.f32 %v517_v52, %v510_v41  ;;  %v523_v4 = vadd.f32 %v522_v55, %v513_v44  ;;  %v532_v7 = vmul.f32 %v2447_v28, %v531_v62  ;;  %s2692_s24 = sld [smem:[#allocation2 + $0x87]] }
  0xba   :  { %v441_v17 = vmul.f32 %v440_v59, %v431_v32  ;;  %v442_v21 = vmul.f32 %v440_v59, %v432_v34  ;;  %v535_v23 = vstv %s2655_s8  ;;  %v541_v24 = vstv %s2659_s9  ;;  %s2695_s26 = sld [smem:[#allocation6 + $0x87]] }
  0xbb   :  { %v528_v26 = vadd.f32 %v526_v60, %v518_v2  ;;  %v529_v31 = vadd.f32 %v527_v61, %v519_v3  ;;  %v533_v42 = vadd.f32 %v532_v7, %v523_v4  ;;  %v536_v37 = vmul.f32 %v2471_v38, %v535_v23  ;;  %s2705_s4 = sld [smem:[#allocation2 + $0x88]] }
  0xbc   :  { %v2698_v41 = vadd.f32 %v441_v17, %v2398_v10  ;;  %v2701_v32 = vadd.f32 %v442_v21, %v2400_v11  ;;  %v537_v34 = vmul.f32 %v2460_v33, %v535_v23  ;;  %v542_v44 = vmul.f32 %v2471_v38, %v541_v24  ;;  %s2717_s23 = sld [smem:[#allocation6 + $0x88]] }
  0xbd   :  { %v538_v46 = vadd.f32 %v536_v37, %v528_v26  ;;  %v545_v49 = vstv %s2664_s21  ;;  %v551_v50 = vstv %s2668_s22  ;;  %v555_v52 = vstv %s2673_s11  ;;  %s2723_s2 = sld [smem:[#allocation2 + $0x89]] }
  0xbe   :  { %v446_v55 = vsel %vm445_vm2, %v2698_v41, -inf  ;;  %v448_v10 = vsel %vm447_vm3, %v2701_v32, -inf  ;;  %v539_v11 = vadd.f32 %v537_v34, %v529_v31  ;;  %v543_v56 = vadd.f32 %v542_v44, %v533_v42  ;;  %s2725_s28 = sld [smem:[#allocation6 + $0x89]] }
  0xbf   :  { %v449_v59 = vmax.f32 %v446_v55, %v448_v10  ;;  %v546_v60 = vmul.f32 %v2494_v47, %v545_v49  ;;  %v547_v61 = vmul.f32 %v2484_v43, %v545_v49  ;;  %v552_v62 = vmul.f32 %v2494_v47, %v551_v50  ;;  %s2731_s29 = sld [smem:[#allocation2 + $0x8a]] }
  0xc0   :  { %v556_v2 = vmul.f32 %v2513_v58, %v555_v52  ;;  %v557_v3 = vmul.f32 %v2503_v53, %v555_v52  ;;  %v561_v4 = vstv %s2679_s20  ;;  %v565_v7 = vstv %s2685_s10  ;;  %s2734_s3 = sld [smem:[#allocation6 + $0x8a]] }
  0xc1   :  { %v450_v17 = vrot.slane %v449_v59, 4  ;;  %v548_v21 = vadd.f32 %v546_v60, %v538_v46  ;;  %v549_v23 = vadd.f32 %v547_v61, %v539_v11  ;;  %v553_v24 = vadd.f32 %v552_v62, %v543_v56  ;;  %s2739_s13 = sld [smem:[#allocation2 + $0x8b]] }
  0xc2   :  { %v562_v26 = vmul.f32 %v2513_v58, %v561_v4  ;;  %v566_v31 = vmul.f32 %v2532_v5, %v565_v7  ;;  %v567_v42 = vmul.f32 %v2522_v63, %v565_v7  ;;  %v571_v37 = vstv %s2688_s25  ;;  %s2742_s27 = sld [smem:[#allocation6 + $0x8b]] }
  0xc3   :  { %v451_v34 = vmax.f32 %v449_v59, %v450_v17  ;;  %v558_v44 = vadd.f32 %v556_v2, %v548_v21  ;;  %v559_v49 = vadd.f32 %v557_v3, %v549_v23  ;;  %v572_v46 = vmul.f32 %v2532_v5, %v571_v37  ;;  %s2747_s30 = sld [smem:[#allocation4 + $0x1]] }
  0xc4   :  { %v563_v50 = vadd.f32 %v562_v26, %v553_v24  ;;  %v575_v52 = vstv %s2692_s24  ;;  %v581_v55 = vstv %s2695_s26  ;;  %v585_v10 = vstv %s2705_s4  ;;  %s2751_s15 = sld [smem:[#allocation7 + $0x1]] }
  0xc5   :  { %v452_v11 = vrot.slane %v451_v34, 2  ;;  %v568_v56 = vadd.f32 %v566_v31, %v558_v44  ;;  %v569_v60 = vadd.f32 %v567_v42, %v559_v49  ;;  %v576_v61 = vmul.f32 %v2551_v27, %v575_v52  ;;  %s2755_s14 = sld [smem:[#allocation2 + $0x100]] }
  0xc6   :  { %v573_v59 = vadd.f32 %v572_v46, %v563_v50  ;;  %v577_v62 = vmul.f32 %v2541_v22, %v575_v52  ;;  %v582_v2 = vmul.f32 %v2551_v27, %v581_v55  ;;  %v586_v3 = vmul.f32 %v2570_v45, %v585_v10  ;;  %s2759_s6 = sld [smem:[#allocation6 + $0x100]] }
  0xc7   :  { %v453_v4 = vmax.f32 %v451_v34, %v452_v11  ;;  %v578_v7 = vadd.f32 %v576_v61, %v568_v56  ;;  %v587_v17 = vmul.f32 %v2560_v35, %v585_v10  ;;  %v591_v21 = vstv %s2717_s23  ;;  %s2763_s18 = sld [smem:[#allocation2 + $0x101]] }
  0xc8   :  { %v579_v23 = vadd.f32 %v577_v62, %v569_v60  ;;  %v583_v24 = vadd.f32 %v582_v2, %v573_v59  ;;  %v592_v26 = vmul.f32 %v2570_v45, %v591_v21  ;;  %v595_v31 = vstv %s2723_s2  ;;  %s2767_s5 = sld [smem:[#allocation6 + $0x101]] }
  0xc9   :  { %v454_v42 = vrot.slane %v453_v4, 1  ;;  %v588_v37 = vadd.f32 %v586_v3, %v578_v7  ;;  %v596_v34 = vmul.f32 %v2589_v57, %v595_v31  ;;  %v597_v44 = vmul.f32 %v2579_v51, %v595_v31  ;;  %s2772_s17 = sld [smem:[#allocation2 + $0x102]] }
  0xca   :  { %v589_v49 = vadd.f32 %v587_v17, %v579_v23  ;;  %v593_v46 = vadd.f32 %v592_v26, %v583_v24  ;;  %v601_v50 = vstv %s2725_s28  ;;  %v605_v52 = vstv %s2731_s29  ;;  %s2776_s7 = sld [smem:[#allocation6 + $0x102]] }
  0xcb   :  { %v455_v55 = vmax.f32 %v453_v4, %v454_v42  ;;  %v598_v10 = vadd.f32 %v596_v34, %v588_v37  ;;  %v602_v11 = vmul.f32 %v2589_v57, %v601_v50  ;;  %v606_v56 = vmul.f32 %v2608_v16, %v605_v52  ;;  %s2781_s19 = sld [smem:[#allocation2 + $0x103]] }
  0xcc   :  { %v599_v60 = vadd.f32 %v597_v44, %v589_v49  ;;  %v607_v61 = vmul.f32 %v2598_v0, %v605_v52  ;;  %v611_v59 = vstv %s2734_s3  ;;  %v615_v62 = vstv %s2739_s13  ;;  %s2785_s8 = sld [smem:[#allocation6 + $0x103]] }
  0xcd   :  { %v456_v2 = vsub.f32 %v2698_v41, %v455_v55  ;;  %v457_v3 = vsub.f32 %v2701_v32, %v455_v55  ;;  %v603_v4 = vadd.f32 %v602_v11, %v593_v46  ;;  %v608_v7 = vadd.f32 %v606_v56, %v598_v10  ;;  %s2788_s9 = sld [smem:[#allocation2 + $0x104]] }
  0xce   :  { %v609_v17 = vadd.f32 %v607_v61, %v599_v60  ;;  %v612_v21 = vmul.f32 %v2608_v16, %v611_v59  ;;  %v616_v23 = vmul.f32 %v2627_v36, %v615_v62  ;;  %v617_v24 = vmul.f32 %v2617_v25, %v615_v62  ;;  %s2793_s21 = sld [smem:[#allocation6 + $0x104]] }
  0xcf   :  { %v458_v26 = vmul.f32 1.442695, %v456_v2  ;;  %v460_v31 = vmul.f32 1.442695, %v457_v3  ;;  %v621_v42 = vstv %s2742_s27  ;;  %v625_v41 = vstv %s2747_s30  ;;  %s2797_s22 = sld [smem:[#allocation2 + $0x105]] }
  0xd0   :  { %v613_v32 = vadd.f32 %v612_v21, %v603_v4  ;;  %v618_v37 = vadd.f32 %v616_v23, %v608_v7  ;;  %v619_v34 = vadd.f32 %v617_v24, %v609_v17  ;;  %v622_v44 = vmul.f32 %v2627_v36, %v621_v42  ;;  %s2801_s11 = sld [smem:[#allocation6 + $0x105]] }
  0xd1   :  { %2020 = vpow2.f32 %v458_v26  ;;  %v626_v49 = vmul.f32 %v625_v41, %v2646_v54  ;;  %v627_v46 = vmul.f32 %v625_v41, %v2636_v48  ;;  %v631_v50 = vstv %s2751_s15  ;;  %s2806_s20 = sld [smem:[#allocation2 + $0x106]] }
  0xd2   :  { %2022 = vpow2.f32 %v460_v31  ;;  %v623_v52 = vadd.f32 %v622_v44, %v613_v32  ;;  %v632_v55 = vmul.f32 %v631_v50, %v2646_v54  ;;  %v703_v10 = vstv %s2755_s14  ;;  %s2812_s10 = sld [smem:[#allocation6 + $0x106]] }
  0xd3   :  { %v628_v11 = vadd.f32 %v626_v49, %v618_v37  ;;  %v629_v56 = vadd.f32 %v627_v46, %v619_v34  ;;  %v704_v60 = vmul.f32 %v703_v10, %v2396_v9  ;;  %v705_v61 = vmul.f32 %v703_v10, %v2385_v6  ;;  %s2818_s25 = sld [smem:[#allocation2 + $0x107]] }
  0xd4   :  { %v633_v59 = vadd.f32 %v632_v55, %v623_v52  ;;  %v707_v62 = vstv %s2759_s6  ;;  %v710_v2 = vstv %s2763_s18  ;;  %v716_v3 = vstv %s2767_s5  ;;  %s2821_s24 = sld [smem:[#allocation6 + $0x107]] }
  0xd5   :  { %v708_v4 = vmul.f32 %v707_v62, %v2396_v9  ;;  %v711_v7 = vmul.f32 %v2424_v18, %v710_v2  ;;  %v712_v17 = vmul.f32 %v2411_v1, %v710_v2  ;;  %v717_v21 = vmul.f32 %v2424_v18, %v716_v3  ;;  %s2825_s26 = sld [smem:[#allocation2 + $0x108]] }
  0xd6   :  { %v637_v23 = vrot.slane %v633_v59, %v2391_v8  ;;  %v720_v24 = vstv %s2772_s17  ;;  %v726_v26 = vstv %s2776_s7  ;;  %v730_v31 = vstv %s2781_s19  ;;  %s2830_s4 = sld [smem:[#allocation6 + $0x108]] }
  0xd7   :  { %v713_v42 = vadd.f32 %v711_v7, %v704_v60  ;;  %v714_v41 = vadd.f32 %v712_v17, %v705_v61  ;;  %v718_v32 = vadd.f32 %v717_v21, %v708_v4  ;;  %v721_v37 = vmul.f32 %v2447_v28, %v720_v24  ;;  %s2838_s23 = sld [smem:[#allocation2 + $0x109]] }
  0xd8   :  { %v638_v34 = vmul.f32 %v637_v23, %v628_v11  ;;  %v639_v44 = vmul.f32 %v637_v23, %v629_v56  ;;  %v722_v49 = vmul.f32 %v2429_v19, %v720_v24  ;;  %v727_v46 = vmul.f32 %v2447_v28, %v726_v26  ;;  %s2843_s2 = sld [smem:[#allocation6 + $0x109]] }
  0xd9   :  { %v723_v50 = vadd.f32 %v721_v37, %v713_v42  ;;  %v731_v52 = vmul.f32 %v2471_v38, %v730_v31  ;;  %v732_v55 = vmul.f32 %v2460_v33, %v730_v31  ;;  %v736_v10 = vstv %s2785_s8  ;;  %s2850_s28 = sld [smem:[#allocation2 + $0x10a]] }
  0xda   :  { %v2833_v60 = vadd.f32 %v638_v34, %v2402_v12  ;;  %v2836_v11 = vadd.f32 %v639_v44, %v2404_v13  ;;  %v724_v56 = vadd.f32 %v722_v49, %v714_v41  ;;  %v728_v61 = vadd.f32 %v727_v46, %v718_v32  ;;  %s2854_s29 = sld [smem:[#allocation6 + $0x10a]] }
  0xdb   :  { %v733_v59 = vadd.f32 %v731_v52, %v723_v50  ;;  %v737_v62 = vmul.f32 %v2471_v38, %v736_v10  ;;  %v740_v2 = vstv %s2788_s9  ;;  %v746_v3 = vstv %s2793_s21  ;;  %s2861_s3 = sld [smem:[#allocation2 + $0x10b]] }
  0xdc   :  { %v642_v12 = vsel %vm445_vm2, %v2833_v60, -inf  ;;  %v643_v13 = vsel %vm447_vm3, %v2836_v11, -inf  ;;  %v734_v4 = vadd.f32 %v732_v55, %v724_v56  ;;  %v741_v7 = vmul.f32 %v2494_v47, %v740_v2  ;;  %s2867_s13 = sld [smem:[#allocation6 + $0x10b]] }
  0xdd   :  { %v644_v17 = vmax.f32 %v642_v12, %v643_v13  ;;  %v738_v21 = vadd.f32 %v737_v62, %v728_v61  ;;  %v742_v23 = vmul.f32 %v2484_v43, %v740_v2  ;;  %v747_v24 = vmul.f32 %v2494_v47, %v746_v3  ;;  %s2874_s27 = sld [smem:[#allocation4 + $0x2]] }
  0xde   :  { %v2856_v26 = vpop.eup %2020  ;;  %v743_v31 = vadd.f32 %v741_v7, %v733_v59  ;;  %v750_v42 = vstv %s2797_s22  ;;  %v756_v41 = vstv %s2801_s11  ;;  %v760_v32 = vstv %s2806_s20  ;;  %s2878_s30 = sld [smem:[#allocation7 + $0x2]] }
  0xdf   :  { %v2863_v37 = vpop.eup %2022  ;;  %v462_v34 = vsel %vm445_vm2, %v2856_v26, 0.0  ;;  %v645_v44 = vrot.slane %v644_v17, 4  ;;  %v744_v49 = vadd.f32 %v742_v23, %v734_v4  ;;  %v748_v46 = vadd.f32 %v747_v24, %v738_v21  ;;  %s2881_s15 = sld [smem:[#allocation2 + $0x180]] }
  0xe0   :  { %v463_v50 = vsel %vm447_vm3, %v2863_v37, 0.0  ;;  %v751_v52 = vmul.f32 %v2513_v58, %v750_v42  ;;  %v752_v55 = vmul.f32 %v2503_v53, %v750_v42  ;;  %v757_v10 = vmul.f32 %v2513_v58, %v756_v41  ;;  %s2885_s14 = sld [smem:[#allocation6 + $0x180]] }
  0xe1   :  { %v464_v56 = vadd.f32 %v463_v50, %v462_v34  ;;  %v646_v61 = vmax.f32 %v644_v17, %v645_v44  ;;  %v761_v59 = vmul.f32 %v2532_v5, %v760_v32  ;;  %v762_v62 = vmul.f32 %v2522_v63, %v760_v32  ;;  %s2889_s6 = sld [smem:[#allocation2 + $0x181]] }
  0xe2   :  { %v753_v2 = vadd.f32 %v751_v52, %v743_v31  ;;  %v754_v3 = vadd.f32 %v752_v55, %v744_v49  ;;  %v758_v12 = vadd.f32 %v757_v10, %v748_v46  ;;  %v766_v13 = vstv %s2812_s10  ;;  %s2892_s18 = sld [smem:[#allocation6 + $0x181]] }
  0xe3   :  { %v465_v53 = vrot.slane %v464_v56, 4  ;;  %v647_v4 = vrot.slane %v646_v61, 2  ;;  %v767_v58 = vmul.f32 %v2532_v5, %v766_v13  ;;  %v770_v7 = vstv %s2818_s25  ;;  %s2896_s5 = sld [smem:[#allocation2 + $0x182]] }
  0xe4   :  { %v763_v17 = vadd.f32 %v761_v59, %v753_v2  ;;  %v764_v21 = vadd.f32 %v762_v62, %v754_v3  ;;  %v771_v63 = vmul.f32 %v2551_v27, %v770_v7  ;;  %v772_v23 = vmul.f32 %v2541_v22, %v770_v7  ;;  %s2900_s17 = sld [smem:[#allocation6 + $0x182]] }
  0xe5   :  { %v466_v24 = vadd.f32 %v465_v53, %v464_v56  ;;  %v648_v31 = vmax.f32 %v646_v61, %v647_v4  ;;  %v768_v42 = vadd.f32 %v767_v58, %v758_v12  ;;  %v776_v41 = vstv %s2821_s24  ;;  %s2905_s7 = sld [smem:[#allocation2 + $0x183]] }
  0xe6   :  { %v773_v5 = vadd.f32 %v771_v63, %v763_v17  ;;  %v774_v32 = vadd.f32 %v772_v23, %v764_v21  ;;  %v777_v34 = vmul.f32 %v2551_v27, %v776_v41  ;;  %v780_v44 = vstv %s2825_s26  ;;  %s2907_s19 = sld [smem:[#allocation6 + $0x183]] }
  0xe7   :  { %v467_v49 = vrot.slane %v466_v24, 2  ;;  %v649_v22 = vrot.slane %v648_v31, 1  ;;  %v781_v46 = vmul.f32 %v2570_v45, %v780_v44  ;;  %v782_v50 = vmul.f32 %v2560_v35, %v780_v44  ;;  %s2913_s8 = sld [smem:[#allocation2 + $0x184]] }
  0xe8   :  { %v778_v52 = vadd.f32 %v777_v34, %v768_v42  ;;  %v786_v55 = vstv %s2830_s4  ;;  %v790_v10 = vstv %s2838_s23  ;;  %v796_v56 = vstv %s2843_s2  ;;  %s2918_s9 = sld [smem:[#allocation6 + $0x184]] }
  0xe9   :  { %v468_v61 = vadd.f32 %v467_v49, %v466_v24  ;;  %v650_v27 = vmax.f32 %v648_v31, %v649_v22  ;;  %v783_v59 = vadd.f32 %v781_v46, %v773_v5  ;;  %v784_v62 = vadd.f32 %v782_v50, %v774_v32  ;;  %s2921_s21 = sld [smem:[#allocation2 + $0x185]] }
  0xea   :  { %v787_v2 = vmul.f32 %v2570_v45, %v786_v55  ;;  %v791_v3 = vmul.f32 %v2589_v57, %v790_v10  ;;  %v792_v12 = vmul.f32 %v2579_v51, %v790_v10  ;;  %v797_v13 = vmul.f32 %v2589_v57, %v796_v56  ;;  %s2924_s22 = sld [smem:[#allocation6 + $0x185]] }
  0xeb   :  { %v469_v53 = vrot.slane %v468_v61, 1  ;;  %v651_v4 = vsub.f32 %v2833_v60, %v650_v27  ;;  %v652_v58 = vsub.f32 %v2836_v11, %v650_v27  ;;  %v800_v7 = vstv %s2850_s28  ;;  %s2928_s11 = sld [smem:[#allocation2 + $0x186]] }
  0xec   :  { %v788_v17 = vadd.f32 %v787_v2, %v778_v52  ;;  %v793_v21 = vadd.f32 %v791_v3, %v783_v59  ;;  %v794_v63 = vadd.f32 %v792_v12, %v784_v62  ;;  %v801_v23 = vmul.f32 %v2608_v16, %v800_v7  ;;  %s2932_s20 = sld [smem:[#allocation6 + $0x186]] }
  0xed   :  { %v470_v51 = vadd.f32 %v469_v53, %v468_v61  ;;  %v653_v57 = vmul.f32 1.442695, %v651_v4  ;;  %v655_v24 = vmul.f32 1.442695, %v652_v58  ;;  %v802_v60 = vmul.f32 %v2598_v0, %v800_v7  ;;  %s2937_s10 = sld [smem:[#allocation2 + $0x187]] }
  0xee   :  { %v798_v11 = vadd.f32 %v797_v13, %v788_v17  ;;  %v803_v31 = vadd.f32 %v801_v23, %v793_v21  ;;  %v806_v42 = vstv %s2854_s29  ;;  %v810_v41 = vstv %s2861_s3  ;;  %s2940_s25 = sld [smem:[#allocation6 + $0x187]] }
  0xef   :  { %2024 = vrcp.f32 %v470_v51  ;;  %v804_v5 = vadd.f32 %v802_v60, %v794_v63  ;;  %v807_v32 = vmul.f32 %v2608_v16, %v806_v42  ;;  %v811_v34 = vmul.f32 %v2627_v36, %v810_v41  ;;  %s2945_s24 = sld [smem:[#allocation2 + $0x188]] }
  0xf0   :  { %2026 = vpow2.f32 %v653_v57  ;;  %v812_v0 = vmul.f32 %v2617_v25, %v810_v41  ;;  %v816_v44 = vstv %s2867_s13  ;;  %v820_v49 = vstv %s2874_s27  ;;  %s2950_s26 = sld [smem:[#allocation6 + $0x188]] }
  0xf1   :  { %2028 = vpow2.f32 %v655_v24  ;;  %v808_v22 = vadd.f32 %v807_v32, %v798_v11  ;;  %v813_v46 = vadd.f32 %v811_v34, %v803_v31  ;;  %v817_v50 = vmul.f32 %v2627_v36, %v816_v44  ;;  %s2954_s4 = sld [smem:[#allocation2 + $0x189]] }
  0xf2   :  { %v814_v16 = vadd.f32 %v812_v0, %v804_v5  ;;  %v821_v52 = vmul.f32 %v820_v49, %v2646_v54  ;;  %v822_v55 = vmul.f32 %v820_v49, %v2636_v48  ;;  %v826_v25 = vstv %s2878_s30  ;;  %s2959_s23 = sld [smem:[#allocation6 + $0x189]] }
  0xf3   :  { %v818_v10 = vadd.f32 %v817_v50, %v808_v22  ;;  %v827_v56 = vmul.f32 %v826_v25, %v2646_v54  ;;  %v898_v61 = vstv %s2881_s15  ;;  %v902_v27 = vstv %s2885_s14  ;;  %s2965_s2 = sld [smem:[#allocation2 + $0x18a]] }
  0xf4   :  { %v823_v36 = vadd.f32 %v821_v52, %v813_v46  ;;  %v824_v59 = vadd.f32 %v822_v55, %v814_v16  ;;  %v899_v62 = vmul.f32 %v898_v61, %v2396_v9  ;;  %v900_v2 = vmul.f32 %v898_v61, %v2385_v6  ;;  %s2971_s28 = sld [smem:[#allocation6 + $0x18a]]  ;;  %v2045_v52 = vld [vmem:[%s4253_s0 + $0x8] sm:$0x1] }
  0xf5   :  { %v828_v48 = vadd.f32 %v827_v56, %v818_v10  ;;  %v903_v3 = vmul.f32 %v902_v27, %v2396_v9  ;;  %v905_v12 = vstv %s2889_s6  ;;  %v911_v13 = vstv %s2892_s18  ;;  %s2974_s29 = sld [smem:[#allocation2 + $0x18b]] }
  0xf6   :  { %v906_v54 = vmul.f32 %v2424_v18, %v905_v12  ;;  %v907_v53 = vmul.f32 %v2411_v1, %v905_v12  ;;  %v912_v4 = vmul.f32 %v2424_v18, %v911_v13  ;;  %v915_v58 = vstv %s2896_s5  ;;  %s2978_s3 = sld [smem:[#allocation6 + $0x18b]] }
  0xf7   :  { %v832_v6 = vrot.slane %v828_v48, %v2391_v8  ;;  %v916_v7 = vmul.f32 %v2447_v28, %v915_v58  ;;  %v917_v9 = vmul.f32 %v2429_v19, %v915_v58  ;;  %v921_v17 = vstv %s2900_s17  ;;  %s2985_s13 = sld [smem:[#allocation4 + $0x3]] }
  0xf8   :  { %v908_v21 = vadd.f32 %v906_v54, %v899_v62  ;;  %v909_v63 = vadd.f32 %v907_v53, %v900_v2  ;;  %v913_v23 = vadd.f32 %v912_v4, %v903_v3  ;;  %v922_v1 = vmul.f32 %v2447_v28, %v921_v17  ;;  %s2994_s27 = sld [smem:[#allocation7 + $0x3]]  ;;  %v2046_v54 = vld [vmem:[%s4253_s0 + $0x40] sm:$0xff] }
  0xf9   :  { %v833_v18 = vmul.f32 %v832_v6, %v823_v36  ;;  %v834_v51 = vmul.f32 %v832_v6, %v824_v59  ;;  %v925_v57 = vstv %s2905_s7  ;;  %v931_v24 = vstv %s2907_s19  ;;  %s2999_s30 = sld [smem:[#allocation15]] }
  0xfa   :  { %v2982_v19 = vadd.f32 %v2474_v39, %v2431_v20  ;;  %v918_v60 = vadd.f32 %v916_v7, %v908_v21  ;;  %v919_v11 = vadd.f32 %v917_v9, %v909_v63  ;;  %v926_v31 = vmul.f32 %v2471_v38, %v925_v57  ;;  %s3009_s15 = sld [smem:[#allocation15 + $0x1]]  ;;  %v2047_v7 = vld [vmem:[%s4253_s0 + $0x48] sm:$0x1] }
  0xfb   :  { %v2988_v28 = vadd.f32 %v833_v18, %v2413_v14  ;;  %v2991_v42 = vadd.f32 %v834_v51, %v2415_v15  ;;  %v923_v41 = vadd.f32 %v922_v1, %v913_v23  ;;  %v927_v5 = vmul.f32 %v2460_v33, %v925_v57  ;;  %s3016_s14 = sld [smem:[#allocation15 + $0x2]] }
  0xfc   :  { %v2025_v32 = vpop.eup %2024  ;;  %v928_v20 = vadd.f32 %v926_v31, %v918_v60  ;;  %v932_v39 = vmul.f32 %v2471_v38, %v931_v24  ;;  %v935_v34 = vstv %s2913_s8  ;;  %v941_v0 = vstv %s2918_s9  ;;  %s3026_s7 = sld [smem:[#allocation15 + $0x3]]  ;;  %v3061_v31 = vld [vmem:[%s4253_s0 + $0x50] sm:$0xff] }
  0xfd   :  { %v3001_v44 = vpop.eup %2026  ;;  %v472_v14 = vmul.f32 %v2025_v32, %v2856_v26  ;;  %v473_v15 = vmul.f32 %v2025_v32, %v2863_v37  ;;  %v837_v33 = vsel %vm445_vm2, %v2988_v28, -inf  ;;  %v838_v49 = vsel %vm447_vm3, %v2991_v42, -inf  ;;  %v2044_v26 = vld [vmem:[%s4253_s0] sm:$0xff]  ;;  %s3032_s19 = sld [smem:[#allocation15 + $0x4]] }
  0xfe   :  { %v3011_v22 = vpop.eup %2028  ;;  %v657_v38 = vsel %vm445_vm2, %v3001_v44, 0.0  ;;  %v839_v46 = vmax.f32 %v837_v33, %v838_v49  ;;  %v929_v50 = vadd.f32 %v927_v5, %v919_v11  ;;  %v945_v16 = vstv %s2921_s21  ;;  %s3038_s8 = sld [smem:[#allocation15 + $0x5]] }
  0xff   :  { %v474_v37 = vmul.f32 %v2044_v26, %v472_v14  ;;  %v475_v55 = vmul.f32 %v2045_v52, %v473_v15  ;;  %v485_v25 = vmul.f32 %v2494_v47, %v472_v14  ;;  %v486_v10 = vmul.f32 %v2484_v43, %v473_v15  ;;  %s3042_s9 = sld [smem:[#allocation15 + $0x6]] }
 0x100   :  { %v496_v56 = vmul.f32 %v2570_v45, %v472_v14  ;;  %v497_v61 = vmul.f32 %v2560_v35, %v473_v15  ;;  %v658_v27 = vsel %vm447_vm3, %v3011_v22, 0.0  ;;  %v840_v36 = vrot.slane %v839_v46, 4  ;;  %s3047_s18 = sld [smem:[#allocation15 + $0x7]] }
 0x101   :  { %4316 = sst [smem:[#allocation24_spill]] %s3016_s14  ;;  %v476_v59 = vsel %vm445_vm2, %v474_v37, 0.0  ;;  %v477_v62 = vsel %vm447_vm3, %v475_v55, 0.0  ;;  %v487_v47 = vsel %vm445_vm2, %v485_v25, 0.0  ;;  %v488_v43 = vsel %vm447_vm3, %v486_v10, 0.0 }
 0x102   :  { %4317 = sst [smem:[#allocation25_spill]] %s3026_s7  ;;  %v478_v2 = vadd.f32 %v477_v62, %v476_v59  ;;  %v489_v45 = vadd.f32 %v488_v43, %v487_v47  ;;  %v498_v35 = vsel %vm445_vm2, %v496_v56, 0.0  ;;  %v499_v48 = vsel %vm447_vm3, %v497_v61, 0.0  ;;  %v3094_v56 = vld [vmem:[%s4253_s0 + $0x60] sm:$0xff]  ;;  %v3110_v43 = vld [vmem:[%s4253_s0 + $0x68] sm:$0x1] }
 0x103   :  { %v500_v3 = vadd.f32 %v499_v48, %v498_v35  ;;  %v659_v12 = vadd.f32 %v658_v27, %v657_v38  ;;  %v841_v13 = vmax.f32 %v839_v46, %v840_v36  ;;  %v936_v53 = vmul.f32 %v2046_v54, %v935_v34  ;;  %s3052_s12 = sld [smem:[#allocation15 + $0x8]] }
 0x104   :  { %v479_v4 = vrot.slane %v478_v2, 4  ;;  %v490_v58 = vrot.slane %v489_v45, 4  ;;  %v933_v6 = vadd.f32 %v932_v39, %v923_v41  ;;  %v937_v9 = vmul.f32 %v2047_v7, %v935_v34  ;;  %s3056_s21 = sld [smem:[#allocation15 + $0xa]] }
 0x105   :  { %4318 = sst [smem:[#allocation26_spill]] %s3042_s9  ;;  %v501_v17 = vrot.slane %v500_v3, 4  ;;  %v660_v21 = vrot.slane %v659_v12, 4  ;;  %v842_v63 = vrot.slane %v841_v13, 2  ;;  %v942_v23 = vmul.f32 %v2046_v54, %v941_v0 }
 0x106   :  { %4319 = sst [smem:[#allocation27_spill]] %s3047_s18  ;;  %v480_v1 = vadd.f32 %v479_v4, %v478_v2  ;;  %v491_v18 = vadd.f32 %v490_v58, %v489_v45  ;;  %v938_v51 = vadd.f32 %v936_v53, %v928_v20  ;;  %v939_v57 = vadd.f32 %v937_v9, %v929_v50  ;;  %v3069_v20 = vld [vmem:[%s4253_s0 + $0x58] sm:$0x1]  ;;  %v3126_v53 = vld [vmem:[%s4253_s0 + $0x70] sm:$0xff] }
 0x107   :  { %s3054_s9 = sld [smem:[#allocation15 + $0x9]]  ;;  %v502_v24 = vadd.f32 %v501_v17, %v500_v3  ;;  %v661_v60 = vadd.f32 %v660_v21, %v659_v12  ;;  %v843_v11 = vmax.f32 %v841_v13, %v842_v63  ;;  %v946_v41 = vmul.f32 %v3061_v31, %v945_v16  ;;  %v3132_v58 = vld [vmem:[%s4253_s0 + $0x78] sm:$0x1] }
 0x108   :  { %s3064_s17 = sld [smem:[#allocation15 + $0xb]]  ;;  %v481_v5 = vrot.slane %v480_v1, 2  ;;  %v492_v32 = vrot.slane %v491_v18, 2  ;;  %v947_v39 = vmul.f32 %v3069_v20, %v945_v16  ;;  %v951_v34 = vstv %s2924_s22 }
 0x109   :  { %v503_v0 = vrot.slane %v502_v24, 2  ;;  %v662_v14 = vrot.slane %v661_v60, 2  ;;  %v844_v15 = vrot.slane %v843_v11, 1  ;;  %v943_v33 = vadd.f32 %v942_v23, %v933_v6  ;;  %s3075_s6 = sld [smem:[#allocation15 + $0x81]] }
 0x10a   :  { %4321 = sst [smem:[#allocation29_spill]] %s3056_s21  ;;  %v482_v49 = vadd.f32 %v481_v5, %v480_v1  ;;  %v3077_v38 = vadd.f32 %v492_v32, %v491_v18  ;;  %v948_v46 = vadd.f32 %v946_v41, %v938_v51  ;;  %v952_v50 = vmul.f32 %v3061_v31, %v951_v34  ;;  %v2054_v1 = vld [vmem:[%s4253_s0 + $0x80] sm:$0xff]  ;;  %v2055_v51 = vld [vmem:[%s4253_s0 + $0x88] sm:$0x1]  ;;  %v3156_v41 = vld [vmem:[%s4253_s0 + $0x90] sm:$0xff] }
 0x10b   :  { %s3073_s21 = sld [smem:[#allocation15 + $0x80]]  ;;  %v3082_v26 = vadd.f32 %v503_v0, %v502_v24  ;;  %v663_v16 = vadd.f32 %v662_v14, %v661_v60  ;;  %v845_v37 = vmax.f32 %v843_v11, %v844_v15  ;;  %v955_v52 = vstv %s2928_s11  ;;  %v3162_v32 = vld [vmem:[%s4253_s0 + $0x98] sm:$0x1] }
 0x10c   :  { %s3085_s22 = sld [smem:[#allocation15 + $0x82]]  ;;  %v3089_v55 = vadd.f32 %v2477_v40, %v2450_v29  ;;  %v483_v25 = vrot.slane %v482_v49, 1  ;;  %v949_v10 = vadd.f32 %v947_v39, %v939_v57  ;;  %v956_v61 = vmul.f32 %v3094_v56, %v955_v52 }
 0x10d   :  { %4320 = sst [smem:[#allocation28_spill]] %s3054_s9  ;;  %v494_v27 = vrot.slane %v3077_v38, 1  ;;  %v664_v36 = vrot.slane %v663_v16, 1  ;;  %v846_v59 = vsub.f32 %v2988_v28, %v845_v37  ;;  %v847_v29 = vsub.f32 %v2991_v42, %v845_v37 }
 0x10e   :  { %4322 = sst [smem:[#allocation30_spill]] %s3064_s17  ;;  %v3104_v40 = vadd.f32 %v483_v25, %v482_v49  ;;  %v505_v62 = vrot.slane %v3082_v26, 1  ;;  %v953_v47 = vadd.f32 %v952_v50, %v943_v33  ;;  %v957_v2 = vmul.f32 %v3110_v43, %v955_v52 }
 0x10f   :  { %4323 = sst [smem:[#allocation31_spill]] %s3075_s6  ;;  %v665_v28 = vadd.f32 %v664_v36, %v663_v16  ;;  %v848_v45 = vmul.f32 1.442695, %v846_v59  ;;  %v850_v42 = vmul.f32 1.442695, %v847_v29  ;;  %v958_v35 = vadd.f32 %v956_v61, %v948_v46  ;;  %v3175_v46 = vld [vmem:[%s4253_s0 + $0xa0] sm:$0xff] }
 0x110   :  { %s3080_s9 = sld [smem:[#allocation16]]  ;;  %4328 = vst [vmem:[#allocation36_spill] sm:$0xff] %v3104_v40  ;;  %v959_v48 = vadd.f32 %v957_v2, %v949_v10  ;;  %v961_v3 = vstv %s2932_s20  ;;  %v965_v12 = vstv %s2937_s10  ;;  %v971_v13 = vstv %s2940_s25  ;;  %v3181_v16 = vld [vmem:[%s4253_s0 + $0xa8] sm:$0x1] }
 0x111   :  { %s3097_s6 = sld [smem:[#allocation15 + $0x83]]  ;;  %2030 = vrcp.f32 %v665_v28  ;;  %v962_v54 = vmul.f32 %v3094_v56, %v961_v3  ;;  %v966_v4 = vmul.f32 %v3126_v53, %v965_v12  ;;  %v967_v6 = vmul.f32 %v3132_v58, %v965_v12  ;;  %v3194_v29 = vld [vmem:[%s4253_s0 + $0xb0] sm:$0xff]  ;;  %v3200_v2 = vld [vmem:[%s4253_s0 + $0xb8] sm:$0x1] }
 0x112   :  { %4325 = sst [smem:[#allocation33_spill]] %s3085_s22  ;;  %2032 = vpow2.f32 %v848_v45  ;;  %v972_v7 = vmul.f32 %v3126_v53, %v971_v13  ;;  %v975_v9 = vstv %s2945_s24  ;;  %v981_v17 = vstv %s2950_s26  ;;  %v2062_v13 = vld [vmem:[%s4254_s1] sm:$0xff] }
 0x113   :  { %s3102_s11 = sld [smem:[#allocation15 + $0x84]]  ;;  %2034 = vpow2.f32 %v850_v42  ;;  %v963_v21 = vadd.f32 %v962_v54, %v953_v47  ;;  %v968_v63 = vadd.f32 %v966_v4, %v958_v35  ;;  %v969_v23 = vadd.f32 %v967_v6, %v959_v48  ;;  %v2063_v4 = vld [vmem:[%s4254_s1 + $0x8] sm:$0x1] }
 0x114   :  { %s3115_s22 = sld [smem:[#allocation15 + $0x86]]  ;;  %v976_v18 = vmul.f32 %v2054_v1, %v975_v9  ;;  %v977_v57 = vmul.f32 %v2055_v51, %v975_v9  ;;  %v982_v24 = vmul.f32 %v2054_v1, %v981_v17  ;;  %v985_v60 = vstv %s2954_s4 }
 0x115   :  { %s3135_s20 = sld [smem:[#allocation15 + $0x88]]  ;;  %v973_v11 = vadd.f32 %v972_v7, %v963_v21  ;;  %v986_v5 = vmul.f32 %v3156_v41, %v985_v60  ;;  %v987_v39 = vmul.f32 %v3162_v32, %v985_v60  ;;  %v991_v34 = vstv %s2959_s23 }
 0x116   :  { %4324 = sst [smem:[#allocation32_spill]] %s3080_s9  ;;  %v978_v0 = vadd.f32 %v976_v18, %v968_v63  ;;  %v979_v14 = vadd.f32 %v977_v57, %v969_v23  ;;  %v992_v15 = vmul.f32 %v3156_v41, %v991_v34  ;;  %v995_v33 = vstv %s2965_s2 }
 0x117   :  { %4326 = sst [smem:[#allocation34_spill]] %s3097_s6  ;;  %v983_v49 = vadd.f32 %v982_v24, %v973_v11  ;;  %v996_v50 = vmul.f32 %v3175_v46, %v995_v33  ;;  %v997_v37 = vmul.f32 %v3181_v16, %v995_v33  ;;  %v1001_v52 = vstv %s2971_s28 }
 0x118   :  { %s3113_s6 = sld [smem:[#allocation15 + $0x85]]  ;;  %v988_v25 = vadd.f32 %v986_v5, %v978_v0  ;;  %v989_v10 = vadd.f32 %v987_v39, %v979_v14  ;;  %v1002_v61 = vmul.f32 %v3175_v46, %v1001_v52  ;;  %v1005_v36 = vstv %s2974_s29 }
 0x119   :  { %4327 = sst [smem:[#allocation35_spill]] %s3102_s11  ;;  %v993_v59 = vadd.f32 %v992_v15, %v983_v49  ;;  %v1006_v47 = vmul.f32 %v3194_v29, %v1005_v36  ;;  %v1007_v28 = vmul.f32 %v3200_v2, %v1005_v36  ;;  %v1011_v45 = vstv %s2978_s3 }
 0x11a   :  { %4330 = sst [smem:[#allocation38_spill]] %s3115_s22  ;;  %v998_v42 = vadd.f32 %v996_v50, %v988_v25  ;;  %v999_v35 = vadd.f32 %v997_v37, %v989_v10  ;;  %v1012_v48 = vmul.f32 %v3194_v29, %v1011_v45  ;;  %v1015_v3 = vstv %s2985_s13 }
 0x11b   :  { %s3120_s11 = sld [smem:[#allocation15 + $0x87]]  ;;  %v1003_v12 = vadd.f32 %v1002_v61, %v993_v59  ;;  %v1016_v54 = vmul.f32 %v2062_v13, %v1015_v3  ;;  %v1017_v6 = vmul.f32 %v2063_v4, %v1015_v3  ;;  %v1021_v7 = vstv %s2994_s27 }
 0x11c   :  { %s3140_s10 = sld [smem:[#allocation15 + $0x89]]  ;;  %v1008_v9 = vadd.f32 %v1006_v47, %v998_v42  ;;  %v1009_v17 = vadd.f32 %v1007_v28, %v999_v35  ;;  %v1022_v21 = vmul.f32 %v2062_v13, %v1021_v7  ;;  %v1093_v63 = vstv %s2999_s30 }
 0x11d   :  { %s3142_s25 = sld [smem:[#allocation15 + $0x8a]]  ;;  %v308_v23 = vadd.f32 %v307_v30, %v2982_v19  ;;  %v1013_v1 = vadd.f32 %v1012_v48, %v1003_v12  ;;  %v309_v51 = vadd.f32 %v307_v30, %v3089_v55  ;;  %v3233_v57 = vadd.f32 %v494_v27, %v3077_v38 }
 0x11e   :  { %4329 = sst [smem:[#allocation37_spill]] %s3113_s6  ;;  %v2031_v18 = vpop.eup %2030  ;;  %v3238_v24 = vadd.f32 %v505_v62, %v3082_v26  ;;  %v3241_v19 = vmul.f32 %v1093_v63, %v3104_v40  ;;  %v1096_v5 = vstv %s3009_s15  ;;  %v1018_v27 = vadd.f32 %v1016_v54, %v1008_v9 }
 0x11f   :  { %s3151_s24 = sld [smem:[#allocation15 + $0x8b]]  ;;  %v3245_v60 = vpop.eup %2032  ;;  %v667_v11 = vmul.f32 %v2031_v18, %v3001_v44  ;;  %v668_v30 = vmul.f32 %v2031_v18, %v3011_v22  ;;  %v1023_v55 = vadd.f32 %v1022_v21, %v1013_v1  ;;  %v1019_v62 = vadd.f32 %v1017_v6, %v1009_v17  ;;  %v2064_v44 = vld [vmem:[%s4253_s0 + $0x10] sm:$0xff]  ;;  %v2065_v22 = vld [vmem:[%s4253_s0 + $0x18] sm:$0x1] }
 0x120   :  { %s3166_s4 = sld [smem:[#allocation16 + $0x1]]  ;;  %v3252_v38 = vpop.eup %2034  ;;  %v852_v26 = vsel %vm445_vm2, %v3245_v60, 0.0  ;;  %v1108_v39 = vstv %s3032_s19  ;;  %v1100_v42 = vstv %s3016_s14  ;;  %v1112_v7 = vstv %s3038_s8 }
 0x121   :  { %4331 = sst [smem:[#allocation39_spill]] %s3120_s11  ;;  %v669_v34 = vmul.f32 %v2064_v44, %v667_v11  ;;  %v670_v0 = vmul.f32 %v2065_v22, %v668_v30  ;;  %v680_v14 = vmul.f32 %v3061_v31, %v667_v11  ;;  %v681_v15 = vmul.f32 %v3069_v20, %v668_v30 }
 0x122   :  { %4332 = sst [smem:[#allocation40_spill]] %s3140_s10  ;;  %v691_v33 = vmul.f32 %v3156_v41, %v667_v11  ;;  %v692_v49 = vmul.f32 %v3162_v32, %v668_v30  ;;  %v853_v50 = vsel %vm447_vm3, %v3252_v38, 0.0  ;;  %v1027_v37 = vrot.slane %v1023_v55, %v2391_v8 }
 0x123   :  { %4333 = sst [smem:[#allocation41_spill]] %s3142_s25  ;;  %v671_v52 = vsel %vm445_vm2, %v669_v34, 0.0  ;;  %v672_v25 = vsel %vm447_vm3, %v670_v0, 0.0  ;;  %v682_v31 = vsel %vm445_vm2, %v680_v14, 0.0  ;;  %v683_v20 = vsel %vm447_vm3, %v681_v15, 0.0 }
 0x124   :  { %s3170_s10 = sld [smem:[#allocation15 + $0x100]]  ;;  %v673_v41 = vadd.f32 %v672_v25, %v671_v52  ;;  %v684_v32 = vadd.f32 %v683_v20, %v682_v31  ;;  %v693_v10 = vsel %vm445_vm2, %v691_v33, 0.0  ;;  %v694_v8 = vsel %vm447_vm3, %v692_v49, 0.0 }
 0x125   :  { %4334 = sst [smem:[#allocation42_spill]] %s3151_s24  ;;  %v695_v61 = vadd.f32 %v694_v8, %v693_v10  ;;  %v854_v36 = vadd.f32 %v853_v50, %v852_v26  ;;  %v1028_v59 = vmul.f32 %v1027_v37, %v1018_v27  ;;  %v1029_v47 = vmul.f32 %v1027_v37, %v1019_v62 }
 0x126   :  { %4335 = sst [smem:[#allocation43_spill]] %s3166_s4  ;;  %v674_v28 = vrot.slane %v673_v41, 4  ;;  %v685_v45 = vrot.slane %v684_v32, 4  ;;  %v3299_v6 = vmul.f32 %v1108_v39, %v3233_v57  ;;  %v1144_v50 = vstv %s3073_s21 }
 0x127   :  { %s3185_s2 = sld [smem:[#allocation15 + $0x101]]  ;;  %v696_v48 = vrot.slane %v695_v61, 4  ;;  %v855_v3 = vrot.slane %v854_v36, 4  ;;  %v3292_v12 = vadd.f32 %v1028_v59, %v308_v23  ;;  %v3294_v13 = vadd.f32 %v1029_v47, %v309_v51 }
 0x128   :  { %s3189_s6 = sld [smem:[#allocation15 + $0x102]]  ;;  %v675_v54 = vadd.f32 %v674_v28, %v673_v41  ;;  %v686_v4 = vadd.f32 %v685_v45, %v684_v32  ;;  %v1124_v51 = vstv %s3052_s12  ;;  %v1145_v59 = vmul.f32 %v1144_v50, %v3104_v40 }
 0x129   :  { %s3204_s29 = sld [smem:[#allocation15 + $0x103]]  ;;  %v697_v9 = vadd.f32 %v696_v48, %v695_v61  ;;  %v856_v17 = vadd.f32 %v855_v3, %v854_v36  ;;  %v1032_v21 = vsel %vm445_vm2, %v3292_v12, -inf  ;;  %v1033_v63 = vsel %vm447_vm3, %v3294_v13, -inf }
 0x12a   :  { %s3208_s23 = sld [smem:[#allocation15 + $0x104]]  ;;  %v676_v23 = vrot.slane %v675_v54, 2  ;;  %v687_v1 = vrot.slane %v686_v4, 2  ;;  %v1034_v18 = vmax.f32 %v1032_v21, %v1033_v63  ;;  %v3321_v0 = vmul.f32 %v1124_v51, %v3238_v24 }
 0x12b   :  { %s3217_s28 = sld [smem:[#allocation15 + $0x105]]  ;;  %v698_v11 = vrot.slane %v697_v9, 2  ;;  %v857_v30 = vrot.slane %v856_v17, 2 }
 0x12c   :  { %s3220_s13 = sld [smem:[#allocation15 + $0x106]]  ;;  %v677_v27 = vadd.f32 %v676_v23, %v675_v54  ;;  %v688_v62 = vadd.f32 %v687_v1, %v686_v4  ;;  %v1035_v39 = vrot.slane %v1034_v18, 4 }
 0x12d   :  { %s3225_s5 = sld [smem:[#allocation15 + $0x107]]  ;;  %v699_v34 = vadd.f32 %v698_v11, %v697_v9  ;;  %v858_v22 = vadd.f32 %v857_v30, %v856_v17  ;;  %v1167_v17 = vstv %s3115_s22  ;;  %v1198_v30 = vstv %s3185_s2 }
 0x12e   :  { %s3243_s1 = sld [smem:[#allocation15 + $0x108]]  ;;  %v678_v15 = vrot.slane %v677_v27, 1  ;;  %v689_v33 = vrot.slane %v688_v62, 1  ;;  %v1036_v49 = vmax.f32 %v1034_v18, %v1035_v39 }
 0x12f   :  { %4336 = sst [smem:[#allocation44_spill]] %s3204_s29  ;;  %v700_v37 = vrot.slane %v699_v34, 1  ;;  %v859_v52 = vrot.slane %v858_v22, 1 }
 0x130   :  { %s3250_s16 = sld [smem:[#allocation15 + $0x109]]  ;;  %v3333_v20 = vadd.f32 %v678_v15, %v677_v27  ;;  %v1037_v41 = vrot.slane %v1036_v49, 2  ;;  %v3339_v8 = vadd.f32 %v689_v33, %v688_v62 }
 0x131   :  { %s3257_s27 = sld [smem:[#allocation15 + $0x10a]]  ;;  %v3341_v61 = vadd.f32 %v700_v37, %v699_v34  ;;  %v860_v36 = vadd.f32 %v859_v52, %v858_v22  ;;  %v1210_v22 = vstv %s3208_s23  ;;  %v1214_v15 = vstv %s3217_s28 }
 0x132   :  { %4337 = sst [smem:[#allocation45_spill]] %s3220_s13  ;;  %4362 = vst [vmem:[#allocation57_spill] sm:$0xff] %v3333_v20  ;;  %v1038_v47 = vmax.f32 %v1036_v49, %v1037_v41  ;;  %v1097_v28 = vmul.f32 %v1096_v5, %v3333_v20  ;;  %v1175_v5 = vstv %s3135_s20  ;;  %v3371_v23 = vmul.f32 %v1112_v7, %v3339_v8 }
 0x133   :  { %4338 = sst [smem:[#allocation46_spill]] %s3225_s5  ;;  %4364 = vst [vmem:[#allocation58_spill] sm:$0xff] %v3341_v61  ;;  %2036 = vrcp.f32 %v860_v36  ;;  %v3389_v27 = vmul.f32 %v1175_v5, %v3238_v24  ;;  %v1199_v39 = vmul.f32 %v1198_v30, %v3333_v20  ;;  %v1183_v49 = vstv %s3142_s25 }
 0x134   :  { %s3267_s3 = sld [smem:[#allocation15 + $0x10b]]  ;;  %v1039_v9 = vrot.slane %v1038_v47, 1  ;;  %v3366_v63 = vadd.f32 %v1097_v28, %v3241_v19  ;;  %v1195_v19 = vstv %s3170_s10  ;;  %v1202_v41 = vstv %s3189_s6 }
 0x135   :  { %s3274_s19 = sld [smem:[#allocation16 + $0x2]]  ;;  %v1196_v62 = vmul.f32 %v1195_v19, %v3104_v40  ;;  %v3417_v36 = vmul.f32 %v1210_v22, %v3233_v57 }
 0x136   :  { %s3280_s30 = sld [smem:[#allocation15 + $0x180]]  ;;  %v1040_v51 = vmax.f32 %v1038_v47, %v1039_v9  ;;  %v1218_v47 = vstv %s3220_s13  ;;  %v1230_v28 = vstv %s3250_s16 }
 0x137   :  { %4339 = sst [smem:[#allocation47_spill]] %s3257_s27 }
 0x138   :  { %s3284_s26 = sld [smem:[#allocation15 + $0x181]]  ;;  %v1042_v34 = vsub.f32 %v3294_v13, %v1040_v51  ;;  %v1226_v13 = vstv %s3243_s1 }
 0x139   :  { %s3286_s9 = sld [smem:[#allocation15 + $0x182]]  ;;  %v3431_v9 = vmul.f32 %v1226_v13, %v3238_v24 }
 0x13a   :  { %4340 = sst [smem:[#allocation48_spill]] %s3267_s3 }
 0x13b   :  { %4341 = sst [smem:[#allocation49_spill]] %s3274_s19 }
 0x13c   :  { %s3290_s18 = sld [smem:[#allocation15 + $0x183]] }
 0x13d   :  { %s3296_s0 = sld [smem:[#allocation15 + $0x184]] }
 0x13e   :  { %s4345_s19 = sld [smem:[#allocation26_spill]]  ;;  %v1249_v5 = vstv %s3284_s26 }
 0x13f   :  { %4342 = sst [smem:[#allocation50_spill]] %s3286_s9 }
 0x140   :  { %s3302_s7 = sld [smem:[#allocation15 + $0x185]]  ;;  %v2037_v22 = vpop.eup %2036 }
 0x141   :  { %s4348_s14 = sld [smem:[#allocation28_spill]] }
 0x142   :  { %4343 = sst [smem:[#allocation51_spill]] %s3290_s18 }
 0x143   :  { %4344 = sst [smem:[#allocation52_spill]] %s3296_s0 }
 0x144   :  { %s3308_s18 = sld [smem:[#allocation15 + $0x186]]  ;;  %v1116_v55 = vstv %s4345_s19 }
 0x145   :  { %s4350_s0 = sld [smem:[#allocation29_spill]] }
 0x146   :  { %4347 = sst [smem:[#allocation53_spill]] %s3302_s7 }
 0x147   :  { %s3311_s3 = sld [smem:[#allocation15 + $0x187]]  ;;  %v1128_v44 = vstv %s4348_s14 }
 0x148   :  { %s3315_s7 = sld [smem:[#allocation15 + $0x188]]  ;;  %v3374_v1 = vmul.f32 %v1128_v44, %v3341_v61  ;;  %v1041_v44 = vsub.f32 %v3292_v12, %v1040_v51  ;;  %v1045_v12 = vmul.f32 1.442695, %v1042_v34 }
 0x149   :  { %s4355_s12 = sld [smem:[#allocation31_spill]] }
 0x14a   :  { %4349 = sst [smem:[#allocation28_spill]] %s3308_s18  ;;  %v1043_v52 = vmul.f32 1.442695, %v1041_v44 }
 0x14b   :  { %s3318_s18 = sld [smem:[#allocation15 + $0x189]]  ;;  %v1132_v14 = vstv %s4350_s0 }
 0x14c   :  { %s3324_s19 = sld [smem:[#allocation15 + $0x18a]]  ;;  %2038 = vpow2.f32 %v1043_v52 }
 0x14d   :  { %4351 = sst [smem:[#allocation54_spill]] %s3311_s3  ;;  %2040 = vpow2.f32 %v1045_v12 }
 0x14e   :  { %4352 = sst [smem:[#allocation55_spill]] %s3315_s7 }
 0x14f   :  { %s4356_s3 = sld [smem:[#allocation35_spill]]  ;;  %v1147_v32 = vstv %s4355_s12 }
 0x150   :  { %s3327_s9 = sld [smem:[#allocation15 + $0x18b]]  ;;  %v1148_v3 = vmul.f32 %v1147_v32, %v3333_v20  ;;  %v3413_v32 = vadd.f32 %v1199_v39, %v1196_v62  ;;  %v3443_v62 = vmul.f32 %v1230_v28, %v3341_v61  ;;  %v862_v28 = vmul.f32 %v2037_v22, %v3245_v60 }
 0x151   :  { %4354 = sst [smem:[#allocation56_spill]] %s3318_s18 }
 0x152   :  { %4357 = sst [smem:[#allocation31_spill]] %s3324_s19  ;;  %v3386_v7 = vadd.f32 %v1148_v3, %v1145_v59  ;;  %v3420_v59 = vmul.f32 %v1214_v15, %v3339_v8  ;;  %4377 = vst [vmem:[#allocation59_spill] sm:$0xff] %v3443_v62  ;;  %v1250_v15 = vmul.f32 %v1249_v5, %v3333_v20  ;;  %v886_v3 = vmul.f32 %v3175_v46, %v862_v28 }
 0x153   :  { %s4359_s14 = sld [smem:[#allocation33_spill]] }
 0x154   :  { %s4360_s18 = sld [smem:[#allocation37_spill]] }
 0x155   :  { %s3331_s7 = sld [smem:[#allocation16 + $0x3]]  ;;  %v1159_v10 = vstv %s4356_s3 }
 0x156   :  { %4358 = sst [smem:[#allocation35_spill]] %s3327_s9  ;;  %v3356_v4 = vmul.f32 %v1159_v10, %v3233_v57 }
 0x157   :  { %s3337_s19 = sld [smem:[#allocation15 + $0x200]] }
 0x158   :  { %s3344_s21 = sld [smem:[#allocation15 + $0x201]] }
 0x159   :  { %v1151_v45 = vstv %s4359_s14  ;;  %s3351_s3 = sld [smem:[#allocation15 + $0x202]] }
 0x15a   :  { %v1163_v48 = vstv %s4360_s18  ;;  %s4365_s12 = sld [smem:[#allocation40_spill]] }
 0x15b   :  { %4361 = sst [smem:[#allocation33_spill]] %s3331_s7  ;;  %v3377_v18 = vmul.f32 %v1163_v48, %v3339_v8  ;;  %v1246_v48 = vstv %s3280_s30 }
 0x15c   :  { %s3358_s27 = sld [smem:[#allocation15 + $0x203]]  ;;  %v1247_v44 = vmul.f32 %v1246_v48, %v3104_v40  ;;  %v863_v48 = vmul.f32 %v2037_v22, %v3252_v38  ;;  %v875_v22 = vmul.f32 %v3094_v56, %v862_v28 }
 0x15d   :  { %s3363_s15 = sld [smem:[#allocation15 + $0x204]]  ;;  %v1297_v5 = vstv %s3337_s19 }
 0x15e   :  { %s3379_s18 = sld [smem:[#allocation15 + $0x205]]  ;;  %v1300_v52 = vstv %s3344_s21  ;;  %v876_v37 = vmul.f32 %v3110_v43, %v863_v48  ;;  %v887_v10 = vmul.f32 %v3181_v16, %v863_v48  ;;  %v1298_v50 = vmul.f32 %v1297_v5, %v3104_v40 }
 0x15f   :  { %s3384_s8 = sld [smem:[#allocation15 + $0x206]]  ;;  %v877_v56 = vsel %vm445_vm2, %v875_v22, 0.0  ;;  %v3498_v5 = vadd.f32 %v1250_v15, %v1247_v44 }
 0x160   :  { %v1179_v11 = vstv %s4365_s12  ;;  %s3393_s20 = sld [smem:[#allocation15 + $0x207]]  ;;  %v878_v43 = vsel %vm447_vm3, %v876_v37, 0.0 }
 0x161   :  { %s3399_s10 = sld [smem:[#allocation15 + $0x208]]  ;;  %v3402_v33 = vmul.f32 %v1179_v11, %v3341_v61  ;;  %v879_v16 = vadd.f32 %v878_v43, %v877_v56 }
 0x162   :  { %4366 = sst [smem:[#allocation37_spill]] %s3358_s27 }
 0x163   :  { %s3407_s2 = sld [smem:[#allocation15 + $0x209]]  ;;  %v880_v37 = vrot.slane %v879_v16, 4 }
 0x164   :  { %s3411_s23 = sld [smem:[#allocation15 + $0x20a]] }
 0x165   :  { %s4370_s11 = sld [smem:[#allocation52_spill]] }
 0x166   :  { %4367 = sst [smem:[#allocation40_spill]] %s3393_s20 }
 0x167   :  { %s4371_s4 = sld [smem:[#allocation53_spill]]  ;;  %v1328_v54 = vstv %s3399_s10 }
 0x168   :  { %s3422_s24 = sld [smem:[#allocation15 + $0x20b]] }
 0x169   :  { %s4373_s1 = sld [smem:[#allocation50_spill]] }
 0x16a   :  { %s3427_s0 = sld [smem:[#allocation16 + $0x4]] }
 0x16b   :  { %s3434_s25 = sld [smem:[#allocation15 + $0x280]]  ;;  %v1261_v19 = vstv %s4370_s11 }
 0x16c   :  { %s4375_s22 = sld [smem:[#allocation28_spill]]  ;;  %v3453_v12 = vmul.f32 %v1261_v19, %v3233_v57 }
 0x16d   :  { %v1265_v30 = vstv %s4371_s4  ;;  %s3440_s16 = sld [smem:[#allocation15 + $0x281]] }
 0x16e   :  { %s4378_s30 = sld [smem:[#allocation55_spill]]  ;;  %v3456_v13 = vmul.f32 %v1265_v30, %v3339_v8 }
 0x16f   :  { %s4379_s5 = sld [smem:[#allocation56_spill]]  ;;  %v1253_v34 = vstv %s4373_s1 }
 0x170   :  { %s3448_s26 = sld [smem:[#allocation15 + $0x282]] }
 0x171   :  { %s3458_s11 = sld [smem:[#allocation15 + $0x283]] }
 0x172   :  { %s3464_s4 = sld [smem:[#allocation15 + $0x284]] }
 0x173   :  { %s3470_s17 = sld [smem:[#allocation15 + $0x285]]  ;;  %v1351_v39 = vstv %s3440_s16 }
 0x174   :  { %v1277_v31 = vstv %s4378_s30  ;;  %s4381_s28 = sld [smem:[#allocation89_spill]] }
 0x175   :  { %v1281_v11 = vstv %s4379_s5  ;;  %s3480_s30 = sld [smem:[#allocation15 + $0x286]] }
 0x176   :  { %s4382_s29 = sld [smem:[#allocation31_spill]]  ;;  %v3507_v22 = vmul.f32 %v1281_v11, %v3341_v61 }
 0x177   :  { %4380 = sst [smem:[#allocation52_spill]] %s3458_s11 }
 0x178   :  { %s3486_s5 = sld [smem:[#allocation15 + $0x287]]  ;;  %4383 = vst [vmem:[#allocation60_spill] sm:$0xff] %v3507_v22 }
 0x179   :  { %s3492_s19 = sld [smem:[#allocation15 + $0x288]] }
 0x17a   :  { %v2066_v19 = vld [vmem:[%s4381_s28 + $0x20] sm:$0xff]  ;;  %v2067_v60 = vld [vmem:[%s4381_s28 + $0x28] sm:$0x1]  ;;  %s3496_s21 = sld [smem:[#allocation15 + $0x289]] }
 0x17b   :  { %v864_v30 = vmul.f32 %v2066_v19, %v862_v28  ;;  %v865_v38 = vmul.f32 %v2067_v60, %v863_v48  ;;  %v1301_v19 = vmul.f32 %v1300_v52, %v3333_v20  ;;  %v888_v28 = vsel %vm445_vm2, %v886_v3, 0.0  ;;  %s3504_s12 = sld [smem:[#allocation15 + $0x28a]] }
 0x17c   :  { %v889_v52 = vsel %vm447_vm3, %v887_v10, 0.0  ;;  %s3510_s1 = sld [smem:[#allocation15 + $0x28b]]  ;;  %v3512_v10 = vpop.eup %2038 }
 0x17d   :  { %v866_v21 = vsel %vm445_vm2, %v864_v30, 0.0  ;;  %v867_v60 = vsel %vm447_vm3, %v865_v38, 0.0  ;;  %v890_v48 = vadd.f32 %v889_v52, %v888_v28  ;;  %v3501_v30 = vmul.f32 %v1277_v31, %v3238_v24  ;;  %s3518_s11 = sld [smem:[#allocation16 + $0x5]]  ;;  %v3520_v56 = vpop.eup %2040 }
 0x17e   :  { %v868_v46 = vadd.f32 %v867_v60, %v866_v21  ;;  %v3515_v31 = vadd.f32 %v1301_v19, %v1298_v50  ;;  %v1312_v60 = vstv %s3363_s15  ;;  %v881_v28 = vadd.f32 %v880_v37, %v879_v16  ;;  %s3525_s9 = sld [smem:[#allocation15 + $0x300]] }
 0x17f   :  { %v891_v44 = vrot.slane %v890_v48, 4  ;;  %v1047_v11 = vsel %vm445_vm2, %v3512_v10, 0.0  ;;  %v1316_v52 = vstv %s3379_s18  ;;  %v1048_v50 = vsel %vm447_vm3, %v3520_v56, 0.0  ;;  %s3531_s15 = sld [smem:[#allocation15 + $0x301]] }
 0x180   :  { %v869_v21 = vrot.slane %v868_v46, 4  ;;  %v1304_v19 = vstv %s3351_s3  ;;  %v1049_v16 = vadd.f32 %v1048_v50, %v1047_v11  ;;  %s3536_s18 = sld [smem:[#allocation15 + $0x302]]  ;;  %v3539_v37 = vmul.f32 %v1316_v52, %v3339_v8 }
 0x181   :  { %v892_v3 = vadd.f32 %v891_v44, %v890_v48  ;;  %s3543_s7 = sld [smem:[#allocation15 + $0x303]]  ;;  %v1332_v38 = vstv %s3407_s2  ;;  %v1336_v50 = vstv %s3411_s23 }
 0x182   :  { %4384 = sst [smem:[#allocation53_spill]] %s3510_s1  ;;  %v870_v43 = vadd.f32 %v869_v21, %v868_v46  ;;  %v882_v46 = vrot.slane %v881_v28, 2  ;;  %v3534_v21 = vmul.f32 %v1312_v60, %v3233_v57  ;;  %v1050_v35 = vrot.slane %v1049_v16, 4 }
 0x183   :  { %4385 = sst [smem:[#allocation28_spill]] %s3518_s11  ;;  %v893_v48 = vrot.slane %v892_v3, 2  ;;  %v1348_v60 = vstv %s3434_s25 }
 0x184   :  { %v871_v25 = vrot.slane %v870_v43, 2  ;;  %v883_v26 = vadd.f32 %v882_v46, %v881_v28  ;;  %s3546_s27 = sld [smem:[#allocation15 + $0x304]]  ;;  %v1051_v44 = vadd.f32 %v1050_v35, %v1049_v16  ;;  %v1349_v28 = vmul.f32 %v1348_v60, %v3104_v40 }
 0x185   :  { %v894_v11 = vadd.f32 %v893_v48, %v892_v3  ;;  %s3551_s13 = sld [smem:[#allocation15 + $0x305]]  ;;  %v3559_v3 = vmul.f32 %v1332_v38, %v3341_v61  ;;  %v1352_v46 = vmul.f32 %v1351_v39, %v3333_v20  ;;  %v1363_v48 = vstv %s3464_s4 }
 0x186   :  { %v872_v15 = vadd.f32 %v871_v25, %v870_v43  ;;  %v884_v52 = vrot.slane %v883_v26, 1  ;;  %v3554_v25 = vmul.f32 %v1328_v54, %v3238_v24  ;;  %s3556_s10 = sld [smem:[#allocation15 + $0x306]]  ;;  %v1052_v16 = vrot.slane %v1051_v44, 2 }
 0x187   :  { %4386 = sst [smem:[#allocation55_spill]] %s3543_s7  ;;  %v895_v43 = vrot.slane %v894_v11, 1  ;;  %4389 = vst [vmem:[#allocation62_spill] sm:$0xff] %v3559_v3  ;;  %v1371_v60 = vstv %s3480_s30 }
 0x188   :  { %v873_v51 = vrot.slane %v872_v15, 1  ;;  %4387 = vst [vmem:[#allocation61_spill] sm:$0xff] %v3554_v25  ;;  %s3563_s25 = sld [smem:[#allocation15 + $0x307]]  ;;  %v3567_v54 = vadd.f32 %v884_v52, %v883_v26 }
 0x189   :  { %s4392_s16 = sld [smem:[#allocation52_spill]]  ;;  %v3572_v38 = vadd.f32 %v895_v43, %v894_v11  ;;  %v1355_v11 = vstv %s3448_s26  ;;  %v1353_v43 = vadd.f32 %v1352_v46, %v1349_v28 }
 0x18a   :  { %v3565_v35 = vadd.f32 %v873_v51, %v872_v15  ;;  %s3570_s20 = sld [smem:[#allocation15 + $0x308]]  ;;  %v1053_v51 = vadd.f32 %v1052_v16, %v1051_v44  ;;  %v3593_v44 = vmul.f32 %v1363_v48, %v3233_v57  ;;  %v1367_v16 = vstv %s3470_s17 }
 0x18b   :  { %4394 = vst [vmem:[#allocation64_spill] sm:$0xff] %v3572_v38  ;;  %s3577_s7 = sld [smem:[#allocation15 + $0x309]]  ;;  %v3614_v28 = vmul.f32 %v1167_v17, %v3567_v54  ;;  %v1414_v3 = vstv %s3546_s27 }
 0x18c   :  { %4391 = vst [vmem:[#allocation63_spill] sm:$0xff] %v3565_v35  ;;  %v1101_v26 = vmul.f32 %v1100_v42, %v3565_v35  ;;  %v1152_v15 = vmul.f32 %v1151_v45, %v3565_v35  ;;  %s3586_s1 = sld [smem:[#allocation15 + $0x30a]]  ;;  %v1203_v52 = vmul.f32 %v1202_v41, %v3565_v35  ;;  %v1054_v42 = vrot.slane %v1053_v51, 1 }
 0x18d   :  { %s3595_s23 = sld [smem:[#allocation15 + $0x30b]]  ;;  %v3600_v45 = vmul.f32 %v1116_v55, %v3567_v54  ;;  %v3609_v41 = vmul.f32 %v1132_v14, %v3572_v38  ;;  %v3619_v55 = vmul.f32 %v1183_v49, %v3572_v38  ;;  %v1254_v46 = vmul.f32 %v1253_v34, %v3565_v35 }
 0x18e   :  { %4390 = sst [smem:[#allocation56_spill]] %s3563_s25  ;;  %v1055_v48 = vadd.f32 %v1054_v42, %v1053_v51  ;;  %v3627_v39 = vadd.f32 %v1101_v26, %v3366_v63  ;;  %v3630_v14 = vadd.f32 %v1152_v15, %v3386_v7  ;;  %v1305_v17 = vmul.f32 %v1304_v19, %v3565_v35 }
 0x18f   :  { %s4401_s26 = sld [smem:[#allocation47_spill]]  ;;  %4402 = vst [vmem:[#allocation65_spill] sm:$0xff] %v3609_v41  ;;  %4403 = vst [vmem:[#allocation66_spill] sm:$0xff] %v3619_v55  ;;  %v3638_v49 = vadd.f32 %v1203_v52, %v3413_v32  ;;  %v3643_v34 = vmul.f32 %v1218_v47, %v3567_v54  ;;  %v4406_v7 = vstv %s4375_s22  ;;  %v4407_v32 = vstv %s4382_s29 }
 0x190   :  { %4393 = sst [smem:[#allocation31_spill]] %s3570_s20  ;;  %v3653_v26 = vmul.f32 %v4406_v7, %v3567_v54  ;;  %2042 = vrcp.f32 %v1055_v48  ;;  %v3660_v19 = vmul.f32 %v4407_v32, %v3572_v38  ;;  %v4409_v47 = vstv %s3384_s8 }
 0x191   :  { %s3604_s6 = sld [smem:[#allocation16 + $0x6]]  ;;  %v3665_v15 = vmul.f32 %v4409_v47, %v3567_v54  ;;  %v1356_v52 = vmul.f32 %v1355_v11, %v3565_v35  ;;  %v3671_v42 = vadd.f32 %v1254_v46, %v3498_v5  ;;  %v3674_v48 = vmul.f32 %v1336_v50, %v3572_v38 }
 0x192   :  { %s3624_s17 = sld [smem:[#allocation15 + $0x380]]  ;;  %4408 = vst [vmem:[#allocation68_spill] sm:$0xff] %v3660_v19  ;;  %v1379_v7 = vstv %s3492_s19  ;;  %v3683_v32 = vadd.f32 %v1305_v17, %v3515_v31  ;;  %v3686_v11 = vmul.f32 %v1371_v60, %v3567_v54  ;;  %v1383_v5 = vstv %s3496_s21 }
 0x193   :  { %s3635_s28 = sld [smem:[#allocation15 + $0x381]]  ;;  %4410 = vst [vmem:[#allocation69_spill] sm:$0xff] %v3674_v48  ;;  %v1387_v50 = vstv %s3504_s12  ;;  %v1402_v46 = vstv %s3531_s15  ;;  %v1406_v48 = vstv %s3536_s18  ;;  %v3698_v31 = vadd.f32 %v1356_v52, %v1353_v43 }
 0x194   :  { %s3655_s3 = sld [smem:[#allocation15 + $0x382]]  ;;  %v3701_v60 = vmul.f32 %v1379_v7, %v3238_v24  ;;  %v1403_v47 = vmul.f32 %v1402_v46, %v3333_v20  ;;  %v3708_v19 = vmul.f32 %v1383_v5, %v3341_v61  ;;  %v1422_v43 = vstv %s3556_s10 }
 0x195   :  { %v4404_v51 = vstv %s4401_s26  ;;  %s3668_s22 = sld [smem:[#allocation15 + $0x383]]  ;;  %v3716_v52 = vmul.f32 %v1387_v50, %v3572_v38  ;;  %v1407_v46 = vmul.f32 %v1406_v48, %v3565_v35  ;;  %v1438_v5 = vstv %s3586_s1 }
 0x196   :  { %v3648_v63 = vmul.f32 %v4404_v51, %v3572_v38  ;;  %v3677_v51 = vmul.f32 %v1367_v16, %v3339_v8  ;;  %s3680_s20 = sld [smem:[#allocation15 + $0x384]]  ;;  %v1399_v16 = vstv %s3525_s9  ;;  %4414 = vst [vmem:[#allocation70_spill] sm:$0xff] %v3701_v60  ;;  %4416 = vst [vmem:[#allocation71_spill] sm:$0xff] %v3708_v19  ;;  %v3725_v60 = vmul.f32 %v1414_v3, %v3233_v57 }
 0x197   :  { %s3690_s8 = sld [smem:[#allocation15 + $0x385]]  ;;  %v1400_v17 = vmul.f32 %v1399_v16, %v3104_v40  ;;  %4418 = vst [vmem:[#allocation72_spill] sm:$0xff] %v3716_v52 }
 0x198   :  { %4405 = vst [vmem:[#allocation67_spill] sm:$0xff] %v3648_v63  ;;  %s4411_s30 = sld [smem:[#allocation53_spill]]  ;;  %v1418_v63 = vstv %s3551_s13  ;;  %v1450_v7 = vstv %s3624_s17 }
 0x199   :  { %s3696_s29 = sld [smem:[#allocation15 + $0x386]]  ;;  %v1404_v16 = vadd.f32 %v1403_v47, %v1400_v17  ;;  %v3731_v50 = vmul.f32 %v1418_v63, %v3339_v8  ;;  %v3734_v47 = vmul.f32 %v1422_v43, %v3567_v54  ;;  %v1434_v17 = vstv %s3577_s7 }
 0x19a   :  { %s4412_s19 = sld [smem:[#allocation28_spill]]  ;;  %v1453_v3 = vstv %s3635_s28  ;;  %v1457_v22 = vstv %s3655_s3  ;;  %v1451_v43 = vmul.f32 %v1450_v7, %v3104_v40 }
 0x19b   :  { %s4413_s11 = sld [smem:[#allocation55_spill]]  ;;  %4419 = vst [vmem:[#allocation73_spill] sm:$0xff] %v3731_v50  ;;  %4420 = vst [vmem:[#allocation74_spill] sm:$0xff] %v3734_v47  ;;  %v3746_v19 = vadd.f32 %v1407_v46, %v1404_v16  ;;  %v1454_v52 = vmul.f32 %v1453_v3, %v3333_v20  ;;  %v3762_v16 = vmul.f32 %v1434_v17, %v3341_v61 }
 0x19c   :  { %s4415_s21 = sld [smem:[#allocation56_spill]]  ;;  %v1465_v55 = vstv %s3680_s20  ;;  %v3765_v46 = vmul.f32 %v1438_v5, %v3572_v38  ;;  %v1458_v3 = vmul.f32 %v1457_v22, %v3565_v35 }
 0x19d   :  { %s3705_s2 = sld [smem:[#allocation15 + $0x387]]  ;;  %v1469_v41 = vstv %s3690_s8  ;;  %4422 = vst [vmem:[#allocation76_spill] sm:$0xff] %v3762_v16  ;;  %v1455_v63 = vadd.f32 %v1454_v52, %v1451_v43  ;;  %v3773_v62 = vmul.f32 %v1465_v55, %v3233_v57 }
 0x19e   :  { %s4417_s9 = sld [smem:[#allocation31_spill]]  ;;  %4423 = vst [vmem:[#allocation77_spill] sm:$0xff] %v3765_v46  ;;  %v3781_v7 = vmul.f32 %v1469_v41, %v3339_v8 }
 0x19f   :  { %s3713_s12 = sld [smem:[#allocation15 + $0x388]]  ;;  %v1473_v25 = vstv %s3696_s29  ;;  %4424 = vst [vmem:[#allocation78_spill] sm:$0xff] %v3773_v62 }
 0x1a0   :  { %s3720_s15 = sld [smem:[#allocation15 + $0x389]]  ;;  %4425 = vst [vmem:[#allocation79_spill] sm:$0xff] %v3781_v7  ;;  %v3784_v22 = vmul.f32 %v1473_v25, %v3567_v54 }
 0x1a1   :  { %s3728_s13 = sld [smem:[#allocation15 + $0x38a]] }
 0x1a2   :  { %s3738_s27 = sld [smem:[#allocation15 + $0x400]]  ;;  %4426 = vst [vmem:[#allocation80_spill] sm:$0xff] %v3784_v22 }
 0x1a3   :  { %s3744_s18 = sld [smem:[#allocation15 + $0x401]] }
 0x1a4   :  { %v1430_v48 = vstv %s4417_s9  ;;  %s3751_s10 = sld [smem:[#allocation15 + $0x38b]] }
 0x1a5   :  { %v3754_v47 = vmul.f32 %v1430_v48, %v3238_v24  ;;  %s3759_s7 = sld [smem:[#allocation16 + $0x7]]  ;;  %v2043_v48 = vpop.eup %2042  ;;  %v1481_v52 = vstv %s3713_s12 }
 0x1a6   :  { %s3769_s1 = sld [smem:[#allocation15 + $0x402]]  ;;  %v1057_v5 = vmul.f32 %v2043_v48, %v3512_v10  ;;  %v1058_v46 = vmul.f32 %v2043_v48, %v3520_v56  ;;  %v1485_v43 = vstv %s3720_s15 }
 0x1a7   :  { %4421 = vst [vmem:[#allocation75_spill] sm:$0xff] %v3754_v47  ;;  %s3776_s25 = sld [smem:[#allocation15 + $0x404]]  ;;  %v1489_v55 = vstv %s3728_s13 }
 0x1a8   :  { %s3786_s4 = sld [smem:[#allocation15 + $0x405]]  ;;  %v1501_v47 = vstv %s3738_s27  ;;  %v1070_v48 = vmul.f32 %v3126_v53, %v1057_v5  ;;  %v1071_v17 = vmul.f32 %v3132_v58, %v1058_v46  ;;  %v1081_v16 = vmul.f32 %v3194_v29, %v1057_v5 }
 0x1a9   :  { %s3792_s14 = sld [smem:[#allocation15 + $0x406]]  ;;  %v1082_v22 = vmul.f32 %v3200_v2, %v1058_v46  ;;  %v1502_v7 = vmul.f32 %v1501_v47, %v3104_v40 }
 0x1aa   :  { %s4427_s28 = sld [smem:[#allocation89_spill]]  ;;  %v1072_v53 = vsel %vm445_vm2, %v1070_v48, 0.0  ;;  %v1073_v58 = vsel %vm447_vm3, %v1071_v17, 0.0  ;;  %v1083_v2 = vsel %vm445_vm2, %v1081_v16, 0.0  ;;  %v3828_v16 = vmul.f32 %v1481_v52, %v3238_v24 }
 0x1ab   :  { %s3802_s8 = sld [smem:[#allocation15 + $0x403]]  ;;  %v1084_v47 = vsel %vm447_vm3, %v1082_v22, 0.0 }
 0x1ac   :  { %s3808_s29 = sld [smem:[#allocation15 + $0x407]]  ;;  %4428 = vst [vmem:[#allocation81_spill] sm:$0xff] %v3828_v16 }
 0x1ad   :  { %s3814_s9 = sld [smem:[#allocation15 + $0x408]] }
 0x1ae   :  { %s3818_s12 = sld [smem:[#allocation15 + $0x409]] }
 0x1af   :  { %s3823_s15 = sld [smem:[#allocation15 + $0x40a]]  ;;  %v1524_v50 = vstv %s3792_s14 }
 0x1b0   :  { %v2068_v10 = vld [vmem:[%s4427_s28 + $0x30] sm:$0xff]  ;;  %v2069_v41 = vld [vmem:[%s4427_s28 + $0x38] sm:$0x1]  ;;  %s3830_s13 = sld [smem:[#allocation15 + $0x480]] }
 0x1b1   :  { %v1059_v56 = vmul.f32 %v2068_v10, %v1057_v5  ;;  %v1060_v25 = vmul.f32 %v2069_v41, %v1058_v46  ;;  %v1504_v10 = vstv %s3744_s18  ;;  %v1074_v5 = vadd.f32 %v1073_v58, %v1072_v53  ;;  %s3834_s27 = sld [smem:[#allocation15 + $0x481]] }
 0x1b2   :  { %v1085_v46 = vadd.f32 %v1084_v47, %v1083_v2  ;;  %v1520_v47 = vstv %s3786_s4  ;;  %s3838_s18 = sld [smem:[#allocation15 + $0x482]] }
 0x1b3   :  { %v1061_v62 = vsel %vm445_vm2, %v1059_v56, 0.0  ;;  %v1062_v41 = vsel %vm447_vm3, %v1060_v25, 0.0  ;;  %v1505_v56 = vmul.f32 %v1504_v10, %v3333_v20  ;;  %v1508_v25 = vstv %s3769_s1  ;;  %s3847_s1 = sld [smem:[#allocation15 + $0x483]] }
 0x1b4   :  { %v1063_v29 = vadd.f32 %v1062_v41, %v1061_v62  ;;  %v1075_v48 = vrot.slane %v1074_v5, 4  ;;  %v3825_v62 = vadd.f32 %v1458_v3, %v1455_v63  ;;  %v1086_v22 = vrot.slane %v1085_v46, 4  ;;  %s4433_s4 = sld [smem:[#allocation25_spill]] }
 0x1b5   :  { %v1506_v41 = vadd.f32 %v1505_v56, %v1502_v7  ;;  %v1509_v53 = vmul.f32 %v1508_v25, %v3565_v35  ;;  %v1516_v10 = vstv %s3776_s25  ;;  %v3841_v3 = vmul.f32 %v1485_v43, %v3341_v61  ;;  %s3853_s25 = sld [smem:[#allocation15 + $0x484]] }
 0x1b6   :  { %v1064_v17 = vrot.slane %v1063_v29, 4  ;;  %v1076_v2 = vadd.f32 %v1075_v48, %v1074_v5  ;;  %v1087_v63 = vadd.f32 %v1086_v22, %v1085_v46  ;;  %v3844_v7 = vmul.f32 %v1489_v55, %v3572_v38  ;;  %s4434_s14 = sld [smem:[#allocation27_spill]] }
 0x1b7   :  { %4429 = vst [vmem:[#allocation82_spill] sm:$0xff] %v3841_v3  ;;  %v3851_v25 = vmul.f32 %v1516_v10, %v3233_v57  ;;  %v3855_v46 = vadd.f32 %v1509_v53, %v1506_v41  ;;  %v3858_v55 = vmul.f32 %v1520_v47, %v3339_v8  ;;  %v1532_v52 = vstv %s3814_s9  ;;  %s4435_s26 = sld [smem:[#allocation34_spill]] }
 0x1b8   :  { %v1065_v58 = vadd.f32 %v1064_v17, %v1063_v29  ;;  %4430 = vst [vmem:[#allocation83_spill] sm:$0xff] %v3844_v7  ;;  %v1077_v5 = vrot.slane %v1076_v2, 2  ;;  %v1088_v43 = vrot.slane %v1087_v63, 2  ;;  %v3861_v17 = vmul.f32 %v1524_v50, %v3567_v54  ;;  %s4436_s17 = sld [smem:[#allocation30_spill]] }
 0x1b9   :  { %4431 = vst [vmem:[#allocation84_spill] sm:$0xff] %v3851_v25  ;;  %v1536_v56 = vstv %s3818_s12  ;;  %v1540_v10 = vstv %s3823_s15  ;;  %v1552_v3 = vstv %s3830_s13  ;;  %v1555_v25 = vstv %s3834_s27  ;;  %s4437_s28 = sld [smem:[#allocation39_spill]] }
 0x1ba   :  { %v1066_v29 = vrot.slane %v1065_v58, 2  ;;  %4432 = vst [vmem:[#allocation85_spill] sm:$0xff] %v3861_v17  ;;  %v1078_v22 = vadd.f32 %v1077_v5, %v1076_v2  ;;  %v1089_v7 = vadd.f32 %v1088_v43, %v1087_v63  ;;  %v1553_v53 = vmul.f32 %v1552_v3, %v3104_v40  ;;  %s4439_s3 = sld [smem:[#allocation42_spill]] }
 0x1bb   :  { %v1556_v50 = vmul.f32 %v1555_v25, %v3333_v20  ;;  %v3872_v2 = vmul.f32 %v1532_v52, %v3238_v24  ;;  %v1559_v63 = vstv %s3838_s18  ;;  %s4440_s20 = sld [smem:[#allocation44_spill]]  ;;  %v3880_v3 = vmul.f32 %v1536_v56, %v3341_v61 }
 0x1bc   :  { %v1067_v48 = vadd.f32 %v1066_v29, %v1065_v58  ;;  %v1079_v41 = vrot.slane %v1078_v22, 1  ;;  %v1090_v47 = vrot.slane %v1089_v7, 1  ;;  %s4442_s9 = sld [smem:[#allocation46_spill]]  ;;  %v3883_v25 = vmul.f32 %v1540_v10, %v3572_v38 }
 0x1bd   :  { %4438 = vst [vmem:[#allocation86_spill] sm:$0xff] %v3872_v2  ;;  %4441 = vst [vmem:[#allocation87_spill] sm:$0xff] %v3880_v3  ;;  %s4444_s12 = sld [smem:[#allocation51_spill]]  ;;  %v3887_v58 = vadd.f32 %v1556_v50, %v1553_v53  ;;  %v3890_v52 = vmul.f32 %v1559_v63, %v3565_v35  ;;  %v4450_v10 = vstv %s4435_s26 }
 0x1be   :  { %v1068_v16 = vrot.slane %v1067_v48, 1  ;;  %v3877_v5 = vadd.f32 %v1079_v41, %v1078_v22  ;;  %4443 = vst [vmem:[#allocation88_spill] sm:$0xff] %v3883_v25  ;;  %v3885_v43 = vadd.f32 %v1090_v47, %v1089_v7  ;;  %s4445_s15 = sld [smem:[#allocation48_spill]]  ;;  %v4449_v22 = vstv %s4434_s14 }
 0x1bf   :  { %s4446_s13 = sld [smem:[#allocation54_spill]]  ;;  %v4451_v53 = vstv %s4436_s17  ;;  %v4453_v47 = vstv %s4437_s28 }
 0x1c0   :  { %v3875_v29 = vadd.f32 %v1068_v16, %v1067_v48  ;;  %v4447_v48 = vstv %s4433_s4  ;;  %s4448_s27 = sld [smem:[#allocation37_spill]]  ;;  %v1121_v41 = vmul.f32 %v4449_v22, %v3877_v5  ;;  %v3906_v50 = vmul.f32 %v4451_v53, %v3885_v43 }
 0x1c1   :  { %s4452_s18 = sld [smem:[#allocation35_spill]]  ;;  %v1172_v63 = vmul.f32 %v4453_v47, %v3877_v5  ;;  %v4454_v16 = vstv %s4439_s3 }
 0x1c2   :  { %v1105_v56 = vmul.f32 %v4447_v48, %v3875_v29  ;;  %v1156_v25 = vmul.f32 %v4450_v10, %v3875_v29  ;;  %v3914_v3 = vmul.f32 %v4454_v16, %v3885_v43  ;;  %v4455_v48 = vstv %s4440_s20  ;;  %s4456_s4 = sld [smem:[#allocation40_spill]] }
 0x1c3   :  { %v1207_v22 = vmul.f32 %v4455_v48, %v3875_v29  ;;  %v4457_v38 = vstv %s4442_s9  ;;  %v4458_v35 = vstv %s4444_s12  ;;  %s4484_s14 = sld [smem:[#allocation49_spill]] }
 0x1c4   :  { %v1106_v10 = vadd.f32 %v1105_v56, %v3627_v39  ;;  %v1157_v7 = vadd.f32 %v1156_v25, %v3630_v14  ;;  %v1223_v53 = vmul.f32 %v4457_v38, %v3877_v5  ;;  %v1258_v2 = vmul.f32 %v4458_v35, %v3875_v29  ;;  %s4026_s26 = sld [smem:[#allocation15 + $0x488]] }
 0x1c5   :  { %v1208_v47 = vadd.f32 %v1207_v22, %v3638_v49  ;;  %v4459_v16 = vstv %s4445_s15  ;;  %v4460_v48 = vstv %s4446_s13  ;;  %s4488_s17 = sld [smem:[#allocation33_spill]] }
 0x1c6   :  { %v3931_v20 = vmul.f32 %v4459_v16, %v3885_v43  ;;  %v1274_v40 = vmul.f32 %v4460_v48, %v3877_v5  ;;  %v4461_v39 = vstv %s4448_s27  ;;  %v1110_v14 = vadd.f32 %v3299_v6, %v1106_v10  ;;  %s4032_s28 = sld [smem:[#allocation15 + $0x489]] }
 0x1c7   :  { %v1309_v56 = vmul.f32 %v4461_v39, %v3875_v29  ;;  %v1161_v38 = vadd.f32 %v3356_v4, %v1157_v7  ;;  %v1259_v35 = vadd.f32 %v1258_v2, %v3671_v42  ;;  %v4462_v25 = vstv %s4452_s18  ;;  %s4040_s3 = sld [smem:[#allocation15 + $0x48a]] }
 0x1c8   :  { %v3945_v49 = vmul.f32 %v4462_v25, %v3885_v43  ;;  %v1212_v22 = vadd.f32 %v3417_v36, %v1208_v47  ;;  %v4463_v48 = vstv %s4456_s4  ;;  %v4464_v39 = vstv %s4392_s16  ;;  %s4009_s16 = sld [smem:[#allocation15 + $0x485]] }
 0x1c9   :  { %v1310_v16 = vadd.f32 %v1309_v56, %v3683_v32  ;;  %v1325_v61 = vmul.f32 %v4463_v48, %v3877_v5  ;;  %v1360_v17 = vmul.f32 %v4464_v39, %v3875_v29  ;;  %v1114_v6 = vadd.f32 %v3371_v23, %v1110_v14  ;;  %s4047_s20 = sld [smem:[#allocation15 + $0x48b]] }
 0x1ca   :  { %v1165_v4 = vadd.f32 %v3377_v18, %v1161_v38  ;;  %v1263_v42 = vadd.f32 %v3453_v12, %v1259_v35  ;;  %v4465_v2 = vstv %s3422_s24  ;;  %v1216_v36 = vadd.f32 %v3420_v59, %v1212_v22  ;;  %s3998_s24 = sld [smem:[#allocation15 + $0x40b]] }
 0x1cb   :  { %v3961_v7 = vmul.f32 %v4465_v2, %v3885_v43  ;;  %v1314_v32 = vadd.f32 %v3534_v21, %v1310_v16  ;;  %v1361_v10 = vadd.f32 %v1360_v17, %v3698_v31  ;;  %v4466_v47 = vstv %s3486_s5  ;;  %s4004_s5 = sld [smem:[#allocation16 + $0x8]] }
 0x1cc   :  { %v1376_v56 = vmul.f32 %v4466_v47, %v3877_v5  ;;  %v1118_v23 = vadd.f32 %v3600_v45, %v1114_v6  ;;  %v1169_v18 = vadd.f32 %v3614_v28, %v1165_v4  ;;  %v1267_v12 = vadd.f32 %v3456_v13, %v1263_v42  ;;  %s4496_s15 = sld [smem:[#allocation90_spill]] }
 0x1cd   :  { %v4467_v14 = vstv %s4413_s11  ;;  %v1220_v35 = vadd.f32 %v3643_v34, %v1216_v36  ;;  %v1318_v59 = vadd.f32 %v3539_v37, %v1314_v32  ;;  %v1365_v21 = vadd.f32 %v3593_v44, %v1361_v10  ;;  %v4474_v36 = vld [vmem:[#allocation65_spill] sm:$0xff]  ;;  %s4481_s11 = sld [smem:[#allocation43_spill]] }
 0x1ce   :  { %v1411_v38 = vmul.f32 %v4467_v14, %v3875_v29  ;;  %v4468_v31 = vstv %s4411_s30  ;;  %v1122_v25 = vadd.f32 %v1121_v41, %v1118_v23  ;;  %v1173_v45 = vadd.f32 %v1172_v63, %v1169_v18  ;;  %v4478_v18 = vld [vmem:[#allocation67_spill] sm:$0xff]  ;;  %s4479_s30 = sld [smem:[#allocation32_spill]]  ;;  %v4480_v14 = vld [vmem:[#allocation62_spill] sm:$0xff] }
 0x1cf   :  { %v3981_v17 = vmul.f32 %v4468_v31, %v3885_v43  ;;  %v1271_v28 = vadd.f32 %v3653_v26, %v1267_v12  ;;  %v1224_v22 = vadd.f32 %v1223_v53, %v1220_v35  ;;  %v1322_v16 = vadd.f32 %v3665_v15, %v1318_v59  ;;  %v4483_v35 = vld [vmem:[#allocation78_spill] sm:$0xff]  ;;  %s4066_s18 = sld [smem:[#allocation15 + $0x500]] }
 0x1d0   :  { %v1412_v13 = vadd.f32 %v1411_v38, %v3746_v19  ;;  %v1369_v34 = vadd.f32 %v3677_v51, %v1365_v21  ;;  %v4469_v37 = vstv %s4415_s21  ;;  %v1126_v44 = vadd.f32 %v3321_v0, %v1122_v25  ;;  %v4482_v38 = vld [vmem:[#allocation70_spill] sm:$0xff]  ;;  %s4021_s21 = sld [smem:[#allocation15 + $0x487]]  ;;  %v4485_v25 = vld [vmem:[#allocation68_spill] sm:$0xff] }
 0x1d1   :  { %v1427_v48 = vmul.f32 %v4469_v37, %v3877_v5  ;;  %v1177_v39 = vadd.f32 %v3389_v27, %v1173_v45  ;;  %v1275_v6 = vadd.f32 %v1274_v40, %v1271_v28  ;;  %v1228_v63 = vadd.f32 %v3431_v9, %v1224_v22  ;;  %v4471_v27 = vld [vmem:[#allocation73_spill] sm:$0xff]  ;;  %s4183_s13 = sld [smem:[#allocation15 + $0x584]] }
 0x1d2   :  { %v1416_v41 = vadd.f32 %v3725_v60, %v1412_v13  ;;  %v1326_v26 = vadd.f32 %v1325_v61, %v1322_v16  ;;  %v1373_v19 = vadd.f32 %v3686_v11, %v1369_v34  ;;  %v4470_v53 = vstv %s3668_s22  ;;  %v4472_v60 = vld [vmem:[#allocation59_spill] sm:$0xff]  ;;  %v4473_v61 = vld [vmem:[#allocation61_spill] sm:$0xff]  ;;  %s4015_s22 = sld [smem:[#allocation15 + $0x486]] }
 0x1d3   :  { %v1462_v15 = vmul.f32 %v4470_v53, %v3875_v29  ;;  %v1130_v51 = vadd.f32 %v3374_v1, %v1126_v44  ;;  %v1181_v4 = vadd.f32 %v3402_v33, %v1177_v39  ;;  %v1279_v0 = vadd.f32 %v3501_v30, %v1275_v6  ;;  %v4475_v1 = vld [vmem:[#allocation66_spill] sm:$0xff]  ;;  %v4476_v33 = vld [vmem:[#allocation60_spill] sm:$0xff]  ;;  %v4486_v22 = vld [vmem:[#allocation69_spill] sm:$0xff]  ;;  %s4187_s27 = sld [smem:[#allocation15 + $0x50a]] }
 0x1d4   :  { %v1420_v40 = vadd.f32 %v4471_v27, %v1416_v41  ;;  %v1232_v9 = vadd.f32 %v4472_v60, %v1228_v63  ;;  %v1330_v42 = vadd.f32 %v4473_v61, %v1326_v26  ;;  %v1377_v11 = vadd.f32 %v1376_v56, %v1373_v19  ;;  %v4477_v30 = vld [vmem:[#allocation74_spill] sm:$0xff]  ;;  %v4487_v34 = vld [vmem:[#allocation71_spill] sm:$0xff]  ;;  %s4196_s4 = sld [smem:[#allocation15 + $0x50b]] }
 0x1d5   :  { %v1463_v2 = vadd.f32 %v1462_v15, %v3825_v62  ;;  %v1134_v32 = vadd.f32 %v4474_v36, %v1130_v51  ;;  %v1185_v10 = vadd.f32 %v4475_v1, %v1181_v4  ;;  %v1283_v47 = vadd.f32 %v4476_v33, %v1279_v0  ;;  %v4489_v44 = vld [vmem:[#allocation79_spill] sm:$0xff]  ;;  %v4494_v15 = vld [vmem:[#allocation72_spill] sm:$0xff]  ;;  %v4503_v33 = vld [vmem:[#allocation77_spill] sm:$0xff] }
 0x1d6   :  { %v1424_v23 = vadd.f32 %v4477_v30, %v1420_v40  ;;  %v1236_v12 = vadd.f32 %v4478_v18, %v1232_v9  ;;  %v1334_v56 = vadd.f32 %v4480_v14, %v1330_v42  ;;  %v1381_v62 = vadd.f32 %v4482_v38, %v1377_v11  ;;  %v4492_v63 = vld [vmem:[#allocation75_spill] sm:$0xff]  ;;  %v4495_v4 = vld [vmem:[#allocation80_spill] sm:$0xff] }
 0x1d7   :  { %v1467_v59 = vadd.f32 %v4483_v35, %v1463_v2  ;;  %v1138_v21 = vadd.f32 %v3906_v50, %v1134_v32  ;;  %v1189_v31 = vadd.f32 %v3914_v3, %v1185_v10  ;;  %v1287_v45 = vadd.f32 %v4485_v25, %v1283_v47  ;;  %v4507_v35 = vld [vmem:[#allocation81_spill] sm:$0xff] }
 0x1d8   :  { %v1428_v28 = vadd.f32 %v1427_v48, %v1424_v23  ;;  %v1240_v13 = vadd.f32 %v3931_v20, %v1236_v12  ;;  %v1338_v16 = vadd.f32 %v4486_v22, %v1334_v56  ;;  %v1385_v37 = vadd.f32 %v4487_v34, %v1381_v62 }
 0x1d9   :  { %v1471_v39 = vadd.f32 %v4489_v44, %v1467_v59  ;;  %v4490_v50 = vstv %s4479_s30  ;;  %v4491_v6 = vstv %s4481_s11  ;;  %v1291_v48 = vadd.f32 %v3945_v49, %v1287_v45  ;;  %s4199_s30 = sld [smem:[#allocation15 + $0x586]] }
 0x1da   :  { %v1141_v3 = vadd.f32 %v4490_v50, %v1138_v21  ;;  %v1192_v41 = vadd.f32 %v4491_v6, %v1189_v31  ;;  %v1432_v20 = vadd.f32 %v4492_v63, %v1428_v28  ;;  %v4493_v26 = vstv %s4484_s14  ;;  %s4218_s11 = sld [smem:[#allocation15 + $0x588]] }
 0x1db   :  { %v1243_v19 = vadd.f32 %v4493_v26, %v1240_v13  ;;  %v1342_v53 = vadd.f32 %v3961_v7, %v1338_v16  ;;  %v1389_v51 = vadd.f32 %v4494_v15, %v1385_v37  ;;  %v1475_v0 = vadd.f32 %v4495_v4, %v1471_v39  ;;  %v4498_v7 = vld [vmem:[#allocation76_spill] sm:$0xff]  ;;  %v4511_v37 = vld [vmem:[#allocation82_spill] sm:$0xff]  ;;  %v4514_v15 = vld [vmem:[#allocation85_spill] sm:$0xff]  ;;  %s2006_s14 = sld [smem:[#allocation16 + $0xb]] }
 0x1dc   :  { %1142 = vst.msk [vmem:[%s4496_s15] sm:$0x1] %vm447_vm3, %v1141_v3  ;;  %1193 = vst.msk [vmem:[%s4496_s15 + $0x1] sm:$0x1] %vm447_vm3, %v1192_v41  ;;  %v4497_v49 = vstv %s4488_s17  ;;  %v1436_v40 = vadd.f32 %v4498_v7, %v1432_v20  ;;  %v4499_v60 = vstv %s3595_s23  ;;  %s4079_s23 = sld [smem:[#allocation15 + $0x501]]  ;;  %v1561_v23 = vadd.f32 %v3890_v52, %v3887_v58  ;;  %v4513_v20 = vld [vmem:[#allocation83_spill] sm:$0xff] }
 0x1dd   :  { %v1294_v27 = vadd.f32 %v4497_v49, %v1291_v48  ;;  %v1443_v9 = vmul.f32 %v4499_v60, %v3885_v43  ;;  %v4500_v61 = vstv %s3705_s2  ;;  %1244 = vst.msk [vmem:[%s4496_s15 + $0x2] sm:$0x1] %vm447_vm3, %v1243_v19  ;;  %v4501_v11 = vstv %s3427_s0  ;;  %s4089_s0 = sld [smem:[#allocation15 + $0x502]] }
 0x1de   :  { %v1478_v42 = vmul.f32 %v4500_v61, %v3877_v5  ;;  %v1345_v2 = vadd.f32 %v4501_v11, %v1342_v53  ;;  %v1393_v36 = vadd.f32 %v3981_v17, %v1389_v51  ;;  %v4502_v32 = vstv %s3802_s8  ;;  %s4154_s17 = sld [smem:[#allocation15 + $0x509]]  ;;  %v4516_v11 = vld [vmem:[#allocation36_spill] sm:$0xff] }
 0x1df   :  { %v1513_v1 = vmul.f32 %v4502_v32, %v3875_v29  ;;  %v1544_v10 = vstv %s3998_s24  ;;  %1295 = vst.msk [vmem:[%s4496_s15 + $0x3] sm:$0x1] %vm447_vm3, %v1294_v27  ;;  %v1440_v47 = vadd.f32 %v4503_v33, %v1436_v40  ;;  %v1571_v17 = vstv %s4009_s16  ;;  %s4104_s16 = sld [smem:[#allocation15 + $0x503]] }
 0x1e0   :  { %v1479_v30 = vadd.f32 %v1478_v42, %v1475_v0  ;;  %1346 = vst.msk [vmem:[%s4496_s15 + $0x4] sm:$0x1] %vm447_vm3, %v1345_v2  ;;  %v4504_v18 = vstv %s4412_s19  ;;  %v4505_v56 = vstv %s3847_s1  ;;  %v4506_v62 = vstv %s3853_s25  ;;  %s4111_s19 = sld [smem:[#allocation15 + $0x504]]  ;;  %v4515_v0 = vld [vmem:[#allocation58_spill] sm:$0xff] }
 0x1e1   :  { %v1396_v12 = vadd.f32 %v4504_v18, %v1393_v36  ;;  %v1514_v14 = vadd.f32 %v1513_v1, %v3855_v46  ;;  %v1564_v38 = vmul.f32 %v4505_v56, %v3875_v29  ;;  %v1568_v58 = vmul.f32 %v4506_v62, %v3233_v57  ;;  %v4509_v46 = vld [vmem:[#allocation84_spill] sm:$0xff]  ;;  %s4120_s25 = sld [smem:[#allocation16 + $0x9]]  ;;  %v4517_v36 = vld [vmem:[#allocation57_spill] sm:$0xff] }
 0x1e2   :  { %v1444_v52 = vadd.f32 %v1443_v9, %v1440_v47  ;;  %v1483_v59 = vadd.f32 %v4507_v35, %v1479_v30  ;;  %v4508_v21 = vstv %s3751_s10  ;;  %v1575_v25 = vstv %s4015_s22  ;;  %s4129_s10 = sld [smem:[#allocation15 + $0x505]] }
 0x1e3   :  { %v1494_v31 = vmul.f32 %v4508_v21, %v3885_v43  ;;  %1397 = vst.msk [vmem:[%s4496_s15 + $0x5] sm:$0x1] %vm447_vm3, %v1396_v12  ;;  %v1518_v45 = vadd.f32 %v4509_v46, %v1514_v14  ;;  %v1565_v28 = vadd.f32 %v1564_v38, %v1561_v23  ;;  %v1572_v13 = vmul.f32 %v1571_v17, %v3339_v8  ;;  %v4519_v23 = vld [vmem:[#allocation86_spill] sm:$0xff]  ;;  %v4520_v14 = vld [vmem:[#allocation63_spill] sm:$0xff]  ;;  %v4521_v38 = vld [vmem:[#allocation64_spill] sm:$0xff]  ;;  %s2005_s1 = sld [smem:[#allocation15 + $0x58b]] }
 0x1e4   :  { %v1579_v22 = vstv %s4021_s21  ;;  %v4510_v16 = vstv %s3604_s6  ;;  %v1487_v44 = vadd.f32 %v4511_v37, %v1483_v59  ;;  %v4512_v39 = vstv %s3808_s29  ;;  %s4134_s6 = sld [smem:[#allocation15 + $0x506]]  ;;  %v4522_v59 = vld [vmem:[#allocation87_spill] sm:$0xff] }
 0x1e5   :  { %v1447_v34 = vadd.f32 %v4510_v16, %v1444_v52  ;;  %v1529_v50 = vmul.f32 %v4512_v39, %v3877_v5  ;;  %v1583_v3 = vstv %s4026_s26  ;;  %v1522_v6 = vadd.f32 %v3858_v55, %v1518_v45  ;;  %s4144_s29 = sld [smem:[#allocation15 + $0x507]] }
 0x1e6   :  { %v1569_v41 = vadd.f32 %v1568_v58, %v1565_v28  ;;  %v1576_v48 = vmul.f32 %v1575_v25, %v3567_v54  ;;  %v1587_v63 = vstv %s4032_s28  ;;  %v1491_v26 = vadd.f32 %v4513_v20, %v1487_v44  ;;  %s4149_s26 = sld [smem:[#allocation15 + $0x508]] }
 0x1e7   :  { %1448 = vst.msk [vmem:[%s4496_s15 + $0x6] sm:$0x1] %vm447_vm3, %v1447_v34  ;;  %v1545_v19 = vmul.f32 %v1544_v10, %v3885_v43  ;;  %v1580_v55 = vmul.f32 %v1579_v22, %v3877_v5  ;;  %v1584_v53 = vmul.f32 %v1583_v3, %v3238_v24  ;;  %v1526_v51 = vadd.f32 %v4514_v15, %v1522_v6  ;;  %s4158_s28 = sld [smem:[#allocation15 + $0x580]] }
 0x1e8   :  { %v1573_v4 = vadd.f32 %v1572_v13, %v1569_v41  ;;  %v1588_v49 = vmul.f32 %v1587_v63, %v4515_v0  ;;  %v1591_v27 = vstv %s4040_s3  ;;  %v1495_v7 = vadd.f32 %v1494_v31, %v1491_v26  ;;  %s4165_s3 = sld [smem:[#allocation15 + $0x581]]  ;;  %v4523_v13 = vld [vmem:[#allocation88_spill] sm:$0xff] }
 0x1e9   :  { %v1595_v40 = vstv %s4047_s20  ;;  %v1603_v60 = vstv %s4066_s18  ;;  %v1606_v9 = vstv %s4079_s23  ;;  %v1530_v61 = vadd.f32 %v1529_v50, %v1526_v51  ;;  %s4169_s20 = sld [smem:[#allocation15 + $0x582]] }
 0x1ea   :  { %v1577_v42 = vadd.f32 %v1576_v48, %v1573_v4  ;;  %v1604_v2 = vmul.f32 %v1603_v60, %v4516_v11  ;;  %v1607_v32 = vmul.f32 %v1606_v9, %v4517_v36  ;;  %v4518_v1 = vstv %s3759_s7  ;;  %s4179_s7 = sld [smem:[#allocation15 + $0x583]] }
 0x1eb   :  { %v1498_v10 = vadd.f32 %v4518_v1, %v1495_v7  ;;  %v1610_v33 = vstv %s4089_s0  ;;  %v1614_v47 = vstv %s4104_s16  ;;  %v1618_v30 = vstv %s4111_s19  ;;  %s4191_s18 = sld [smem:[#allocation15 + $0x585]] }
 0x1ec   :  { %v1534_v17 = vadd.f32 %v4519_v23, %v1530_v61  ;;  %v1581_v18 = vadd.f32 %v1580_v55, %v1577_v42  ;;  %v1608_v12 = vadd.f32 %v1607_v32, %v1604_v2  ;;  %v1611_v56 = vmul.f32 %v1610_v33, %v4520_v14  ;;  %s4221_s0 = sld [smem:[#allocation16 + $0xa]] }
 0x1ed   :  { %1499 = vst.msk [vmem:[%s4496_s15 + $0x7] sm:$0x1] %vm447_vm3, %v1498_v10  ;;  %v1592_v62 = vmul.f32 %v1591_v27, %v4521_v38  ;;  %v1615_v58 = vmul.f32 %v1614_v47, %v3875_v29  ;;  %v1619_v52 = vmul.f32 %v1618_v30, %v3233_v57  ;;  %v1622_v35 = vstv %s4129_s10  ;;  %s2003_s16 = sld [smem:[#allocation15 + $0x589]] }
 0x1ee   :  { %v1538_v21 = vadd.f32 %v4522_v59, %v1534_v17  ;;  %v1585_v31 = vadd.f32 %v1584_v53, %v1581_v18  ;;  %v1612_v25 = vadd.f32 %v1611_v56, %v1608_v12  ;;  %v1626_v46 = vstv %s4134_s6  ;;  %s2004_s19 = sld [smem:[#allocation15 + $0x58a]] }
 0x1ef   :  { %v1596_v45 = vmul.f32 %v1595_v40, %v3885_v43  ;;  %v1623_v28 = vmul.f32 %v1622_v35, %v3339_v8  ;;  %v1630_v37 = vstv %s4144_s29  ;;  %v1548_v44 = vstv %s4004_s5  ;;  %s4206_s5 = sld [smem:[#allocation15 + $0x587]] }
 0x1f0   :  { %v1542_v22 = vadd.f32 %v4523_v13, %v1538_v21  ;;  %v1589_v16 = vadd.f32 %v1588_v49, %v1585_v31  ;;  %v1616_v34 = vadd.f32 %v1615_v58, %v1612_v25  ;;  %v1599_v39 = vstv %s4120_s25 }
 0x1f1   :  { %v1627_v50 = vmul.f32 %v1626_v46, %v3567_v54  ;;  %v1634_v48 = vstv %s4149_s26  ;;  %v1631_v63 = vmul.f32 %v1630_v37, %v3877_v5  ;;  %v1638_v20 = vstv %s4154_s17 }
 0x1f2   :  { %v1546_v3 = vadd.f32 %v1545_v19, %v1542_v22  ;;  %v1593_v6 = vadd.f32 %v1592_v62, %v1589_v16  ;;  %v1620_v41 = vadd.f32 %v1619_v52, %v1616_v34  ;;  %v1654_v26 = vstv %s4158_s28 }
 0x1f3   :  { %v1657_v55 = vstv %s4165_s3  ;;  %v1655_v4 = vmul.f32 %v1654_v26, %v4516_v11  ;;  %v1635_v19 = vmul.f32 %v1634_v48, %v3238_v24  ;;  %v1661_v27 = vstv %s4169_s20 }
 0x1f4   :  { %v1549_v53 = vadd.f32 %v1548_v44, %v1546_v3  ;;  %v1597_v15 = vadd.f32 %v1596_v45, %v1593_v6  ;;  %v1624_v51 = vadd.f32 %v1623_v28, %v1620_v41  ;;  %v1658_v49 = vmul.f32 %v1657_v55, %v4517_v36 }
 0x1f5   :  { %v1665_v7 = vstv %s4179_s7  ;;  %v1662_v9 = vmul.f32 %v1661_v27, %v4520_v14  ;;  %v1669_v61 = vstv %s4183_s13  ;;  %v1642_v42 = vstv %s4187_s27 }
 0x1f6   :  { %1550 = vst.msk [vmem:[%s4496_s15 + $0x8] sm:$0x1] %vm447_vm3, %v1549_v53  ;;  %v1600_v40 = vadd.f32 %v1599_v39, %v1597_v15  ;;  %v1628_v60 = vadd.f32 %v1627_v50, %v1624_v51  ;;  %v1659_v11 = vadd.f32 %v1658_v49, %v1655_v4  ;;  %v1666_v2 = vmul.f32 %v1665_v7, %v3875_v29 }
 0x1f7   :  { %v1639_v32 = vmul.f32 %v1638_v20, %v4515_v0  ;;  %v1673_v1 = vstv %s4191_s18  ;;  %v1646_v10 = vstv %s4196_s4  ;;  %v1670_v47 = vmul.f32 %v1669_v61, %v3233_v57 }
 0x1f8   :  { %1601 = vst.msk [vmem:[%s4496_s15 + $0x9] sm:$0x1] %vm447_vm3, %v1600_v40  ;;  %v1632_v36 = vadd.f32 %v1631_v63, %v1628_v60  ;;  %v1663_v33 = vadd.f32 %v1662_v9, %v1659_v11  ;;  %v1643_v29 = vmul.f32 %v1642_v42, %v4521_v38  ;;  %v1677_v23 = vstv %s4199_s30 }
 0x1f9   :  { %v1674_v18 = vmul.f32 %v1673_v1, %v3339_v8  ;;  %v1647_v14 = vmul.f32 %v1646_v10, %v3885_v43  ;;  %v1681_v56 = vstv %s4206_s5  ;;  %v1678_v58 = vmul.f32 %v1677_v23, %v3567_v54 }
 0x1fa   :  { %v1636_v30 = vadd.f32 %v1635_v19, %v1632_v36  ;;  %v1667_v17 = vadd.f32 %v1666_v2, %v1663_v33  ;;  %v1685_v35 = vstv %s4218_s11  ;;  %v1650_v59 = vstv %s4221_s0 }
 0x1fb   :  { %v1682_v21 = vmul.f32 %v1681_v56, %v3877_v5  ;;  %v1689_v25 = vstv %s2003_s16  ;;  %v1686_v45 = vmul.f32 %v1685_v35, %v3238_v24  ;;  %v1693_v28 = vstv %s2004_s19 }
 0x1fc   :  { %v1640_v12 = vadd.f32 %v1639_v32, %v1636_v30  ;;  %v1671_v62 = vadd.f32 %v1670_v47, %v1667_v17  ;;  %v1690_v22 = vmul.f32 %v1689_v25, %v4515_v0  ;;  %v1697_v54 = vstv %s2005_s1 }
 0x1fd   :  { %v1694_v5 = vmul.f32 %v1693_v28, %v4521_v38  ;;  %v1698_v37 = vmul.f32 %v1697_v54, %v3885_v43  ;;  %v1701_v24 = vstv %s2006_s14 }
 0x1fe   :  { %v1644_v52 = vadd.f32 %v1643_v29, %v1640_v12  ;;  %v1675_v57 = vadd.f32 %v1674_v18, %v1671_v62 }
 0x200   :  { %v1648_v31 = vadd.f32 %v1647_v14, %v1644_v52  ;;  %v1679_v46 = vadd.f32 %v1678_v58, %v1675_v57 }
 0x202   :  { %v1651_v8 = vadd.f32 %v1650_v59, %v1648_v31  ;;  %v1683_v13 = vadd.f32 %v1682_v21, %v1679_v46 }
 0x204   :  { %1652 = vst.msk [vmem:[%s4496_s15 + $0xa] sm:$0x1] %vm447_vm3, %v1651_v8  ;;  %v1687_v16 = vadd.f32 %v1686_v45, %v1683_v13 }
 0x206   :  { %v1691_v34 = vadd.f32 %v1690_v22, %v1687_v16 }
 0x208   :  { %v1695_v44 = vadd.f32 %v1694_v5, %v1691_v34 }
 0x20a   :  { %v1699_v39 = vadd.f32 %v1698_v37, %v1695_v44 }
 0x20c   :  { %v1702_v50 = vadd.f32 %v1701_v24, %v1699_v39 }
 0x20e   :  { %1703 = vst.msk [vmem:[%s4496_s15 + $0xb] sm:$0x1] %vm447_vm3, %v1702_v50 }
 0x20f   :  { %1708 = vsyncpa [#allocation3], 1 }
 0x210   :  { %1709 = vsyncpa [#allocation5], 1 }
 0x211   :  { %1710 = vsyncpa [#allocation8], 1 }
 0x212   :  { %1711 = vsyncpa [#allocation11], 1 }
 0x213   :  { %1712 = vsyncpa [#allocation14], 1 }
 0x214   :  { %1713 = vsyncpa [#allocation17], 1 }

</bundles_post_ra>
